<compile_context>
chip_gen: v6e
topology: v6e:2x2x1
jax: 0.10.0
libtpu: 0.0.40
codegen_flags: <defaults>
</compile_context>

<pallas_src>
import jax
import jax.numpy as jnp
from jax.experimental import pallas as pl
from jax.experimental.pallas import tpu as pltpu


def _cross_attention_kernel(q_ref, k_ref, r_ref, wq_exp_ref, bq_exp_ref,
                            wkT_ref, bk_ref, o_ref):
    """o[t*D + i, j] = softmax_j( q'[t, i] * k'[t, j] ) for one batch block.

    Shapes (TB = batch rows per step, D = feature dim, C = TB*D):
      q_ref, k_ref : (TB, D)   raw inputs for this batch block
      r_ref        : (C, TB)   constant 0/1 "repeat each row D times" matrix
      wq_exp_ref   : (C, D)    Wq row-tiled:  wq_exp[c, m] = Wq[c % D, m]
      bq_exp_ref   : (C, 1)    bq row-tiled:  bq_exp[c]    = bq[c % D]
      wkT_ref      : (D, D)    Wk^T (so k @ Wk^T is a plain matmul)
      bk_ref       : (1, D)
      o_ref        : (C, D)    final row-major layout of (TB, D, D)
    """
    f32 = jnp.float32

    # k' = k @ Wk^T + bk                                    (TB, D)   MXU
    kp = jnp.dot(k_ref[...], wkT_ref[...], preferred_element_type=f32) + bk_ref[...]

    # Repeat each batch row D times along the flattened (t*D + i) axis, on the
    # otherwise-idle MXU (constant one-hot matrix, no per-step mask generation):
    #   kexp[c, j]  = k'[c // D, j]
    #   qrows[c, m] = q [c // D, m]
    kexp = jnp.dot(r_ref[...], kp, preferred_element_type=f32)            # (C, D)
    qrows = jnp.dot(r_ref[...], q_ref[...], preferred_element_type=f32)   # (C, D)

    # q' flattened:  qflat[c] = q'[c // D, c % D]
    #              = sum_m q[c//D, m] * Wq[c % D, m] + bq[c % D]
    qflat = (jnp.sum(qrows * wq_exp_ref[...], axis=-1, keepdims=True)
             + bq_exp_ref[...])                                           # (C, 1)

    # scores[c, j] = q'[t, i] * k'[t, j]   (c = t*D + i) -- already in the
    # output's row-major layout, so no transpose is ever needed.
    s = qflat * kexp                                                      # (C, D)

    # Numerically stable softmax over j (lane axis).
    m = jnp.max(s, axis=-1, keepdims=True)                                # (C, 1)
    p = jnp.exp(s - m)                                                    # (C, D)  EUP
    denom = jnp.sum(p, axis=-1, keepdims=True)                            # (C, 1)
    o_ref[...] = p * pl.reciprocal(denom, approx=False)                   # exact normalisation


def _const_spec(shape):
    """BlockSpec for a grid-invariant input: constant block index, single buffer."""
    idx = lambda b, _s=shape: (0,) * len(_s)
    try:
        return pl.BlockSpec(shape, idx, pipeline_mode=pl.Buffered(1))
    except Exception:  # older API without pipeline_mode: fall back to default buffering
        return pl.BlockSpec(shape, idx)


def cross_attention(q, k, v, params):
    """q, k, v: (B, D) arrays; params in torch nn.Linear layout (W (out,in), b (out,)).

    Returns softmax(q' outer k', axis=-1) of shape (B, D, D), matching
    CrossAttention.forward.  v / v_linear do not affect the returned attention
    weights in the module's forward pass, so they are not part of the kernel.
    """
    del v
    f32 = jnp.float32
    q = q.astype(f32)
    k = k.astype(f32)
    B, D = q.shape

    # Pad the batch to a sublane-aligned multiple of 8 (removes the old
    # unbounded TB = B fallback; padded rows are sliced off at the end).
    Bp = ((B + 7) // 8) * 8
    if Bp != B:
        pad = ((0, Bp - B), (0, 0))
        q = jnp.pad(q, pad)
        k = jnp.pad(k, pad)

    # Small, capped batch block (review: TB ~16).  >=2 grid steps whenever the
    # (padded) batch allows it, so v7x's second TensorCore is used.
    TB = 16 if (Bp % 16 == 0 and Bp >= 32) else 8
    TB = min(TB, Bp)
    nb = Bp // TB
    C = TB * D

    # Wrapper-side constants (pure layout plumbing, grid-invariant):
    r_mat = jnp.repeat(jnp.eye(TB, dtype=f32), D, axis=0)                    # (C, TB)
    wq_exp = jnp.tile(params["wq"].astype(f32), (TB, 1))                     # (C, D)
    bq_exp = jnp.tile(params["bq"].astype(f32).reshape(D, 1), (TB, 1))       # (C, 1)
    wkT = params["wk"].astype(f32).T                                         # (D, D)
    bk_row = params["bk"].astype(f32).reshape(1, D)                          # (1, D)

    # Advisory cost estimate for XLA's scheduler.
    flops = nb * (2 * 2 * C * TB * D      # two (C,TB)x(TB,D) broadcast matmuls
                  + 2 * TB * D * D        # k projection
                  + 10 * C * D)           # elementwise + reductions
    transcendentals = nb * C * D          # exp
    bytes_accessed = 4 * (Bp * D * D              # output
                          + 2 * Bp * D            # q, k
                          + C * (TB + D + 1)      # constants
                          + D * D + D)
    cost = pl.CostEstimate(flops=int(flops),
                           transcendentals=int(transcendentals),
                           bytes_accessed=int(bytes_accessed))

    out_flat = pl.pallas_call(
        _cross_attention_kernel,
        out_shape=jax.ShapeDtypeStruct((Bp * D, D), f32),
        grid=(nb,),
        in_specs=[
            pl.BlockSpec((TB, D), lambda b: (b, 0)),   # q  (per-step block)
            pl.BlockSpec((TB, D), lambda b: (b, 0)),   # k  (per-step block)
            _const_spec((C, TB)),                      # R        (grid-invariant)
            _const_spec((C, D)),                       # Wq tiled (grid-invariant)
            _const_spec((C, 1)),                       # bq tiled (grid-invariant)
            _const_spec((D, D)),                       # Wk^T     (grid-invariant)
            _const_spec((1, D)),                       # bk       (grid-invariant)
        ],
        out_specs=pl.BlockSpec((C, D), lambda b: (b, 0)),
        compiler_params=pltpu.CompilerParams(dimension_semantics=("parallel",)),
        cost_estimate=cost,
    )(q, k, r_mat, wq_exp, bq_exp, wkT, bk_row)

    # Free reshape (row-major layout already matches); drop padded batch rows.
    return out_flat.reshape(Bp, D, D)[:B]


def _reference(q, k, params):
    qp = q @ params["wq"].T + params["bq"]
    kp = k @ params["wk"].T + params["bk"]
    scores = qp[:, :, None] * kp[:, None, :]
    return jax.nn.softmax(scores, axis=-1)


if __name__ == "__main__":
    D = 64   # module default dim
    key = jax.random.PRNGKey(0)
    kwq, kwk, kwv, kbq, kbk, kbv = jax.random.split(key, 6)

    # torch nn.Linear layout: W (out, in), b (out,)
    scale = 1.0 / (D ** 0.5)
    params = {
        "wq": jax.random.uniform(kwq, (D, D), jnp.float32, -scale, scale),
        "wk": jax.random.uniform(kwk, (D, D), jnp.float32, -scale, scale),
        "wv": jax.random.uniform(kwv, (D, D), jnp.float32, -scale, scale),
        "bq": jax.random.uniform(kbq, (D,), jnp.float32, -scale, scale),
        "bk": jax.random.uniform(kbk, (D,), jnp.float32, -scale, scale),
        "bv": jax.random.uniform(kbv, (D,), jnp.float32, -scale, scale),
    }

    # B=16 exercises the multi-step "parallel" grid (2 steps -> both v7x TCs);
    # B=5 exercises the padded-batch path (pads to 8, single step).
    for B in (16, 5):
        kq, kk, kv = jax.random.split(jax.random.fold_in(key, B), 3)
        q = jax.random.normal(kq, (B, D), dtype=jnp.float32)
        k = jax.random.normal(kk, (B, D), dtype=jnp.float32)
        v = jax.random.normal(kv, (B, D), dtype=jnp.float32)

        out = jax.block_until_ready(cross_attention(q, k, v, params))
        ref = _reference(q, k, params)
        assert out.shape == (B, D, D)
        assert bool(jnp.allclose(out, ref, atol=2e-5, rtol=1e-4)), f"mismatch vs reference at B={B}"

    print("KERNEL_OK")
</pallas_src>

<mosaic_0001>
module attributes {stable_mosaic.version = 11 : i64} {
  func.func @_cross_attention_kernel(%arg0: i32, %arg1: memref<8x64xf32, #tpu.memory_space<vmem>>, %arg2: memref<8x64xf32, #tpu.memory_space<vmem>>, %arg3: memref<512x8xf32, #tpu.memory_space<vmem>>, %arg4: memref<512x64xf32, #tpu.memory_space<vmem>>, %arg5: memref<512x1xf32, #tpu.memory_space<vmem>>, %arg6: memref<64x64xf32, #tpu.memory_space<vmem>>, %arg7: memref<1x64xf32, #tpu.memory_space<vmem>>, %arg8: memref<512x64xf32, #tpu.memory_space<vmem>>) attributes {dimension_semantics = [#tpu.dimension_semantics<parallel>], iteration_bounds = array<i64: 2>, scalar_prefetch = 0 : i64, scratch_operands = 0 : i64, tpu.core_type = #tpu.core_type<tc>, window_params = [{transform_indices = @transform_0, window_bounds = array<i64: 8, 64>}, {transform_indices = @transform_1, window_bounds = array<i64: 8, 64>}, {pipeline_mode = #tpu.pipeline_mode<synchronous>, transform_indices = @transform_2, window_bounds = array<i64: 512, 8>}, {pipeline_mode = #tpu.pipeline_mode<synchronous>, transform_indices = @transform_3, window_bounds = array<i64: 512, 64>}, {pipeline_mode = #tpu.pipeline_mode<synchronous>, transform_indices = @transform_4, window_bounds = array<i64: 512, 1>}, {pipeline_mode = #tpu.pipeline_mode<synchronous>, transform_indices = @transform_5, window_bounds = array<i64: 64, 64>}, {pipeline_mode = #tpu.pipeline_mode<synchronous>, transform_indices = @transform_6, window_bounds = array<i64: 1, 64>}, {transform_indices = @transform_7, window_bounds = array<i64: 512, 64>}]} {
    %c0 = arith.constant 0 : index
    %c0_0 = arith.constant 0 : index
    %0 = vector.load %arg2[%c0, %c0_0] : memref<8x64xf32, #tpu.memory_space<vmem>>, vector<8x64xf32>
    %c0_1 = arith.constant 0 : index
    %c0_2 = arith.constant 0 : index
    %1 = vector.load %arg6[%c0_1, %c0_2] : memref<64x64xf32, #tpu.memory_space<vmem>>, vector<64x64xf32>
    %cst = arith.constant dense<0.000000e+00> : vector<8x64xf32>
    %2 = tpu.matmul %0, %1, %cst {dimension_numbers = #tpu.dot_dimension_numbers<[1], [0], [0], [1], [0, 0, 1, 1], [], []>} : vector<8x64xf32>, vector<64x64xf32>, vector<8x64xf32> -> vector<8x64xf32>
    %c0_3 = arith.constant 0 : index
    %c0_4 = arith.constant 0 : index
    %3 = vector.load %arg7[%c0_3, %c0_4] : memref<1x64xf32, #tpu.memory_space<vmem>>, vector<1x64xf32>
    %4 = vector.broadcast %3 : vector<1x64xf32> to vector<8x64xf32>
    %5 = arith.addf %2, %4 : vector<8x64xf32>
    %c0_5 = arith.constant 0 : index
    %c0_6 = arith.constant 0 : index
    %6 = vector.load %arg3[%c0_5, %c0_6] : memref<512x8xf32, #tpu.memory_space<vmem>>, vector<512x8xf32>
    %cst_7 = arith.constant dense<0.000000e+00> : vector<512x64xf32>
    %7 = tpu.matmul %6, %5, %cst_7 {dimension_numbers = #tpu.dot_dimension_numbers<[1], [0], [0], [1], [0, 0, 1, 1], [], []>} : vector<512x8xf32>, vector<8x64xf32>, vector<512x64xf32> -> vector<512x64xf32>
    %c0_8 = arith.constant 0 : index
    %c0_9 = arith.constant 0 : index
    %8 = vector.load %arg3[%c0_8, %c0_9] : memref<512x8xf32, #tpu.memory_space<vmem>>, vector<512x8xf32>
    %c0_10 = arith.constant 0 : index
    %c0_11 = arith.constant 0 : index
    %9 = vector.load %arg1[%c0_10, %c0_11] : memref<8x64xf32, #tpu.memory_space<vmem>>, vector<8x64xf32>
    %cst_12 = arith.constant dense<0.000000e+00> : vector<512x64xf32>
    %10 = tpu.matmul %8, %9, %cst_12 {dimension_numbers = #tpu.dot_dimension_numbers<[1], [0], [0], [1], [0, 0, 1, 1], [], []>} : vector<512x8xf32>, vector<8x64xf32>, vector<512x64xf32> -> vector<512x64xf32>
    %c0_13 = arith.constant 0 : index
    %c0_14 = arith.constant 0 : index
    %11 = vector.load %arg4[%c0_13, %c0_14] : memref<512x64xf32, #tpu.memory_space<vmem>>, vector<512x64xf32>
    %12 = arith.mulf %10, %11 : vector<512x64xf32>
    %cst_15 = arith.constant dense<0.000000e+00> : vector<512xf32>
    %13 = vector.multi_reduction <add>, %12, %cst_15 [1] : vector<512x64xf32> to vector<512xf32>
    %14 = vector.shape_cast %13 : vector<512xf32> to vector<512x1xf32>
    %c0_16 = arith.constant 0 : index
    %c0_17 = arith.constant 0 : index
    %15 = vector.load %arg5[%c0_16, %c0_17] : memref<512x1xf32, #tpu.memory_space<vmem>>, vector<512x1xf32>
    %16 = arith.addf %14, %15 : vector<512x1xf32>
    %17 = vector.broadcast %16 : vector<512x1xf32> to vector<512x64xf32>
    %18 = arith.mulf %17, %7 : vector<512x64xf32>
    %cst_18 = arith.constant dense<0xFF800000> : vector<512xf32>
    %19 = vector.multi_reduction <maximumf>, %18, %cst_18 [1] : vector<512x64xf32> to vector<512xf32>
    %20 = vector.shape_cast %19 : vector<512xf32> to vector<512x1xf32>
    %21 = vector.broadcast %20 : vector<512x1xf32> to vector<512x64xf32>
    %22 = arith.subf %18, %21 : vector<512x64xf32>
    %23 = math.exp %22 : vector<512x64xf32>
    %cst_19 = arith.constant dense<0.000000e+00> : vector<512xf32>
    %24 = vector.multi_reduction <add>, %23, %cst_19 [1] : vector<512x64xf32> to vector<512xf32>
    %25 = vector.shape_cast %24 : vector<512xf32> to vector<512x1xf32>
    %26 = tpu.reciprocal %25 : vector<512x1xf32> -> vector<512x1xf32>
    %27 = vector.broadcast %26 : vector<512x1xf32> to vector<512x64xf32>
    %28 = arith.mulf %23, %27 : vector<512x64xf32>
    %c0_20 = arith.constant 0 : index
    %c0_21 = arith.constant 0 : index
    %29 = vector.load %arg8[%c0_20, %c0_21] : memref<512x64xf32, #tpu.memory_space<vmem>>, vector<512x64xf32>
    tpu.vector_store %arg8[%c0_20, %c0_21], %28 {strides = array<i32>} : memref<512x64xf32, #tpu.memory_space<vmem>>, vector<512x64xf32>,
    return
  }
  func.func @transform_0(%arg0: i32) -> (i32, i32) {
    %c0_i32 = arith.constant 0 : i32
    %c0_i32_0 = arith.constant 0 : i32
    return %arg0, %c0_i32 : i32, i32
  }
  func.func @transform_1(%arg0: i32) -> (i32, i32) {
    %c0_i32 = arith.constant 0 : i32
    %c0_i32_0 = arith.constant 0 : i32
    return %arg0, %c0_i32 : i32, i32
  }
  func.func @transform_2(%arg0: i32) -> (i32, i32) {
    %c0_i32 = arith.constant 0 : i32
    %c0_i32_0 = arith.constant 0 : i32
    %c0_i32_1 = arith.constant 0 : i32
    return %c0_i32, %c0_i32_0 : i32, i32
  }
  func.func @transform_3(%arg0: i32) -> (i32, i32) {
    %c0_i32 = arith.constant 0 : i32
    %c0_i32_0 = arith.constant 0 : i32
    %c0_i32_1 = arith.constant 0 : i32
    return %c0_i32, %c0_i32_0 : i32, i32
  }
  func.func @transform_4(%arg0: i32) -> (i32, i32) {
    %c0_i32 = arith.constant 0 : i32
    %c0_i32_0 = arith.constant 0 : i32
    %c0_i32_1 = arith.constant 0 : i32
    return %c0_i32, %c0_i32_0 : i32, i32
  }
  func.func @transform_5(%arg0: i32) -> (i32, i32) {
    %c0_i32 = arith.constant 0 : i32
    %c0_i32_0 = arith.constant 0 : i32
    %c0_i32_1 = arith.constant 0 : i32
    return %c0_i32, %c0_i32_0 : i32, i32
  }
  func.func @transform_6(%arg0: i32) -> (i32, i32) {
    %c0_i32 = arith.constant 0 : i32
    %c0_i32_0 = arith.constant 0 : i32
    %c0_i32_1 = arith.constant 0 : i32
    return %c0_i32, %c0_i32_0 : i32, i32
  }
  func.func @transform_7(%arg0: i32) -> (i32, i32) {
    %c0_i32 = arith.constant 0 : i32
    %c0_i32_0 = arith.constant 0 : i32
    return %arg0, %c0_i32 : i32, i32
  }
}

</mosaic_0001>

<bundles_post_ra>
// kernel: tpu_custom_call.1
= control target key start
LH: loop header
LB: loop body
LE: loop exit
PB: predicated region body
PF: predicated region fallthrough
CT: control target
= control target key end

     0   :  { %s3897_s24 = smov 0   ;;  %s6105_s0 = inlined_call_operand.vmem [shape: f32[16,64], index: 0, kind: input, shape index: {}]   ;;  %s6106_s1 = inlined_call_operand.vmem [shape: f32[16,64], index: 1, kind: input, shape index: {}]   ;;  %s6107_s2 = inlined_call_operand.vmem [shape: f32[512,8], index: 2, kind: input, shape index: {}]   ;;  %s6108_s3 = inlined_call_operand.vmem [shape: f32[512,64], index: 3, kind: input, shape index: {}]   ;;  %s6109_s4 = inlined_call_operand.vmem [shape: f32[512,1], index: 4, kind: input, shape index: {}]   ;;  %s6110_s5 = inlined_call_operand.vmem [shape: f32[64,64], index: 5, kind: input, shape index: {}]   ;;  %s6111_s6 = inlined_call_operand.vmem [shape: f32[1,64], index: 6, kind: input, shape index: {}]   ;;  %s6112_s7 = inlined_call_operand.vmem [shape: f32[1024,64], index: 7, kind: output, shape index: {}]  }
   0x1 LB: > { %s3903_s25 = sadd.s32 4294967295, %s3852_s24   ;;  %p3084_p0 = scmp.ge.s32.totalorder %s3852_s24, 1  ;;  %s3852_s24 = sphi %s3897_s24, %s17_s24  }
   0x2   : > { %p245_p1 = scmp.lt.s32.totalorder %s3852_s24, 3 }
   0x4   : > { %p246_p2 = pnand %p3084_p0, %p245_p1 }
   0x6   : > { %249 = sbr.rel (%p246_p2) target bundleno = 1175 (0x497), region = 48 }
   0xb   : > { %v302_v0 = vld [vmem:[%s6110_s5 + $0x38] sm:$0xff]  ;;  %p280_p3 = scmp.lt.s32.totalorder %s3903_s25, 1  ;;  %v3854_v1 = vmov 0.0   ;;  %v301_v2 = vld [vmem:[%s6110_s5 + $0x30] sm:$0xff]  ;;  %vm3855_vm0 = vmmov 0   ;;  %v384_v3 = vld [vmem:[%s6107_s2] sm:$0xff] }
   0xc   : > { %3360 = vmatprep.subr.mxu0 %v3854_v1  ;;  %3376 = vmatprep.mubr.msk.f32.mxu0 %vm3855_vm0, %v3854_v1  ;;  %vm448_vm1 = vcmask 64512   ;;  %v300_v4 = vld [vmem:[%s6110_s5 + $0x28] sm:$0xff]  ;;  %v299_v5 = vld [vmem:[%s6110_s5 + $0x20] sm:$0xff]  ;;  %v298_v6 = vld [vmem:[%s6110_s5 + $0x18] sm:$0xff]  ;;  %vm310_vm2 = vcmask 523264   ;;  %s3087_s14 = sshll.u32 %s3903_s25, 6 }
   0xd   : > { %3361 = vmatpush3.msra.mxu0 %v302_v0  ;;  %3381 = vmatprep.mubr.msk.f32.mxu1 %vm448_vm1, %v384_v3  ;;  %s281_s11 = scalar_select %p280_p3, %s3903_s25, 1  ;;  %v297_v7 = vld [vmem:[%s6110_s5 + $0x10] sm:$0xff]  ;;  %v296_v8 = vld [vmem:[%s6110_s5 + $0x8] sm:$0xff]  ;;  %v295_v9 = vld [vmem:[%s6110_s5] sm:$0xff] }
   0xe   : > { %3362 = vmatprep.subr.mxu0 %v3854_v1  ;;  %v3952_v12 = vld [vmem:[%s6107_s2 + $0x8] sm:$0xff]  ;;  %v3957_v13 = vld [vmem:[%s6107_s2 + $0x10] sm:$0xff]  ;;  %v3966_v14 = vld [vmem:[%s6107_s2 + $0x18] sm:$0xff]  ;;  %p5808_p4 = scmp.lt.s32.totalorder %s3087_s14, 127 }
   0xf   : > { %3363 = vmatpush3.msra.mxu0 %v301_v2  ;;  %s3085_s16 = sshll.u32 %s281_s11, 3  ;;  %v3971_v15 = vld [vmem:[%s6107_s2 + $0x20] sm:$0xff]  ;;  %v3980_v16 = vld [vmem:[%s6107_s2 + $0x28] sm:$0xff]  ;;  %v3985_v17 = vld [vmem:[%s6107_s2 + $0x30] sm:$0xff] }
  0x10   : > { %3364 = vmatprep.subr.mxu0 %v3854_v1  ;;  %s287_s23 = scalar_lea.vmem %s6106_s1, %s3085_s16  ;;  %s283_s28 = scalar_lea.vmem %s6105_s0, %s3085_s16  ;;  %v3994_v18 = vld [vmem:[%s6107_s2 + $0x38] sm:$0xff]  ;;  %v3999_v19 = vld [vmem:[%s6107_s2 + $0x40] sm:$0xff]  ;;  %v4008_v20 = vld [vmem:[%s6107_s2 + $0x48] sm:$0xff] }
  0x11   : > { %3365 = vmatpush3.msra.mxu0 %v300_v4  ;;  %v294_v10 = vld [vmem:[%s287_s23] sm:$0xff]  ;;  %v4013_v21 = vld [vmem:[%s6107_s2 + $0x50] sm:$0xff]  ;;  %v4022_v22 = vld [vmem:[%s6107_s2 + $0x58] sm:$0xff]  ;;  %s6305_s14 = smov (!%p5808_p4, %s3087_s14), 127 }
  0x12   : > { %3366 = vmatprep.subr.mxu0 %v3854_v1  ;;  %v3943_v11 = vld [vmem:[%s283_s28] sm:$0xff]  ;;  %v4036_v24 = vld [vmem:[%s6107_s2 + $0x68] sm:$0xff]  ;;  %v4041_v25 = vld [vmem:[%s6107_s2 + $0x70] sm:$0xff]  ;;  %s3088_s15 = sshll.u32 %s6305_s14, 3 }
  0x13   : > { %3367 = vmatpush3.msra.mxu0 %v299_v5  ;;  %v4027_v23 = vld [vmem:[%s6107_s2 + $0x60] sm:$0xff]  ;;  %v4050_v26 = vld [vmem:[%s6107_s2 + $0x78] sm:$0xff]  ;;  %v4064_v28 = vld [vmem:[%s6107_s2 + $0x88] sm:$0xff]  ;;  %s5846_s18 = scalar_lea.vmem %s6112_s7, %s3088_s15 }
  0x14   : > { %3368 = vmatprep.subr.mxu0 %v3854_v1  ;;  %v4055_v27 = vld [vmem:[%s6107_s2 + $0x80] sm:$0xff]  ;;  %v4069_v29 = vld [vmem:[%s6107_s2 + $0x90] sm:$0xff]  ;;  %v4078_v30 = vld [vmem:[%s6107_s2 + $0x98] sm:$0xff] }
  0x15   : > { %3369 = vmatpush3.msra.mxu0 %v298_v6  ;;  %v4083_v31 = vld [vmem:[%s6107_s2 + $0xa0] sm:$0xff]  ;;  %v4092_v32 = vld [vmem:[%s6107_s2 + $0xa8] sm:$0xff]  ;;  %v4097_v33 = vld [vmem:[%s6107_s2 + $0xb0] sm:$0xff] }
  0x16   : > { %3370 = vmatprep.subr.mxu0 %v3854_v1  ;;  %v4106_v34 = vld [vmem:[%s6107_s2 + $0xb8] sm:$0xff]  ;;  %v4111_v35 = vld [vmem:[%s6107_s2 + $0xc0] sm:$0xff]  ;;  %v4120_v36 = vld [vmem:[%s6107_s2 + $0xc8] sm:$0xff] }
  0x17   : > { %3371 = vmatpush3.msra.mxu0 %v297_v7  ;;  %v4125_v37 = vld [vmem:[%s6107_s2 + $0xd0] sm:$0xff]  ;;  %v4134_v38 = vld [vmem:[%s6107_s2 + $0xd8] sm:$0xff]  ;;  %v4139_v39 = vld [vmem:[%s6107_s2 + $0xe0] sm:$0xff] }
  0x18   : > { %3372 = vmatprep.subr.mxu0 %v3854_v1  ;;  %v4148_v40 = vld [vmem:[%s6107_s2 + $0xe8] sm:$0xff]  ;;  %v4153_v41 = vld [vmem:[%s6107_s2 + $0xf0] sm:$0xff]  ;;  %v4162_v42 = vld [vmem:[%s6107_s2 + $0xf8] sm:$0xff] }
  0x19   : > { %3373 = vmatpush3.msra.mxu0 %v296_v8  ;;  %v4167_v43 = vld [vmem:[%s6107_s2 + $0x100] sm:$0xff]  ;;  %v4176_v44 = vld [vmem:[%s6107_s2 + $0x108] sm:$0xff]  ;;  %v4181_v45 = vld [vmem:[%s6107_s2 + $0x110] sm:$0xff] }
  0x1a   : > { %3374 = vmatprep.subr.mxu0 %v3854_v1  ;;  %v4190_v46 = vld [vmem:[%s6107_s2 + $0x118] sm:$0xff]  ;;  %v4195_v47 = vld [vmem:[%s6107_s2 + $0x120] sm:$0xff]  ;;  %v4204_v48 = vld [vmem:[%s6107_s2 + $0x128] sm:$0xff] }
  0x1b   : > { %3375 = vmatpush3.msra.mxu0 %v295_v9  ;;  %v4209_v49 = vld [vmem:[%s6107_s2 + $0x130] sm:$0xff]  ;;  %v4218_v50 = vld [vmem:[%s6107_s2 + $0x138] sm:$0xff]  ;;  %v4223_v51 = vld [vmem:[%s6107_s2 + $0x140] sm:$0xff] }
  0x1c   : > { %3377 = vmatmul.mubr.msk.f32.vlgmr.msra.gmra.mxu0 %vm310_vm2, %v294_v10  ;;  %3477 = vmatprep.subr.mxu0 %v3943_v11  ;;  %v4232_v52 = vld [vmem:[%s6107_s2 + $0x148] sm:$0xff]  ;;  %v4237_v53 = vld [vmem:[%s6107_s2 + $0x150] sm:$0xff]  ;;  %v4246_v54 = vld [vmem:[%s6107_s2 + $0x158] sm:$0xff] }
  0x1d   : > { %3478 = vmatpush3.msra.mxu0 %v3943_v11  ;;  %3479 = vmatprep.mubr.msk.f32.mxu0 %vm448_vm1, %v384_v3  ;;  %v4251_v55 = vld [vmem:[%s6107_s2 + $0x160] sm:$0xff]  ;;  %v4260_v56 = vld [vmem:[%s6107_s2 + $0x168] sm:$0xff]  ;;  %v4265_v57 = vld [vmem:[%s6107_s2 + $0x170] sm:$0xff] }
  0x1e   : > { %v4274_v58 = vld [vmem:[%s6107_s2 + $0x178] sm:$0xff]  ;;  %v4279_v59 = vld [vmem:[%s6107_s2 + $0x180] sm:$0xff]  ;;  %v4288_v60 = vld [vmem:[%s6107_s2 + $0x188] sm:$0xff] }
  0x1f   : > { %v4293_v61 = vld [vmem:[%s6107_s2 + $0x190] sm:$0xff]  ;;  %v4302_v62 = vld [vmem:[%s6107_s2 + $0x198] sm:$0xff]  ;;  %v4307_v63 = vld [vmem:[%s6107_s2 + $0x1a0] sm:$0xff] }
  0x20   : > { %3480 = vmatmul.mubr.msk.f32.vlgmr.msra.gmra.mxu0 %vm448_vm1, %v3952_v12  ;;  %v4316_v0 = vld [vmem:[%s6107_s2 + $0x1a8] sm:$0xff]  ;;  %v4321_v1 = vld [vmem:[%s6107_s2 + $0x1b0] sm:$0xff]  ;;  %v4330_v2 = vld [vmem:[%s6107_s2 + $0x1b8] sm:$0xff] }
  0x21   : > { %3482 = vmatprep.mubr.msk.f32.mxu0 %vm448_vm1, %v3957_v13  ;;  %6165 = vst [vmem:[#allocation2_spill] sm:$0xff] %v4330_v2  ;;  %v4335_v3 = vld [vmem:[%s6107_s2 + $0x1c0] sm:$0xff]  ;;  %v4344_v4 = vld [vmem:[%s6107_s2 + $0x1c8] sm:$0xff]  ;;  %v4349_v5 = vld [vmem:[%s6107_s2 + $0x1d0] sm:$0xff] }
  0x22   : > { %6166 = vst [vmem:[#allocation3_spill] sm:$0xff] %v4335_v3  ;;  %6167 = vst [vmem:[#allocation4_spill] sm:$0xff] %v4344_v4  ;;  %v4358_v6 = vld [vmem:[%s6107_s2 + $0x1d8] sm:$0xff]  ;;  %v3089_v7 = vld [vmem:[%s6111_s6] ss:$0 sm:$0xff] }
  0x23   : > { %6168 = vst [vmem:[#allocation5_spill] sm:$0xff] %v4349_v5  ;;  %6169 = vst [vmem:[#allocation6_spill] sm:$0xff] %v4358_v6 }
  0x24   : > { %3483 = vmatmul.mubr.msk.f32.gmra.mxu0 %vm448_vm1, %v3966_v14 }
  0x25   : > { %3485 = vmatprep.mubr.msk.f32.mxu0 %vm448_vm1, %v3971_v15 }
  0x28   : > { %3486 = vmatmul.mubr.msk.f32.gmra.mxu0 %vm448_vm1, %v3980_v16 }
  0x29   : > { %3488 = vmatprep.mubr.msk.f32.mxu0 %vm448_vm1, %v3985_v17 }
  0x2c   : > { %3489 = vmatmul.mubr.msk.f32.gmra.mxu0 %vm448_vm1, %v3994_v18 }
  0x2d   : > { %3491 = vmatprep.mubr.msk.f32.mxu0 %vm448_vm1, %v3999_v19 }
  0x30   : > { %3492 = vmatmul.mubr.msk.f32.gmra.mxu0 %vm448_vm1, %v4008_v20 }
  0x31   : > { %3494 = vmatprep.mubr.msk.f32.mxu0 %vm448_vm1, %v4013_v21 }
  0x34   : > { %3495 = vmatmul.mubr.msk.f32.gmra.mxu0 %vm448_vm1, %v4022_v22 }
  0x35   : > { %3497 = vmatprep.mubr.msk.f32.mxu0 %vm448_vm1, %v4027_v23 }
  0x38   : > { %3498 = vmatmul.mubr.msk.f32.gmra.mxu0 %vm448_vm1, %v4036_v24 }
  0x39   : > { %3500 = vmatprep.mubr.msk.f32.mxu0 %vm448_vm1, %v4041_v25 }
  0x3c   : > { %3501 = vmatmul.mubr.msk.f32.gmra.mxu0 %vm448_vm1, %v4050_v26 }
  0x3d   : > { %3503 = vmatprep.mubr.msk.f32.mxu0 %vm448_vm1, %v4055_v27 }
  0x40   : > { %3504 = vmatmul.mubr.msk.f32.gmra.mxu0 %vm448_vm1, %v4064_v28 }
  0x41   : > { %3506 = vmatprep.mubr.msk.f32.mxu0 %vm448_vm1, %v4069_v29 }
  0x44   : > { %3507 = vmatmul.mubr.msk.f32.gmra.mxu0 %vm448_vm1, %v4078_v30 }
  0x45   : > { %3509 = vmatprep.mubr.msk.f32.mxu0 %vm448_vm1, %v4083_v31 }
  0x48   : > { %3510 = vmatmul.mubr.msk.f32.gmra.mxu0 %vm448_vm1, %v4092_v32 }
  0x49   : > { %3512 = vmatprep.mubr.msk.f32.mxu0 %vm448_vm1, %v4097_v33 }
  0x4c   : > { %3513 = vmatmul.mubr.msk.f32.gmra.mxu0 %vm448_vm1, %v4106_v34 }
  0x4d   : > { %3515 = vmatprep.mubr.msk.f32.mxu0 %vm448_vm1, %v4111_v35 }
  0x50   : > { %3516 = vmatmul.mubr.msk.f32.gmra.mxu0 %vm448_vm1, %v4120_v36 }
  0x51   : > { %3518 = vmatprep.mubr.msk.f32.mxu0 %vm448_vm1, %v4125_v37 }
  0x54   : > { %3519 = vmatmul.mubr.msk.f32.gmra.mxu0 %vm448_vm1, %v4134_v38 }
  0x55   : > { %3521 = vmatprep.mubr.msk.f32.mxu0 %vm448_vm1, %v4139_v39 }
  0x58   : > { %3522 = vmatmul.mubr.msk.f32.gmra.mxu0 %vm448_vm1, %v4148_v40 }
  0x59   : > { %3524 = vmatprep.mubr.msk.f32.mxu0 %vm448_vm1, %v4153_v41 }
  0x5c   : > { %3525 = vmatmul.mubr.msk.f32.gmra.mxu0 %vm448_vm1, %v4162_v42 }
  0x5d   : > { %3527 = vmatprep.mubr.msk.f32.mxu0 %vm448_vm1, %v4167_v43 }
  0x60   : > { %3528 = vmatmul.mubr.msk.f32.gmra.mxu0 %vm448_vm1, %v4176_v44 }
  0x61   : > { %3530 = vmatprep.mubr.msk.f32.mxu0 %vm448_vm1, %v4181_v45 }
  0x64   : > { %3531 = vmatmul.mubr.msk.f32.gmra.mxu0 %vm448_vm1, %v4190_v46 }
  0x65   : > { %3533 = vmatprep.mubr.msk.f32.mxu0 %vm448_vm1, %v4195_v47 }
  0x68   : > { %3534 = vmatmul.mubr.msk.f32.gmra.mxu0 %vm448_vm1, %v4204_v48 }
  0x69   : > { %3536 = vmatprep.mubr.msk.f32.mxu0 %vm448_vm1, %v4209_v49 }
  0x6c   : > { %3537 = vmatmul.mubr.msk.f32.gmra.mxu0 %vm448_vm1, %v4218_v50 }
  0x6d   : > { %3539 = vmatprep.mubr.msk.f32.mxu0 %vm448_vm1, %v4223_v51 }
  0x70   : > { %3540 = vmatmul.mubr.msk.f32.gmra.mxu0 %vm448_vm1, %v4232_v52 }
  0x71   : > { %3542 = vmatprep.mubr.msk.f32.mxu0 %vm448_vm1, %v4237_v53 }
  0x74   : > { %3543 = vmatmul.mubr.msk.f32.gmra.mxu0 %vm448_vm1, %v4246_v54 }
  0x75   : > { %3545 = vmatprep.mubr.msk.f32.mxu0 %vm448_vm1, %v4251_v55 }
  0x78   : > { %3546 = vmatmul.mubr.msk.f32.gmra.mxu0 %vm448_vm1, %v4260_v56 }
  0x79   : > { %3548 = vmatprep.mubr.msk.f32.mxu0 %vm448_vm1, %v4265_v57 }
  0x7c   : > { %3549 = vmatmul.mubr.msk.f32.gmra.mxu0 %vm448_vm1, %v4274_v58 }
  0x7d   : > { %3551 = vmatprep.mubr.msk.f32.mxu0 %vm448_vm1, %v4279_v59 }
  0x80   : > { %3552 = vmatmul.mubr.msk.f32.gmra.mxu0 %vm448_vm1, %v4288_v60 }
  0x81   : > { %3554 = vmatprep.mubr.msk.f32.mxu0 %vm448_vm1, %v4293_v61 }
  0x84   : > { %3555 = vmatmul.mubr.msk.f32.gmra.mxu0 %vm448_vm1, %v4302_v62 }
  0x85   : > { %3557 = vmatprep.mubr.msk.f32.mxu0 %vm448_vm1, %v4307_v63 }
  0x88   : > { %3558 = vmatmul.mubr.msk.f32.gmra.mxu0 %vm448_vm1, %v4316_v0 }
  0x89   : > { %3560 = vmatprep.mubr.msk.f32.mxu0 %vm448_vm1, %v4321_v1 }
  0x8c   : > { %3561 = vmatmul.mubr.msk.f32.gmra.mxu0 %vm448_vm1, %v4330_v2 }
  0x8d   : > { %3563 = vmatprep.mubr.msk.f32.mxu0 %vm448_vm1, %v4335_v3  ;;  %v1412_v3 = vld [vmem:[%s6108_s3] sm:$0xff] }
  0x90   : > { %3564 = vmatmul.mubr.msk.f32.gmra.mxu0 %vm448_vm1, %v4344_v4  ;;  %v1413_v4 = vld [vmem:[%s6108_s3 + $0x8] sm:$0xff] }
  0x91   : > { %3566 = vmatprep.mubr.msk.f32.mxu0 %vm448_vm1, %v4349_v5 }
  0x94   : > { %3567 = vmatmul.mubr.msk.f32.gmra.mxu0 %vm448_vm1, %v4358_v6 }
  0xdc   : > { %v380_v8 = vpop.f32.mrf.mxu0 }
  0xdd   : > { %v381_v9 = vadd.f32 %v3089_v7, %v380_v8  ;;  %v1415_v7 = vld [vmem:[%s6108_s3 + $0x18] sm:$0xff] }
  0xde   : > { %v3378_v10 = vpop.f32.mrf.mxu0 }
  0xdf   : > { %3379 = vmatprep.subr.mxu1 %v381_v9 }
  0xe0   : > { %3380 = vmatpush3.msra.mxu1 %v381_v9  ;;  %v3481_v5 = vpop.f32.mrf.mxu0 }
  0xe1   : > { %v1477_v2 = vmul.f32 %v3481_v5, %v1413_v4  ;;  %3382 = vmatmul.mubr.msk.f32.vlgmr.msra.gmra.mxu1 %vm448_vm1, %v3952_v12  ;;  %3575 = vmatprep.subr.mxu1 %v3943_v11  ;;  %v1414_v12 = vld [vmem:[%s6108_s3 + $0x10] sm:$0xff] }
  0xe2   : > { %v1093_v6 = vpop.f32.mrf.mxu0  ;;  %3384 = vmatprep.mubr.msk.f32.mxu1 %vm448_vm1, %v3957_v13  ;;  %3576 = vmatpush3.msra.mxu1 %v3943_v11  ;;  %v1417_v13 = vld [vmem:[%s6108_s3 + $0x28] sm:$0xff] }
  0xe3   : > { %v1476_v8 = vmul.f32 %v1412_v3, %v1093_v6  ;;  %v1543_v9 = vsel %vm310_vm2, %v1477_v2, 0.0 }
  0xe4   : > { %1544 = vadd.xlane.f32.xlu0 %v1543_v9  ;;  %v3484_v4 = vpop.f32.mrf.mxu0 }
  0xe5   : > { %v1479_v5 = vmul.f32 %v3484_v4, %v1415_v7  ;;  %3385 = vmatmul.mubr.msk.f32.gmra.mxu1 %vm448_vm1, %v3966_v14  ;;  %v1540_v2 = vsel %vm310_vm2, %v1476_v8, 0.0  ;;  %v1416_v14 = vld [vmem:[%s6108_s3 + $0x20] sm:$0xff] }
  0xe6   : > { %v1103_v10 = vpop.f32.mrf.mxu0  ;;  %3387 = vmatprep.mubr.msk.f32.mxu1 %vm448_vm1, %v3971_v15  ;;  %v1419_v15 = vld [vmem:[%s6108_s3 + $0x38] sm:$0xff] }
  0xe7   : > { %v1478_v11 = vmul.f32 %v1414_v12, %v1103_v10  ;;  %v1549_v3 = vsel %vm310_vm2, %v1479_v5, 0.0  ;;  %v1418_v5 = vld [vmem:[%s6108_s3 + $0x30] sm:$0xff] }
  0xe8   : > { %1541 = vadd.xlane.f32.xlu0 %v1540_v2  ;;  %1550 = vadd.xlane.f32.xlu1 %v1549_v3  ;;  %v3487_v6 = vpop.f32.mrf.mxu0  ;;  %v3856_v3 = vmov 0  }
  0xe9   : > { %v1481_v7 = vmul.f32 %v3487_v6, %v1417_v13  ;;  %3388 = vmatmul.mubr.msk.f32.gmra.mxu1 %vm448_vm1, %v3980_v16  ;;  %v1546_v8 = vsel %vm310_vm2, %v1478_v11, 0.0  ;;  %3588 = vset.pattern.permute.xlu1 %v3856_v3 }
  0xea   : > { %v1113_v9 = vpop.f32.mrf.mxu0  ;;  %3390 = vmatprep.mubr.msk.f32.mxu1 %vm448_vm1, %v3985_v17  ;;  %v1421_v17 = vld [vmem:[%s6108_s3 + $0x48] sm:$0xff]  ;;  %3589 = vset.pattern.permute.xlu0 %v3856_v3 }
  0xeb   : > { %v1480_v4 = vmul.f32 %v1416_v14, %v1113_v9  ;;  %v1555_v10 = vsel %vm310_vm2, %v1481_v7, 0.0  ;;  %v1420_v14 = vld [vmem:[%s6108_s3 + $0x40] sm:$0xff] }
  0xec   : > { %1547 = vadd.xlane.f32.xlu1 %v1546_v8  ;;  %v3490_v12 = vpop.f32.mrf.mxu0 }
  0xed   : > { %v1483_v16 = vmul.f32 %v3490_v12, %v1419_v15  ;;  %v1552_v13 = vsel %vm310_vm2, %v1480_v4, 0.0  ;;  %3391 = vmatmul.mubr.msk.f32.gmra.mxu1 %vm448_vm1, %v3994_v18  ;;  %v1423_v15 = vld [vmem:[%s6108_s3 + $0x58] sm:$0xff]  ;;  %v1422_v12 = vld [vmem:[%s6108_s3 + $0x50] sm:$0xff] }
  0xee   : > { %1553 = vadd.xlane.f32.xlu0 %v1552_v13  ;;  %v1123_v2 = vpop.f32.mrf.mxu0  ;;  %3393 = vmatprep.mubr.msk.f32.mxu1 %vm448_vm1, %v3999_v19 }
  0xef   : > { %v1482_v11 = vmul.f32 %v1418_v5, %v1123_v2  ;;  %v1561_v18 = vsel %vm310_vm2, %v1483_v16, 0.0 }
  0xf0   : > { %1556 = vadd.xlane.f32.xlu1 %v1555_v10  ;;  %v3493_v6 = vpop.f32.mrf.mxu0 }
  0xf1   : > { %v1485_v7 = vmul.f32 %v3493_v6, %v1421_v17  ;;  %v1558_v9 = vsel %vm310_vm2, %v1482_v11, 0.0  ;;  %3394 = vmatmul.mubr.msk.f32.gmra.mxu1 %vm448_vm1, %v4008_v20  ;;  %v1424_v17 = vld [vmem:[%s6108_s3 + $0x60] sm:$0xff] }
  0xf2   : > { %1559 = vadd.xlane.f32.xlu0 %v1558_v9  ;;  %v1133_v19 = vpop.f32.mrf.mxu0  ;;  %3396 = vmatprep.mubr.msk.f32.mxu1 %vm448_vm1, %v4013_v21  ;;  %v1425_v21 = vld [vmem:[%s6108_s3 + $0x68] sm:$0xff] }
  0xf3   : > { %v1484_v8 = vmul.f32 %v1420_v14, %v1133_v19  ;;  %v1567_v5 = vsel %vm310_vm2, %v1485_v7, 0.0  ;;  %v1426_v7 = vld [vmem:[%s6108_s3 + $0x70] sm:$0xff] }
  0xf4   : > { %1562 = vadd.xlane.f32.xlu1 %v1561_v18  ;;  %v3496_v4 = vpop.f32.mrf.mxu0 }
  0xf5   : > { %v1487_v10 = vmul.f32 %v3496_v4, %v1423_v15  ;;  %v1564_v20 = vsel %vm310_vm2, %v1484_v8, 0.0  ;;  %3397 = vmatmul.mubr.msk.f32.gmra.mxu1 %vm448_vm1, %v4022_v22 }
  0xf6   : > { %1565 = vadd.xlane.f32.xlu0 %v1564_v20  ;;  %v1143_v16 = vpop.f32.mrf.mxu0  ;;  %3399 = vmatprep.mubr.msk.f32.mxu1 %vm448_vm1, %v4027_v23  ;;  %v1427_v23 = vld [vmem:[%s6108_s3 + $0x78] sm:$0xff] }
  0xf7   : > { %v1486_v13 = vmul.f32 %v1422_v12, %v1143_v16  ;;  %v1573_v11 = vsel %vm310_vm2, %v1487_v10, 0.0  ;;  %v1428_v12 = vld [vmem:[%s6108_s3 + $0x80] sm:$0xff] }
  0xf8   : > { %1568 = vadd.xlane.f32.xlu1 %v1567_v5  ;;  %v3499_v2 = vpop.f32.mrf.mxu0 }
  0xf9   : > { %v1489_v3 = vmul.f32 %v3499_v2, %v1425_v21  ;;  %v1570_v22 = vsel %vm310_vm2, %v1486_v13, 0.0  ;;  %3400 = vmatmul.mubr.msk.f32.gmra.mxu1 %vm448_vm1, %v4036_v24  ;;  %v1430_v13 = vld [vmem:[%s6108_s3 + $0x90] sm:$0xff] }
  0xfa   : > { %1571 = vadd.xlane.f32.xlu0 %v1570_v22  ;;  %v1153_v6 = vpop.f32.mrf.mxu0  ;;  %3402 = vmatprep.mubr.msk.f32.mxu1 %vm448_vm1, %v4041_v25  ;;  %v1429_v25 = vld [vmem:[%s6108_s3 + $0x88] sm:$0xff] }
  0xfb   : > { %v1488_v14 = vmul.f32 %v1424_v17, %v1153_v6  ;;  %v1579_v9 = vsel %vm310_vm2, %v1489_v3, 0.0  ;;  %v1432_v6 = vld [vmem:[%s6108_s3 + $0xa0] sm:$0xff] }
  0xfc   : > { %1574 = vadd.xlane.f32.xlu1 %v1573_v11  ;;  %v3502_v18 = vpop.f32.mrf.mxu0 }
  0xfd   : > { %v1491_v19 = vmul.f32 %v3502_v18, %v1427_v23  ;;  %v1576_v24 = vsel %vm310_vm2, %v1488_v14, 0.0  ;;  %3403 = vmatmul.mubr.msk.f32.gmra.mxu1 %vm448_vm1, %v4050_v26 }
  0xfe   : > { %1577 = vadd.xlane.f32.xlu0 %v1576_v24  ;;  %v1163_v15 = vpop.f32.mrf.mxu0  ;;  %3405 = vmatprep.mubr.msk.f32.mxu1 %vm448_vm1, %v4055_v27  ;;  %v1431_v27 = vld [vmem:[%s6108_s3 + $0x98] sm:$0xff] }
  0xff   : > { %v1490_v8 = vmul.f32 %v1426_v7, %v1163_v15  ;;  %v1585_v5 = vsel %vm310_vm2, %v1491_v19, 0.0  ;;  %v1434_v19 = vld [vmem:[%s6108_s3 + $0xb0] sm:$0xff] }
 0x100   : > { %1580 = vadd.xlane.f32.xlu1 %v1579_v9  ;;  %v3505_v4 = vpop.f32.mrf.mxu0 }
 0x101   : > { %v1493_v10 = vmul.f32 %v3505_v4, %v1429_v25  ;;  %v1582_v26 = vsel %vm310_vm2, %v1490_v8, 0.0  ;;  %3406 = vmatmul.mubr.msk.f32.gmra.mxu1 %vm448_vm1, %v4064_v28 }
 0x102   : > { %1583 = vadd.xlane.f32.xlu0 %v1582_v26  ;;  %v1173_v20 = vpop.f32.mrf.mxu0  ;;  %3408 = vmatprep.mubr.msk.f32.mxu1 %vm448_vm1, %v4069_v29  ;;  %v1433_v29 = vld [vmem:[%s6108_s3 + $0xa8] sm:$0xff] }
 0x103   : > { %v1492_v16 = vmul.f32 %v1428_v12, %v1173_v20  ;;  %v1591_v2 = vsel %vm310_vm2, %v1493_v10, 0.0  ;;  %v1436_v12 = vld [vmem:[%s6108_s3 + $0xc0] sm:$0xff] }
 0x104   : > { %1586 = vadd.xlane.f32.xlu1 %v1585_v5  ;;  %v3508_v21 = vpop.f32.mrf.mxu0 }
 0x105   : > { %v1495_v17 = vmul.f32 %v3508_v21, %v1431_v27  ;;  %v1588_v28 = vsel %vm310_vm2, %v1492_v16, 0.0  ;;  %3409 = vmatmul.mubr.msk.f32.gmra.mxu1 %vm448_vm1, %v4078_v30  ;;  %v1438_v16 = vld [vmem:[%s6108_s3 + $0xd0] sm:$0xff] }
 0x106   : > { %1589 = vadd.xlane.f32.xlu0 %v1588_v28  ;;  %v1183_v11 = vpop.f32.mrf.mxu0  ;;  %3411 = vmatprep.mubr.msk.f32.mxu1 %vm448_vm1, %v4083_v31  ;;  %v1435_v31 = vld [vmem:[%s6108_s3 + $0xb8] sm:$0xff] }
 0x107   : > { %v1494_v3 = vmul.f32 %v1430_v13, %v1183_v11  ;;  %v1597_v23 = vsel %vm310_vm2, %v1495_v17, 0.0  ;;  %v1440_v11 = vld [vmem:[%s6108_s3 + $0xe0] sm:$0xff] }
 0x108   : > { %1592 = vadd.xlane.f32.xlu1 %v1591_v2  ;;  %v3511_v22 = vpop.f32.mrf.mxu0 }
 0x109   : > { %v1497_v14 = vmul.f32 %v3511_v22, %v1433_v29  ;;  %v1594_v30 = vsel %vm310_vm2, %v1494_v3, 0.0  ;;  %3412 = vmatmul.mubr.msk.f32.gmra.mxu1 %vm448_vm1, %v4092_v32 }
 0x10a   : > { %1595 = vadd.xlane.f32.xlu0 %v1594_v30  ;;  %v1193_v18 = vpop.f32.mrf.mxu0  ;;  %3414 = vmatprep.mubr.msk.f32.mxu1 %vm448_vm1, %v4097_v33  ;;  %v1437_v33 = vld [vmem:[%s6108_s3 + $0xc8] sm:$0xff] }
 0x10b   : > { %v1496_v7 = vmul.f32 %v1432_v6, %v1193_v18  ;;  %v1603_v24 = vsel %vm310_vm2, %v1497_v14, 0.0  ;;  %v1442_v14 = vld [vmem:[%s6108_s3 + $0xf0] sm:$0xff] }
 0x10c   : > { %1598 = vadd.xlane.f32.xlu1 %v1597_v23  ;;  %v3514_v9 = vpop.f32.mrf.mxu0 }
 0x10d   : > { %v1499_v15 = vmul.f32 %v3514_v9, %v1435_v31  ;;  %v1600_v32 = vsel %vm310_vm2, %v1496_v7, 0.0  ;;  %3415 = vmatmul.mubr.msk.f32.gmra.mxu1 %vm448_vm1, %v4106_v34 }
 0x10e   : > { %1601 = vadd.xlane.f32.xlu0 %v1600_v32  ;;  %v1203_v25 = vpop.f32.mrf.mxu0  ;;  %3417 = vmatprep.mubr.msk.f32.mxu1 %vm448_vm1, %v4111_v35  ;;  %v1439_v35 = vld [vmem:[%s6108_s3 + $0xd8] sm:$0xff] }
 0x10f   : > { %v1498_v8 = vmul.f32 %v1434_v19, %v1203_v25  ;;  %v1609_v5 = vsel %vm310_vm2, %v1499_v15, 0.0  ;;  %v1444_v19 = vld [vmem:[%s6108_s3 + $0x100] sm:$0xff] }
 0x110   : > { %1604 = vadd.xlane.f32.xlu1 %v1603_v24  ;;  %v3517_v4 = vpop.f32.mrf.mxu0 }
 0x111   : > { %v1501_v10 = vmul.f32 %v3517_v4, %v1437_v33  ;;  %v1606_v34 = vsel %vm310_vm2, %v1498_v8, 0.0  ;;  %3418 = vmatmul.mubr.msk.f32.gmra.mxu1 %vm448_vm1, %v4120_v36  ;;  %v1446_v8 = vld [vmem:[%s6108_s3 + $0x110] sm:$0xff] }
 0x112   : > { %1607 = vadd.xlane.f32.xlu0 %v1606_v34  ;;  %v1213_v26 = vpop.f32.mrf.mxu0  ;;  %3420 = vmatprep.mubr.msk.f32.mxu1 %vm448_vm1, %v4125_v37  ;;  %v1441_v37 = vld [vmem:[%s6108_s3 + $0xe8] sm:$0xff] }
 0x113   : > { %v1500_v20 = vmul.f32 %v1436_v12, %v1213_v26  ;;  %v1615_v21 = vsel %vm310_vm2, %v1501_v10, 0.0  ;;  %v1448_v26 = vld [vmem:[%s6108_s3 + $0x120] sm:$0xff] }
 0x114   : > { %1610 = vadd.xlane.f32.xlu1 %v1609_v5  ;;  %v3520_v27 = vpop.f32.mrf.mxu0 }
 0x115   : > { %v1503_v13 = vmul.f32 %v3520_v27, %v1439_v35  ;;  %v1612_v36 = vsel %vm310_vm2, %v1500_v20, 0.0  ;;  %3421 = vmatmul.mubr.msk.f32.gmra.mxu1 %vm448_vm1, %v4134_v38 }
 0x116   : > { %1613 = vadd.xlane.f32.xlu0 %v1612_v36  ;;  %v1223_v2 = vpop.f32.mrf.mxu0  ;;  %3423 = vmatprep.mubr.msk.f32.mxu1 %vm448_vm1, %v4139_v39  ;;  %v1443_v39 = vld [vmem:[%s6108_s3 + $0xf8] sm:$0xff] }
 0x117   : > { %v1502_v17 = vmul.f32 %v1438_v16, %v1223_v2  ;;  %v1621_v29 = vsel %vm310_vm2, %v1503_v13, 0.0  ;;  %v1450_v13 = vld [vmem:[%s6108_s3 + $0x130] sm:$0xff] }
 0x118   : > { %1616 = vadd.xlane.f32.xlu1 %v1615_v21  ;;  %v3523_v28 = vpop.f32.mrf.mxu0 }
 0x119   : > { %v1505_v3 = vmul.f32 %v3523_v28, %v1441_v37  ;;  %v1618_v38 = vsel %vm310_vm2, %v1502_v17, 0.0  ;;  %3424 = vmatmul.mubr.msk.f32.gmra.mxu1 %vm448_vm1, %v4148_v40 }
 0x11a   : > { %1619 = vadd.xlane.f32.xlu0 %v1618_v38  ;;  %v1233_v22 = vpop.f32.mrf.mxu0  ;;  %3426 = vmatprep.mubr.msk.f32.mxu1 %vm448_vm1, %v4153_v41  ;;  %v1445_v41 = vld [vmem:[%s6108_s3 + $0x108] sm:$0xff] }
 0x11b   : > { %v1504_v6 = vmul.f32 %v1440_v11, %v1233_v22  ;;  %v1627_v30 = vsel %vm310_vm2, %v1505_v3, 0.0  ;;  %v1452_v11 = vld [vmem:[%s6108_s3 + $0x140] sm:$0xff] }
 0x11c   : > { %1622 = vadd.xlane.f32.xlu1 %v1621_v29  ;;  %v3526_v23 = vpop.f32.mrf.mxu0 }
 0x11d   : > { %v1507_v18 = vmul.f32 %v3526_v23, %v1443_v39  ;;  %v1624_v40 = vsel %vm310_vm2, %v1504_v6, 0.0  ;;  %3427 = vmatmul.mubr.msk.f32.gmra.mxu1 %vm448_vm1, %v4162_v42  ;;  %v1454_v6 = vld [vmem:[%s6108_s3 + $0x150] sm:$0xff] }
 0x11e   : > { %1625 = vadd.xlane.f32.xlu0 %v1624_v40  ;;  %v1243_v31 = vpop.f32.mrf.mxu0  ;;  %3429 = vmatprep.mubr.msk.f32.mxu1 %vm448_vm1, %v4167_v43  ;;  %v1447_v43 = vld [vmem:[%s6108_s3 + $0x118] sm:$0xff] }
 0x11f   : > { %v1506_v7 = vmul.f32 %v1442_v14, %v1243_v31  ;;  %v1633_v24 = vsel %vm310_vm2, %v1507_v18, 0.0  ;;  %v1456_v31 = vld [vmem:[%s6108_s3 + $0x160] sm:$0xff] }
 0x120   : > { %1628 = vadd.xlane.f32.xlu1 %v1627_v30  ;;  %v3529_v9 = vpop.f32.mrf.mxu0 }
 0x121   : > { %v1509_v15 = vmul.f32 %v3529_v9, %v1445_v41  ;;  %v1630_v42 = vsel %vm310_vm2, %v1506_v7, 0.0  ;;  %3430 = vmatmul.mubr.msk.f32.gmra.mxu1 %vm448_vm1, %v4176_v44 }
 0x122   : > { %1631 = vadd.xlane.f32.xlu0 %v1630_v42  ;;  %v1253_v32 = vpop.f32.mrf.mxu0  ;;  %3432 = vmatprep.mubr.msk.f32.mxu1 %vm448_vm1, %v4181_v45  ;;  %v1449_v45 = vld [vmem:[%s6108_s3 + $0x128] sm:$0xff] }
 0x123   : > { %v1508_v25 = vmul.f32 %v1444_v19, %v1253_v32  ;;  %v1639_v4 = vsel %vm310_vm2, %v1509_v15, 0.0  ;;  %v1458_v15 = vld [vmem:[%s6108_s3 + $0x170] sm:$0xff] }
 0x124   : > { %1634 = vadd.xlane.f32.xlu1 %v1633_v24  ;;  %v3532_v33 = vpop.f32.mrf.mxu0 }
 0x125   : > { %v1511_v12 = vmul.f32 %v3532_v33, %v1447_v43  ;;  %v1636_v44 = vsel %vm310_vm2, %v1508_v25, 0.0  ;;  %3433 = vmatmul.mubr.msk.f32.gmra.mxu1 %vm448_vm1, %v4190_v46 }
 0x126   : > { %1637 = vadd.xlane.f32.xlu0 %v1636_v44  ;;  %v1263_v5 = vpop.f32.mrf.mxu0  ;;  %3435 = vmatprep.mubr.msk.f32.mxu1 %vm448_vm1, %v4195_v47  ;;  %v1451_v47 = vld [vmem:[%s6108_s3 + $0x138] sm:$0xff] }
 0x127   : > { %v1510_v10 = vmul.f32 %v1446_v8, %v1263_v5  ;;  %v1645_v35 = vsel %vm310_vm2, %v1511_v12, 0.0  ;;  %v1460_v8 = vld [vmem:[%s6108_s3 + $0x180] sm:$0xff] }
 0x128   : > { %1640 = vadd.xlane.f32.xlu1 %v1639_v4  ;;  %v3535_v34 = vpop.f32.mrf.mxu0 }
 0x129   : > { %v1513_v20 = vmul.f32 %v3535_v34, %v1449_v45  ;;  %v1642_v46 = vsel %vm310_vm2, %v1510_v10, 0.0  ;;  %3436 = vmatmul.mubr.msk.f32.gmra.mxu1 %vm448_vm1, %v4204_v48  ;;  %v1462_v10 = vld [vmem:[%s6108_s3 + $0x190] sm:$0xff] }
 0x12a   : > { %1643 = vadd.xlane.f32.xlu0 %v1642_v46  ;;  %v1273_v27 = vpop.f32.mrf.mxu0  ;;  %3438 = vmatprep.mubr.msk.f32.mxu1 %vm448_vm1, %v4209_v49  ;;  %v1453_v49 = vld [vmem:[%s6108_s3 + $0x148] sm:$0xff] }
 0x12b   : > { %v1512_v16 = vmul.f32 %v1448_v26, %v1273_v27  ;;  %v1651_v36 = vsel %vm310_vm2, %v1513_v20, 0.0  ;;  %v1464_v27 = vld [vmem:[%s6108_s3 + $0x1a0] sm:$0xff] }
 0x12c   : > { %1646 = vadd.xlane.f32.xlu1 %v1645_v35  ;;  %v3538_v21 = vpop.f32.mrf.mxu0 }
 0x12d   : > { %v1515_v2 = vmul.f32 %v3538_v21, %v1451_v47  ;;  %v1648_v48 = vsel %vm310_vm2, %v1512_v16, 0.0  ;;  %3439 = vmatmul.mubr.msk.f32.gmra.mxu1 %vm448_vm1, %v4218_v50 }
 0x12e   : > { %1649 = vadd.xlane.f32.xlu0 %v1648_v48  ;;  %v1283_v37 = vpop.f32.mrf.mxu0  ;;  %3441 = vmatprep.mubr.msk.f32.mxu1 %vm448_vm1, %v4223_v51  ;;  %v1455_v51 = vld [vmem:[%s6108_s3 + $0x158] sm:$0xff] }
 0x12f   : > { %v1514_v17 = vmul.f32 %v1450_v13, %v1283_v37  ;;  %v1657_v29 = vsel %vm310_vm2, %v1515_v2, 0.0  ;;  %v1466_v2 = vld [vmem:[%s6108_s3 + $0x1b0] sm:$0xff] }
 0x130   : > { %1652 = vadd.xlane.f32.xlu1 %v1651_v36  ;;  %v3541_v28 = vpop.f32.mrf.mxu0 }
 0x131   : > { %v1517_v3 = vmul.f32 %v3541_v28, %v1453_v49  ;;  %v1654_v50 = vsel %vm310_vm2, %v1514_v17, 0.0  ;;  %3442 = vmatmul.mubr.msk.f32.gmra.mxu1 %vm448_vm1, %v4232_v52  ;;  %v6170_v49 = vld [vmem:[#allocation2_spill] sm:$0xff]  ;;  %v6171_v28 = vld [vmem:[#allocation3_spill] sm:$0xff] }
 0x132   : > { %1655 = vadd.xlane.f32.xlu0 %v1654_v50  ;;  %v1293_v38 = vpop.f32.mrf.mxu0  ;;  %3444 = vmatprep.mubr.msk.f32.mxu1 %vm448_vm1, %v4237_v53  ;;  %v1457_v53 = vld [vmem:[%s6108_s3 + $0x168] sm:$0xff] }
 0x133   : > { %v1516_v22 = vmul.f32 %v1452_v11, %v1293_v38  ;;  %v1663_v23 = vsel %vm310_vm2, %v1517_v3, 0.0  ;;  %v1468_v3 = vld [vmem:[%s6108_s3 + $0x1c0] sm:$0xff] }
 0x134   : > { %1658 = vadd.xlane.f32.xlu1 %v1657_v29  ;;  %v3544_v39 = vpop.f32.mrf.mxu0 }
 0x135   : > { %v1519_v14 = vmul.f32 %v3544_v39, %v1455_v51  ;;  %v1660_v52 = vsel %vm310_vm2, %v1516_v22, 0.0  ;;  %3445 = vmatmul.mubr.msk.f32.gmra.mxu1 %vm448_vm1, %v4246_v54  ;;  %v6172_v22 = vld [vmem:[#allocation4_spill] sm:$0xff] }
 0x136   : > { %1661 = vadd.xlane.f32.xlu0 %v1660_v52  ;;  %v1303_v30 = vpop.f32.mrf.mxu0  ;;  %3447 = vmatprep.mubr.msk.f32.mxu1 %vm448_vm1, %v4251_v55  ;;  %v1459_v55 = vld [vmem:[%s6108_s3 + $0x178] sm:$0xff]  ;;  %v444_v52 = vld [vmem:[%s6107_s2 + $0x1e0] sm:$0xff] }
 0x137   : > { %v1518_v18 = vmul.f32 %v1454_v6, %v1303_v30  ;;  %v1669_v41 = vsel %vm310_vm2, %v1519_v14, 0.0  ;;  %v1471_v6 = vld [vmem:[%s6108_s3 + $0x1d8] sm:$0xff] }
 0x138   : > { %1664 = vadd.xlane.f32.xlu1 %v1663_v23  ;;  %v3547_v40 = vpop.f32.mrf.mxu0  ;;  %v6173_v23 = vld [vmem:[#allocation5_spill] sm:$0xff] }
 0x139   : > { %v1521_v7 = vmul.f32 %v3547_v40, %v1457_v53  ;;  %v1666_v54 = vsel %vm310_vm2, %v1518_v18, 0.0  ;;  %3448 = vmatmul.mubr.msk.f32.gmra.mxu1 %vm448_vm1, %v4260_v56  ;;  %v1470_v53 = vld [vmem:[%s6108_s3 + $0x1d0] sm:$0xff] }
 0x13a   : > { %1667 = vadd.xlane.f32.xlu0 %v1666_v54  ;;  %v1313_v9 = vpop.f32.mrf.mxu0  ;;  %3450 = vmatprep.mubr.msk.f32.mxu1 %vm448_vm1, %v4265_v57  ;;  %v1461_v57 = vld [vmem:[%s6108_s3 + $0x188] sm:$0xff] }
 0x13b   : > { %v1520_v19 = vmul.f32 %v1456_v31, %v1313_v9  ;;  %v1675_v42 = vsel %vm310_vm2, %v1521_v7, 0.0  ;;  %v445_v54 = vld [vmem:[%s6107_s2 + $0x1e8] sm:$0xff] }
 0x13c   : > { %1670 = vadd.xlane.f32.xlu1 %v1669_v41  ;;  %v3550_v24 = vpop.f32.mrf.mxu0  ;;  %v6174_v41 = vld [vmem:[#allocation6_spill] sm:$0xff] }
 0x13d   : > { %v1523_v32 = vmul.f32 %v3550_v24, %v1459_v55  ;;  %v1672_v56 = vsel %vm310_vm2, %v1520_v19, 0.0  ;;  %3451 = vmatmul.mubr.msk.f32.gmra.mxu1 %vm448_vm1, %v4274_v58  ;;  %v446_v55 = vld [vmem:[%s6107_s2 + $0x1f0] sm:$0xff] }
 0x13e   : > { %1673 = vadd.xlane.f32.xlu0 %v1672_v56  ;;  %v1323_v43 = vpop.f32.mrf.mxu0  ;;  %3453 = vmatprep.mubr.msk.f32.mxu1 %vm448_vm1, %v4279_v59  ;;  %v1463_v59 = vld [vmem:[%s6108_s3 + $0x198] sm:$0xff] }
 0x13f   : > { %v1522_v25 = vmul.f32 %v1458_v15, %v1323_v43  ;;  %v1681_v4 = vsel %vm310_vm2, %v1523_v32, 0.0  ;;  %v447_v15 = vld [vmem:[%s6107_s2 + $0x1f8] sm:$0xff]  ;;  %v1732_v43 = vld [vmem:[%s6109_s4] sm:$0xff] }
 0x140   : > { %1676 = vadd.xlane.f32.xlu1 %v1675_v42  ;;  %v3553_v33 = vpop.f32.mrf.mxu0  ;;  %v1733_v42 = vld [vmem:[%s6109_s4 + $0x8] sm:$0xff] }
 0x141   : > { %v1525_v12 = vmul.f32 %v3553_v33, %v1461_v57  ;;  %v1678_v58 = vsel %vm310_vm2, %v1522_v25, 0.0  ;;  %3454 = vmatmul.mubr.msk.f32.gmra.mxu1 %vm448_vm1, %v4288_v60  ;;  %v1735_v57 = vld [vmem:[%s6109_s4 + $0x18] sm:$0xff] }
 0x142   : > { %1679 = vadd.xlane.f32.xlu0 %v1678_v58  ;;  %v1333_v44 = vpop.f32.mrf.mxu0  ;;  %3456 = vmatprep.mubr.msk.f32.mxu1 %vm448_vm1, %v4293_v61  ;;  %v1465_v61 = vld [vmem:[%s6108_s3 + $0x1a8] sm:$0xff] }
 0x143   : > { %v1524_v5 = vmul.f32 %v1460_v8, %v1333_v44  ;;  %v1687_v34 = vsel %vm310_vm2, %v1525_v12, 0.0  ;;  %v1734_v12 = vld [vmem:[%s6109_s4 + $0x10] sm:$0xff] }
 0x144   : > { %1682 = vadd.xlane.f32.xlu1 %v1681_v4  ;;  %v3556_v45 = vpop.f32.mrf.mxu0 }
 0x145   : > { %v1527_v26 = vmul.f32 %v3556_v45, %v1463_v59  ;;  %v1684_v60 = vsel %vm310_vm2, %v1524_v5, 0.0  ;;  %3457 = vmatmul.mubr.msk.f32.gmra.mxu1 %vm448_vm1, %v4302_v62  ;;  %v1737_v59 = vld [vmem:[%s6109_s4 + $0x28] sm:$0xff] }
 0x146   : > { %1685 = vadd.xlane.f32.xlu0 %v1684_v60  ;;  %v1343_v35 = vpop.f32.mrf.mxu0  ;;  %3459 = vmatprep.mubr.msk.f32.mxu1 %vm448_vm1, %v4307_v63  ;;  %v1467_v63 = vld [vmem:[%s6108_s3 + $0x1b8] sm:$0xff] }
 0x147   : > { %v1526_v20 = vmul.f32 %v1462_v10, %v1343_v35  ;;  %v1693_v47 = vsel %vm310_vm2, %v1527_v26, 0.0  ;;  %v1739_v60 = vld [vmem:[%s6109_s4 + $0x38] sm:$0xff] }
 0x148   : > { %1688 = vadd.xlane.f32.xlu1 %v1687_v34  ;;  %v3559_v46 = vpop.f32.mrf.mxu0  ;;  %v1736_v34 = vld [vmem:[%s6109_s4 + $0x20] sm:$0xff] }
 0x149   : > { %v1529_v16 = vmul.f32 %v3559_v46, %v1465_v61  ;;  %v1690_v62 = vsel %vm310_vm2, %v1526_v20, 0.0  ;;  %3460 = vmatmul.mubr.msk.f32.gmra.mxu1 %vm448_vm1, %v4316_v0  ;;  %v1741_v20 = vld [vmem:[%s6109_s4 + $0x48] sm:$0xff] }
 0x14a   : > { %1691 = vadd.xlane.f32.xlu0 %v1690_v62  ;;  %v1353_v21 = vpop.f32.mrf.mxu0  ;;  %3462 = vmatprep.mubr.msk.f32.mxu1 %vm448_vm1, %v4321_v1  ;;  %v1469_v1 = vld [vmem:[%s6108_s3 + $0x1c8] sm:$0xff]  ;;  %v1738_v62 = vld [vmem:[%s6109_s4 + $0x30] sm:$0xff] }
 0x14b   : > { %v1528_v13 = vmul.f32 %v1464_v27, %v1353_v21  ;;  %v1699_v48 = vsel %vm310_vm2, %v1529_v16, 0.0  ;;  %v1743_v21 = vld [vmem:[%s6109_s4 + $0x58] sm:$0xff] }
 0x14c   : > { %1694 = vadd.xlane.f32.xlu1 %v1693_v47  ;;  %v3562_v36 = vpop.f32.mrf.mxu0 }
 0x14d   : > { %v1531_v37 = vmul.f32 %v3562_v36, %v1467_v63  ;;  %v1696_v0 = vsel %vm310_vm2, %v1528_v13, 0.0  ;;  %3463 = vmatmul.mubr.msk.f32.gmra.mxu1 %vm448_vm1, %v6170_v49 }
 0x14e   : > { %1697 = vadd.xlane.f32.xlu0 %v1696_v0  ;;  %v1363_v17 = vpop.f32.mrf.mxu0  ;;  %3465 = vmatprep.mubr.msk.f32.mxu1 %vm448_vm1, %v6171_v28  ;;  %v1742_v28 = vld [vmem:[%s6109_s4 + $0x50] sm:$0xff] }
 0x14f   : > { %v1530_v11 = vmul.f32 %v1466_v2, %v1363_v17  ;;  %v1705_v50 = vsel %vm310_vm2, %v1531_v37, 0.0  ;;  %v1745_v37 = vld [vmem:[%s6109_s4 + $0x68] sm:$0xff] }
 0x150   : > { %1700 = vadd.xlane.f32.xlu1 %v1699_v48  ;;  %v3565_v29 = vpop.f32.mrf.mxu0  ;;  %v1740_v48 = vld [vmem:[%s6109_s4 + $0x40] sm:$0xff] }
 0x151   : > { %v1533_v38 = vmul.f32 %v3565_v29, %v1469_v1  ;;  %v1702_v51 = vsel %vm310_vm2, %v1530_v11, 0.0  ;;  %3466 = vmatmul.mubr.msk.f32.gmra.mxu1 %vm448_vm1, %v6172_v22  ;;  %v1747_v11 = vld [vmem:[%s6109_s4 + $0x78] sm:$0xff]  ;;  %v1749_v22 = vld [vmem:[%s6109_s4 + $0x88] sm:$0xff] }
 0x152   : > { %1703 = vadd.xlane.f32.xlu0 %v1702_v51  ;;  %v1373_v39 = vpop.f32.mrf.mxu0  ;;  %3468 = vmatprep.mubr.msk.f32.mxu1 %vm448_vm1, %v6173_v23  ;;  %v1744_v51 = vld [vmem:[%s6109_s4 + $0x60] sm:$0xff] }
 0x153   : > { %v1532_v14 = vmul.f32 %v1468_v3, %v1373_v39  ;;  %v1711_v18 = vsel %vm310_vm2, %v1533_v38, 0.0 }
 0x154   : > { %1706 = vadd.xlane.f32.xlu1 %v1705_v50  ;;  %v3568_v30 = vpop.f32.mrf.mxu0 }
 0x155   : > { %v1535_v40 = vmul.f32 %v3568_v30, %v1471_v6  ;;  %v1708_v31 = vsel %vm310_vm2, %v1532_v14, 0.0  ;;  %3469 = vmatmul.mubr.msk.f32.gmra.mxu1 %vm448_vm1, %v6174_v41  ;;  %v1751_v30 = vld [vmem:[%s6109_s4 + $0x98] sm:$0xff]  ;;  %v1748_v41 = vld [vmem:[%s6109_s4 + $0x80] sm:$0xff] }
 0x156   : > { %1709 = vadd.xlane.f32.xlu0 %v1708_v31  ;;  %v1383_v7 = vpop.f32.mrf.mxu0  ;;  %3471 = vmatprep.mubr.msk.f32.mxu1 %vm448_vm1, %v444_v52 }
 0x157   : > { %v1534_v9 = vmul.f32 %v1470_v53, %v1383_v7  ;;  %v1717_v19 = vsel %vm310_vm2, %v1535_v40, 0.0  ;;  %v1753_v7 = vld [vmem:[%s6109_s4 + $0xa8] sm:$0xff] }
 0x158   : > { %1712 = vadd.xlane.f32.xlu1 %v1711_v18 }
 0x159   : > { %v1714_v24 = vsel %vm310_vm2, %v1534_v9, 0.0  ;;  %3472 = vmatmul.mubr.msk.f32.gmra.mxu1 %vm448_vm1, %v445_v54 }
 0x15a   : > { %1715 = vadd.xlane.f32.xlu0 %v1714_v24  ;;  %3474 = vmatprep.mubr.msk.f32.mxu1 %vm448_vm1, %v446_v55  ;;  %v1750_v24 = vld [vmem:[%s6109_s4 + $0x90] sm:$0xff] }
 0x15c   : > { %1718 = vadd.xlane.f32.xlu1 %v1717_v19 }
 0x15d   : > { %3475 = vmatmul.mubr.msk.f32.gmra.mxu1 %vm448_vm1, %v447_v15 }
 0x15e   : > { %3569 = vmatprep.mubr.msk.f32.mxu1 %vm448_vm1, %v444_v52  ;;  %v1746_v52 = vld [vmem:[%s6109_s4 + $0x70] sm:$0xff] }
 0x161   : > { %3570 = vmatmul.mubr.msk.f32.vlgmr.msra.gmra.mxu1 %vm448_vm1, %v445_v54 }
 0x162   : > { %3572 = vmatprep.mubr.msk.f32.mxu1 %vm448_vm1, %v446_v55 }
 0x165   : > { %3573 = vmatmul.mubr.msk.f32.gmra.mxu1 %vm448_vm1, %v447_v15  ;;  %v1755_v15 = vld [vmem:[%s6109_s4 + $0xb8] sm:$0xff] }
 0x16d   : > { %v1545_v32 = vpop.xlane.xlu0 %1544 }
 0x16e   : > { %v1797_v56 = vadd.f32 %v1733_v42, %v1545_v32 }
 0x170   : > { %1867 = vperm.xlu1 %3588, %v1797_v56  }
 0x171   : > { %v1542_v25 = vpop.xlane.xlu0 %1541  ;;  %v1551_v33 = vpop.xlane.xlu1 %1550 }
 0x172   : > { %v1796_v8 = vadd.f32 %v1732_v43, %v1542_v25  ;;  %v1799_v4 = vadd.f32 %v1735_v57, %v1551_v33  ;;  %v1752_v57 = vld [vmem:[%s6109_s4 + $0xa0] sm:$0xff]  ;;  %v1757_v25 = vld [vmem:[%s6109_s4 + $0xc8] sm:$0xff] }
 0x174   : > { %1877 = vperm.xlu1 %3588, %v1799_v4   ;;  %1862 = vperm.xlu0 %3589, %v1796_v8  }
 0x175   : > { %v1548_v58 = vpop.xlane.xlu1 %1547 }
 0x176   : > { %v1798_v44 = vadd.f32 %v1734_v12, %v1548_v58 }
 0x177   : > { %v1554_v5 = vpop.xlane.xlu0 %1553 }
 0x178   : > { %1872 = vperm.xlu1 %3588, %v1798_v44   ;;  %v1800_v61 = vadd.f32 %v1736_v34, %v1554_v5  ;;  %v1754_v44 = vld [vmem:[%s6109_s4 + $0xb0] sm:$0xff] }
 0x179   : > { %v1557_v45 = vpop.xlane.xlu1 %1556 }
 0x17a   : > { %v1801_v10 = vadd.f32 %v1737_v59, %v1557_v45  ;;  %v1759_v59 = vld [vmem:[%s6109_s4 + $0xd8] sm:$0xff] }
 0x17b   : > { %v1560_v26 = vpop.xlane.xlu0 %1559 }
 0x17c   : > { %1887 = vperm.xlu1 %3588, %v1801_v10   ;;  %v1802_v36 = vadd.f32 %v1738_v62, %v1560_v26 }
 0x17d   : > { %v1563_v35 = vpop.xlane.xlu1 %1562 }
 0x17e   : > { %v1803_v27 = vadd.f32 %v1739_v60, %v1563_v35  ;;  %v1756_v35 = vld [vmem:[%s6109_s4 + $0xc0] sm:$0xff] }
 0x17f   : > { %v1566_v46 = vpop.xlane.xlu0 %1565 }
 0x180   : > { %1882 = vperm.xlu1 %3588, %v1800_v61   ;;  %v1804_v17 = vadd.f32 %v1740_v48, %v1566_v46  ;;  %v1761_v61 = vld [vmem:[%s6109_s4 + $0xe8] sm:$0xff] }
 0x181   : > { %v1569_v47 = vpop.xlane.xlu1 %1568 }
 0x182   : > { %v1805_v16 = vadd.f32 %v1741_v20, %v1569_v47 }
 0x183   : > { %v1572_v63 = vpop.xlane.xlu0 %1571 }
 0x184   : > { %1897 = vperm.xlu1 %3588, %v1803_v27   ;;  %1907 = vperm.xlu0 %3589, %v1805_v16   ;;  %v1806_v50 = vadd.f32 %v1742_v28, %v1572_v63  ;;  %v1763_v63 = vld [vmem:[%s6109_s4 + $0xf8] sm:$0xff] }
 0x185   : > { %v1575_v13 = vpop.xlane.xlu1 %1574 }
 0x186   : > { %v1807_v2 = vadd.f32 %v1743_v21, %v1575_v13  ;;  %v1758_v21 = vld [vmem:[%s6109_s4 + $0xd0] sm:$0xff] }
 0x187   : > { %v1578_v0 = vpop.xlane.xlu0 %1577 }
 0x188   : > { %1892 = vperm.xlu1 %3588, %v1802_v36   ;;  %1917 = vperm.xlu0 %3589, %v1807_v2   ;;  %v1808_v23 = vadd.f32 %v1744_v51, %v1578_v0  ;;  %v1767_v51 = vld [vmem:[%s6109_s4 + $0x118] sm:$0xff] }
 0x189   : > { %v1581_v49 = vpop.xlane.xlu1 %1580 }
 0x18a   : > { %v1809_v1 = vadd.f32 %v1745_v37, %v1581_v49  ;;  %v1760_v49 = vld [vmem:[%s6109_s4 + $0xe0] sm:$0xff] }
 0x18b   : > { %v1584_v29 = vpop.xlane.xlu0 %1583 }
 0x18c   : > { %1902 = vperm.xlu1 %3588, %v1804_v17   ;;  %1927 = vperm.xlu0 %3589, %v1809_v1   ;;  %v1810_v40 = vadd.f32 %v1746_v52, %v1584_v29  ;;  %v1765_v17 = vld [vmem:[%s6109_s4 + $0x108] sm:$0xff] }
 0x18d   : > { %v1587_v3 = vpop.xlane.xlu1 %1586 }
 0x18e   : > { %v1811_v38 = vadd.f32 %v1747_v11, %v1587_v3 }
 0x18f   : > { %v1590_v39 = vpop.xlane.xlu0 %1589 }
 0x190   : > { %1912 = vperm.xlu1 %3588, %v1806_v50   ;;  %1937 = vperm.xlu0 %3589, %v1811_v38   ;;  %v1812_v55 = vadd.f32 %v1748_v41, %v1590_v39  ;;  %v1762_v38 = vld [vmem:[%s6109_s4 + $0xf0] sm:$0xff] }
 0x191   : > { %v1593_v6 = vpop.xlane.xlu1 %1592 }
 0x192   : > { %v1813_v14 = vadd.f32 %v1749_v22, %v1593_v6 }
 0x193   : > { %v1596_v53 = vpop.xlane.xlu0 %1595 }
 0x194   : > { %1922 = vperm.xlu1 %3588, %v1808_v23   ;;  %1947 = vperm.xlu0 %3589, %v1813_v14   ;;  %v1814_v56 = vadd.f32 %v1750_v24, %v1596_v53  ;;  %v1769_v53 = vld [vmem:[%s6109_s4 + $0x128] sm:$0xff] }
 0x195   : > { %v1599_v18 = vpop.xlane.xlu1 %1598 }
 0x196   : > { %v1815_v31 = vadd.f32 %v1751_v30, %v1599_v18  ;;  %v1764_v30 = vld [vmem:[%s6109_s4 + $0x100] sm:$0xff] }
 0x197   : > { %v1602_v54 = vpop.xlane.xlu0 %1601 }
 0x198   : > { %1932 = vperm.xlu1 %3588, %v1810_v40   ;;  %1957 = vperm.xlu0 %3589, %v1815_v31   ;;  %v1816_v12 = vadd.f32 %v1752_v57, %v1602_v54  ;;  %v1773_v57 = vld [vmem:[%s6109_s4 + $0x148] sm:$0xff] }
 0x199   : > { %v1605_v9 = vpop.xlane.xlu1 %1604 }
 0x19a   : > { %v1817_v19 = vadd.f32 %v1753_v7, %v1605_v9  ;;  %v1766_v9 = vld [vmem:[%s6109_s4 + $0x110] sm:$0xff] }
 0x19b   : > { %v1608_v42 = vpop.xlane.xlu0 %1607 }
 0x19c   : > { %1942 = vperm.xlu1 %3588, %v1812_v55   ;;  %1967 = vperm.xlu0 %3589, %v1817_v19   ;;  %v1818_v26 = vadd.f32 %v1754_v44, %v1608_v42  ;;  %v1771_v55 = vld [vmem:[%s6109_s4 + $0x138] sm:$0xff] }
 0x19d   : > { %v1611_v32 = vpop.xlane.xlu1 %1610 }
 0x19e   : > { %v1819_v43 = vadd.f32 %v1755_v15, %v1611_v32 }
 0x19f   : > { %v1614_v33 = vpop.xlane.xlu0 %1613 }
 0x1a0   : > { %1952 = vperm.xlu1 %3588, %v1814_v56   ;;  %1977 = vperm.xlu0 %3589, %v1819_v43   ;;  %v1820_v16 = vadd.f32 %v1756_v35, %v1614_v33  ;;  %v1768_v43 = vld [vmem:[%s6109_s4 + $0x120] sm:$0xff] }
 0x1a1   : > { %v1617_v8 = vpop.xlane.xlu1 %1616  ;;  %v4817_v4 = vpop.f32.mrf.mxu1 }
 0x1a2   : > { %v1821_v58 = vadd.f32 %v1757_v25, %v1617_v8 }
 0x1a3   : > { %v1620_v5 = vpop.xlane.xlu0 %1619  ;;  %v4825_v45 = vpop.f32.mrf.mxu1 }
 0x1a4   : > { %1962 = vperm.xlu1 %3588, %v1816_v12   ;;  %1987 = vperm.xlu0 %3589, %v1821_v58   ;;  %v1822_v37 = vadd.f32 %v1758_v21, %v1620_v5  ;;  %v1775_v5 = vld [vmem:[%s6109_s4 + $0x158] sm:$0xff] }
 0x1a5   : > { %v1623_v10 = vpop.xlane.xlu1 %1622  ;;  %v4827_v34 = vpop.f32.mrf.mxu1 }
 0x1a6   : > { %v1823_v60 = vadd.f32 %v1759_v59, %v1623_v10  ;;  %v1770_v59 = vld [vmem:[%s6109_s4 + $0x130] sm:$0xff] }
 0x1a7   : > { %v1626_v20 = vpop.xlane.xlu0 %1625  ;;  %v4835_v46 = vpop.f32.mrf.mxu1 }
 0x1a8   : > { %1972 = vperm.xlu1 %3588, %v1818_v26   ;;  %1997 = vperm.xlu0 %3589, %v1823_v60   ;;  %v1824_v3 = vadd.f32 %v1760_v49, %v1626_v20  ;;  %v1779_v49 = vld [vmem:[%s6109_s4 + $0x178] sm:$0xff] }
 0x1a9   : > { %v1629_v27 = vpop.xlane.xlu1 %1628  ;;  %v4837_v47 = vpop.f32.mrf.mxu1 }
 0x1aa   : > { %v1825_v62 = vadd.f32 %v1761_v61, %v1629_v27  ;;  %v1772_v27 = vld [vmem:[%s6109_s4 + $0x140] sm:$0xff] }
 0x1ab   : > { %v1632_v13 = vpop.xlane.xlu0 %1631  ;;  %v4845_v36 = vpop.f32.mrf.mxu1 }
 0x1ac   : > { %1982 = vperm.xlu1 %3588, %v1820_v16   ;;  %2007 = vperm.xlu0 %3589, %v1825_v62   ;;  %v1826_v14 = vadd.f32 %v1762_v38, %v1632_v13  ;;  %v1777_v16 = vld [vmem:[%s6109_s4 + $0x168] sm:$0xff] }
 0x1ad   : > { %v1635_v2 = vpop.xlane.xlu1 %1634  ;;  %v4847_v48 = vpop.f32.mrf.mxu1 }
 0x1ae   : > { %v1827_v0 = vadd.f32 %v1763_v63, %v1635_v2 }
 0x1af   : > { %v1638_v1 = vpop.xlane.xlu0 %1637  ;;  %v4855_v28 = vpop.f32.mrf.mxu1 }
 0x1b0   : > { %1992 = vperm.xlu1 %3588, %v1822_v37   ;;  %2017 = vperm.xlu0 %3589, %v1827_v0   ;;  %v1828_v7 = vadd.f32 %v1764_v30, %v1638_v1  ;;  %v1774_v0 = vld [vmem:[%s6109_s4 + $0x150] sm:$0xff] }
 0x1b1   : > { %v1641_v11 = vpop.xlane.xlu1 %1640  ;;  %v4857_v29 = vpop.f32.mrf.mxu1 }
 0x1b2   : > { %v1829_v50 = vadd.f32 %v1765_v17, %v1641_v11 }
 0x1b3   : > { %v1644_v22 = vpop.xlane.xlu0 %1643  ;;  %v4865_v39 = vpop.f32.mrf.mxu1 }
 0x1b4   : > { %2002 = vperm.xlu1 %3588, %v1824_v3   ;;  %2027 = vperm.xlu0 %3589, %v1829_v50   ;;  %v1830_v32 = vadd.f32 %v1766_v9, %v1644_v22  ;;  %v1781_v22 = vld [vmem:[%s6109_s4 + $0x188] sm:$0xff] }
 0x1b5   : > { %v1647_v6 = vpop.xlane.xlu1 %1646  ;;  %v4867_v23 = vpop.f32.mrf.mxu1 }
 0x1b6   : > { %v1831_v52 = vadd.f32 %v1767_v51, %v1647_v6  ;;  %v1776_v51 = vld [vmem:[%s6109_s4 + $0x160] sm:$0xff] }
 0x1b7   : > { %v1650_v18 = vpop.xlane.xlu0 %1649  ;;  %v4875_v40 = vpop.f32.mrf.mxu1 }
 0x1b8   : > { %2012 = vperm.xlu1 %3588, %v1826_v14   ;;  %2037 = vperm.xlu0 %3589, %v1831_v52   ;;  %v1832_v58 = vadd.f32 %v1768_v43, %v1650_v18  ;;  %v1785_v43 = vld [vmem:[%s6109_s4 + $0x1a8] sm:$0xff] }
 0x1b9   : > { %v1653_v31 = vpop.xlane.xlu1 %1652  ;;  %v4877_v41 = vpop.f32.mrf.mxu1 }
 0x1ba   : > { %v1833_v54 = vadd.f32 %v1769_v53, %v1653_v31  ;;  %v1778_v31 = vld [vmem:[%s6109_s4 + $0x170] sm:$0xff] }
 0x1bb   : > { %v1656_v19 = vpop.xlane.xlu0 %1655  ;;  %v4885_v24 = vpop.f32.mrf.mxu1 }
 0x1bc   : > { %2022 = vperm.xlu1 %3588, %v1828_v7   ;;  %2047 = vperm.xlu0 %3589, %v1833_v54   ;;  %v1834_v61 = vadd.f32 %v1770_v59, %v1656_v19  ;;  %v1783_v7 = vld [vmem:[%s6109_s4 + $0x198] sm:$0xff] }
 0x1bd   : > { %v1659_v15 = vpop.xlane.xlu1 %1658  ;;  %v4887_v42 = vpop.f32.mrf.mxu1 }
 0x1be   : > { %v1835_v56 = vadd.f32 %v1771_v55, %v1659_v15 }
 0x1bf   : > { %v1662_v25 = vpop.xlane.xlu0 %1661  ;;  %v4895_v33 = vpop.f32.mrf.mxu1 }
 0x1c0   : > { %2032 = vperm.xlu1 %3588, %v1830_v32   ;;  %2057 = vperm.xlu0 %3589, %v1835_v56   ;;  %v1836_v2 = vadd.f32 %v1772_v27, %v1662_v25  ;;  %v1780_v56 = vld [vmem:[%s6109_s4 + $0x180] sm:$0xff] }
 0x1c1   : > { %v1665_v8 = vpop.xlane.xlu1 %1664  ;;  %v4897_v12 = vpop.f32.mrf.mxu1 }
 0x1c2   : > { %v1837_v44 = vadd.f32 %v1773_v57, %v1665_v8 }
 0x1c3   : > { %v1668_v10 = vpop.xlane.xlu0 %1667  ;;  %v4905_v26 = vpop.f32.mrf.mxu1 }
 0x1c4   : > { %2042 = vperm.xlu1 %3588, %v1832_v58   ;;  %2067 = vperm.xlu0 %3589, %v1837_v44   ;;  %v1838_v50 = vadd.f32 %v1774_v0, %v1668_v10  ;;  %v1787_v10 = vld [vmem:[%s6109_s4 + $0x1b8] sm:$0xff] }
 0x1c5   : > { %v1671_v60 = vpop.xlane.xlu1 %1670  ;;  %v4907_v35 = vpop.f32.mrf.mxu1 }
 0x1c6   : > { %v1839_v20 = vadd.f32 %v1775_v5, %v1671_v60  ;;  %v1782_v5 = vld [vmem:[%s6109_s4 + $0x190] sm:$0xff] }
 0x1c7   : > { %v1674_v62 = vpop.xlane.xlu0 %1673  ;;  %v4915_v21 = vpop.f32.mrf.mxu1 }
 0x1c8   : > { %2052 = vperm.xlu1 %3588, %v1834_v61   ;;  %2077 = vperm.xlu0 %3589, %v1839_v20   ;;  %v1840_v53 = vadd.f32 %v1776_v51, %v1674_v62 }
 0x1c9   : > { %v1677_v63 = vpop.xlane.xlu1 %1676  ;;  %v4917_v13 = vpop.f32.mrf.mxu1 }
 0x1ca   : > { %v1841_v37 = vadd.f32 %v1777_v16, %v1677_v63  ;;  %v1784_v63 = vld [vmem:[%s6109_s4 + $0x1a0] sm:$0xff] }
 0x1cb   : > { %v1680_v17 = vpop.xlane.xlu0 %1679  ;;  %v4925_v1 = vpop.f32.mrf.mxu1 }
 0x1cc   : > { %2062 = vperm.xlu1 %3588, %v1836_v2   ;;  %2087 = vperm.xlu0 %3589, %v1841_v37   ;;  %v1842_v15 = vadd.f32 %v1778_v31, %v1680_v17  ;;  %v1789_v2 = vld [vmem:[%s6109_s4 + $0x1c8] sm:$0xff]  ;;  %v1788_v31 = vld [vmem:[%s6109_s4 + $0x1c0] sm:$0xff] }
 0x1cd   : > { %v1683_v11 = vpop.xlane.xlu1 %1682  ;;  %v4927_v3 = vpop.f32.mrf.mxu1 }
 0x1ce   : > { %v1843_v38 = vadd.f32 %v1779_v49, %v1683_v11 }
 0x1cf   : > { %v1686_v6 = vpop.xlane.xlu0 %1685  ;;  %v4935_v14 = vpop.f32.mrf.mxu1 }
 0x1d0   : > { %2072 = vperm.xlu1 %3588, %v1838_v50   ;;  %2097 = vperm.xlu0 %3589, %v1843_v38   ;;  %v1844_v44 = vadd.f32 %v1780_v56, %v1686_v6  ;;  %v1786_v50 = vld [vmem:[%s6109_s4 + $0x1b0] sm:$0xff]  ;;  %v1791_v38 = vld [vmem:[%s6109_s4 + $0x1d8] sm:$0xff] }
 0x1d1   : > { %v1689_v52 = vpop.xlane.xlu1 %1688  ;;  %v4937_v30 = vpop.f32.mrf.mxu1 }
 0x1d2   : > { %v1845_v18 = vadd.f32 %v1781_v22, %v1689_v52 }
 0x1d3   : > { %v1692_v54 = vpop.xlane.xlu0 %1691  ;;  %v4945_v9 = vpop.f32.mrf.mxu1 }
 0x1d4   : > { %2082 = vperm.xlu1 %3588, %v1840_v53   ;;  %2107 = vperm.xlu0 %3589, %v1845_v18   ;;  %v1846_v27 = vadd.f32 %v1782_v5, %v1692_v54 }
 0x1d5   : > { %v1695_v55 = vpop.xlane.xlu1 %1694  ;;  %v4947_v19 = vpop.f32.mrf.mxu1 }
 0x1d6   : > { %v1847_v32 = vadd.f32 %v1783_v7, %v1695_v55 }
 0x1d7   : > { %v4955_v57 = vpop.f32.mrf.mxu1  ;;  %v1698_v25 = vpop.xlane.xlu0 %1697 }
 0x1d8   : > { %2092 = vperm.xlu1 %3588, %v1842_v15   ;;  %2117 = vperm.xlu0 %3589, %v1847_v32   ;;  %v1848_v17 = vadd.f32 %v1784_v63, %v1698_v25  ;;  %v1790_v32 = vld [vmem:[%s6109_s4 + $0x1d0] sm:$0xff] }
 0x1d9   : > { %v1701_v8 = vpop.xlane.xlu1 %1700  ;;  %v4957_v58 = vpop.f32.mrf.mxu1 }
 0x1da   : > { %v1849_v59 = vadd.f32 %v1785_v43, %v1701_v8 }
 0x1db   : > { %v4965_v60 = vpop.f32.mrf.mxu1  ;;  %v1704_v62 = vpop.xlane.xlu0 %1703 }
 0x1dc   : > { %2102 = vperm.xlu1 %3588, %v1844_v44   ;;  %2127 = vperm.xlu0 %3589, %v1849_v59   ;;  %v1850_v53 = vadd.f32 %v1786_v50, %v1704_v62 }
 0x1dd   : > { %v1707_v61 = vpop.xlane.xlu1 %1706  ;;  %v4967_v20 = vpop.f32.mrf.mxu1 }
 0x1de   : > { %v1851_v16 = vadd.f32 %v1787_v10, %v1707_v61 }
 0x1df   : > { %v4975_v37 = vpop.f32.mrf.mxu1  ;;  %v1710_v22 = vpop.xlane.xlu0 %1709 }
 0x1e0   : > { %2112 = vperm.xlu1 %3588, %v1846_v27   ;;  %2137 = vperm.xlu0 %3589, %v1851_v16   ;;  %v1852_v55 = vadd.f32 %v1788_v31, %v1710_v22 }
 0x1e1   : > { %v1713_v0 = vpop.xlane.xlu1 %1712  ;;  %v4977_v49 = vpop.f32.mrf.mxu1 }
 0x1e2   : > { %v1853_v11 = vadd.f32 %v1789_v2, %v1713_v0 }
 0x1e3   : > { %v4985_v51 = vpop.f32.mrf.mxu1  ;;  %v1716_v15 = vpop.xlane.xlu0 %1715 }
 0x1e4   : > { %2122 = vperm.xlu1 %3588, %v1848_v17   ;;  %2147 = vperm.xlu0 %3589, %v1853_v11   ;;  %v1854_v8 = vadd.f32 %v1790_v32, %v1716_v15 }
 0x1e5   : > { %v1719_v6 = vpop.xlane.xlu1 %1718  ;;  %v4987_v52 = vpop.f32.mrf.mxu1 }
 0x1e6   : > { %v1855_v18 = vadd.f32 %v1791_v38, %v1719_v6 }
 0x1e7   : > { %v4992_v7 = vpop.f32.mrf.mxu1 }
 0x1e8   : > { %2132 = vperm.xlu1 %3588, %v1850_v53   ;;  %2157 = vperm.xlu0 %3589, %v1855_v18  }
 0x1e9   : > { %v4994_v54 = vpop.f32.mrf.mxu1 }
 0x1eb   : > { %v1868_v56 = vpop.permute.xlu1 %1867  ;;  %v4999_v43 = vpop.f32.mrf.mxu1 }
 0x1ec   : > { %2142 = vperm.xlu1 %3588, %v1852_v55   ;;  %v5022_v6 = vmul.f32 %v4817_v4, %v1868_v56 }
 0x1ed   : > { %v5001_v25 = vpop.f32.mrf.mxu1 }
 0x1ee   : > { %6178 = vst [vmem:[#allocation5_spill] sm:$0xff] %v5022_v6  ;;  %v2247_v32 = vsel %vm310_vm2, %v5022_v6, -inf }
 0x1ef   : > { %v1878_v44 = vpop.permute.xlu1 %1877  ;;  %v5003_v59 = vpop.f32.mrf.mxu1 }
 0x1f0   : > { %2152 = vperm.xlu1 %3588, %v1854_v8   ;;  %v1863_v2 = vpop.permute.xlu0 %1862 }
 0x1f1   : > { %v5005_v5 = vpop.f32.mrf.mxu1 }
 0x1f3   : > { %v1873_v10 = vpop.permute.xlu1 %1872  ;;  %v5007_v61 = vpop.f32.mrf.mxu1 }
 0x1f4   : > { %v5029_v15 = vmul.f32 %v1873_v10, %v4835_v46 }
 0x1f5   : > { %v5009_v27 = vpop.f32.mrf.mxu1 }
 0x1f6   : > { %6175 = vst [vmem:[#allocation2_spill] sm:$0xff] %v5009_v27  ;;  %6180 = vst [vmem:[#allocation7_spill] sm:$0xff] %v5029_v15 }
 0x1f7   : > { %v1888_v16 = vpop.permute.xlu1 %1887  ;;  %v5011_v62 = vpop.f32.mrf.mxu1 }
 0x1f9   : > { %v5013_v63 = vpop.f32.mrf.mxu1 }
 0x1fa   : > { %6176 = vst [vmem:[#allocation3_spill] sm:$0xff] %v5013_v63 }
 0x1fb   : > { %v1883_v0 = vpop.permute.xlu1 %1882  ;;  %v5015_v17 = vpop.f32.mrf.mxu1 }
 0x1fc   : > { %v5040_v56 = vmul.f32 %v1883_v0, %v4845_v36  ;;  %v5058_v36 = vmul.f32 %v1863_v2, %v4825_v45 }
 0x1fd   : > { %v5017_v11 = vpop.f32.mrf.mxu1 }
 0x1fe   : > { %6177 = vst [vmem:[#allocation4_spill] sm:$0xff] %v5017_v11  ;;  %6183 = vst [vmem:[#allocation10_spill] sm:$0xff] %v5040_v56  ;;  %v2244_v45 = vsel %vm310_vm2, %v5058_v36, -inf }
 0x1ff   : > { %v1898_v50 = vpop.permute.xlu1 %1897  ;;  %v1908_v38 = vpop.permute.xlu0 %1907 }
 0x200   : > { %v5019_v22 = vpop.f32.mrf.mxu1 }
 0x202   : > { %v5024_v53 = vpop.f32.mrf.mxu1 }
 0x203   : > { %6179 = vst [vmem:[#allocation6_spill] sm:$0xff] %v5024_v53  ;;  %v1893_v18 = vpop.permute.xlu1 %1892  ;;  %v1918_v31 = vpop.permute.xlu0 %1917  ;;  %v2250_v53 = vsel %vm310_vm2, %v5029_v15, -inf }
 0x204   : > { %v5026_v55 = vpop.f32.mrf.mxu1 }
 0x206   : > { %v5033_v8 = vpop.f32.mrf.mxu1 }
 0x207   : > { %6181 = vst [vmem:[#allocation8_spill] sm:$0xff] %v5033_v8  ;;  %v1903_v11 = vpop.permute.xlu1 %1902  ;;  %2248 = vmax.xlane.f32.xlu0 %v2247_v32  ;;  %v5035_v63 = vpop.permute.xlu0 %1927  ;;  %v5051_v32 = vmul.f32 %v1893_v18, %v4855_v28  ;;  %v2256_v8 = vsel %vm310_vm2, %v5040_v56, -inf  ;;  %v5072_v56 = vmul.f32 %v4827_v34, %v1878_v44 }
 0x208   : > { %v5037_v4 = vpop.f32.mrf.mxu1 }
 0x209   : > { %6182 = vst [vmem:[#allocation9_spill] sm:$0xff] %v5037_v4  ;;  %6185 = vst [vmem:[#allocation12_spill] sm:$0xff] %v5051_v32  ;;  %v2262_v28 = vsel %vm310_vm2, %v5051_v32, -inf  ;;  %v5086_v32 = vmul.f32 %v4837_v47, %v1888_v16  ;;  %v2253_v44 = vsel %vm310_vm2, %v5072_v56, -inf }
 0x20a   : > { %v5044_v27 = vpop.f32.mrf.mxu1 }
 0x20b   : > { %6184 = vst [vmem:[#allocation11_spill] sm:$0xff] %v5044_v27  ;;  %v1913_v46 = vpop.permute.xlu1 %1912  ;;  %2251 = vmax.xlane.f32.xlu0 %v2250_v53  ;;  %v5046_v10 = vpop.permute.xlu0 %1937  ;;  %v5065_v27 = vmul.f32 %v1903_v11, %v4865_v39  ;;  %v2259_v16 = vsel %vm310_vm2, %v5086_v32, -inf }
 0x20c   : > { %v5048_v6 = vpop.f32.mrf.mxu1  ;;  %v5081_v39 = vmul.f32 %v1913_v46, %v4875_v40  ;;  %v5100_v46 = vmul.f32 %v4847_v48, %v1898_v50 }
 0x20d   : > { %v2268_v11 = vsel %vm310_vm2, %v5065_v27, -inf }
 0x20e   : > { %v5055_v4 = vpop.f32.mrf.mxu1  ;;  %6188 = vst [vmem:[#allocation15_spill] sm:$0xff] %v5081_v39  ;;  %v2274_v40 = vsel %vm310_vm2, %v5081_v39, -inf  ;;  %v2265_v48 = vsel %vm310_vm2, %v5100_v46, -inf }
 0x20f   : > { %6186 = vst [vmem:[#allocation13_spill] sm:$0xff] %v5055_v4  ;;  %v1923_v0 = vpop.permute.xlu1 %1922  ;;  %2257 = vmax.xlane.f32.xlu0 %v2256_v8  ;;  %v5060_v15 = vpop.permute.xlu0 %1947 }
 0x210   : > { %v5062_v53 = vpop.f32.mrf.mxu1 }
 0x212   : > { %v5069_v18 = vpop.f32.mrf.mxu1 }
 0x213   : > { %6187 = vst [vmem:[#allocation14_spill] sm:$0xff] %v5069_v18  ;;  %v1933_v4 = vpop.permute.xlu1 %1932  ;;  %2263 = vmax.xlane.f32.xlu0 %v2262_v28  ;;  %v5076_v2 = vpop.permute.xlu0 %1957 }
 0x214   : > { %2245 = vmax.xlane.f32.xlu1 %v2244_v45  ;;  %v5078_v8 = vpop.f32.mrf.mxu1  ;;  %v5093_v45 = vmul.f32 %v1923_v0, %v4885_v24  ;;  %v5112_v0 = vmul.f32 %v4857_v29, %v1908_v38 }
 0x216   : > { %v5090_v28 = vpop.f32.mrf.mxu1  ;;  %v2280_v24 = vsel %vm310_vm2, %v5093_v45, -inf  ;;  %v2271_v38 = vsel %vm310_vm2, %v5112_v0, -inf }
 0x217   : > { %v1943_v34 = vpop.permute.xlu1 %1942  ;;  %2269 = vmax.xlane.f32.xlu0 %v2268_v11  ;;  %v5095_v18 = vpop.permute.xlu0 %1967 }
 0x218   : > { %2254 = vmax.xlane.f32.xlu1 %v2253_v44  ;;  %v5104_v11 = vpop.f32.mrf.mxu1  ;;  %v5107_v44 = vmul.f32 %v1933_v4, %v4895_v33  ;;  %v5124_v4 = vmul.f32 %v4867_v23, %v1918_v31 }
 0x21a   : > { %v2286_v33 = vsel %vm310_vm2, %v5107_v44, -inf  ;;  %v2277_v31 = vsel %vm310_vm2, %v5124_v4, -inf }
 0x21b   : > { %v1953_v47 = vpop.permute.xlu1 %1952  ;;  %2275 = vmax.xlane.f32.xlu0 %v2274_v40  ;;  %v1978_v50 = vpop.permute.xlu0 %1977 }
 0x21c   : > { %2260 = vmax.xlane.f32.xlu1 %v2259_v16  ;;  %v5116_v40 = vpop.f32.mrf.mxu1  ;;  %v5119_v16 = vmul.f32 %v1943_v34, %v4905_v26  ;;  %v5137_v34 = vmul.f32 %v4877_v41, %v5035_v63 }
 0x21d   : > { %6189 = vst [vmem:[#allocation16_spill] sm:$0xff] %v5116_v40 }
 0x21e   : > { %v2292_v26 = vsel %vm310_vm2, %v5119_v16, -inf  ;;  %v2283_v63 = vsel %vm310_vm2, %v5137_v34, -inf }
 0x21f   : > { %v1963_v39 = vpop.permute.xlu1 %1962  ;;  %2281 = vmax.xlane.f32.xlu0 %v2280_v24  ;;  %v5128_v24 = vpop.f32.mrf.mxu1 }
 0x220   : > { %2266 = vmax.xlane.f32.xlu1 %v2265_v48  ;;  %6190 = vst [vmem:[#allocation17_spill] sm:$0xff] %v5128_v24  ;;  %v5131_v48 = vmul.f32 %v1953_v47, %v4915_v21  ;;  %v1988_v40 = vpop.permute.xlu0 %1987  ;;  %v5150_v47 = vmul.f32 %v4887_v42, %v5046_v10 }
 0x222   : > { %v2298_v21 = vsel %vm310_vm2, %v5131_v48, -inf  ;;  %v2289_v10 = vsel %vm310_vm2, %v5150_v47, -inf }
 0x223   : > { %v1973_v29 = vpop.permute.xlu1 %1972  ;;  %2287 = vmax.xlane.f32.xlu0 %v2286_v33  ;;  %v5141_v33 = vpop.f32.mrf.mxu1 }
 0x224   : > { %2272 = vmax.xlane.f32.xlu1 %v2271_v38  ;;  %6191 = vst [vmem:[#allocation18_spill] sm:$0xff] %v5141_v33  ;;  %v5144_v38 = vmul.f32 %v1963_v39, %v4925_v1  ;;  %v5157_v33 = vmul.f32 %v1973_v29, %v4935_v14  ;;  %v5163_v39 = vmul.f32 %v4897_v12, %v5060_v15 }
 0x225   : > { %v5174_v29 = vmul.f32 %v4907_v35, %v5076_v2  ;;  %v5188_v35 = vmul.f32 %v4917_v13, %v5095_v18 }
 0x226   : > { %6193 = vst [vmem:[#allocation20_spill] sm:$0xff] %v5157_v33  ;;  %v2304_v1 = vsel %vm310_vm2, %v5144_v38, -inf  ;;  %v2310_v14 = vsel %vm310_vm2, %v5157_v33, -inf  ;;  %v2295_v15 = vsel %vm310_vm2, %v5163_v39, -inf }
 0x227   : > { %v1983_v23 = vpop.permute.xlu1 %1982  ;;  %2293 = vmax.xlane.f32.xlu0 %v2292_v26  ;;  %v1998_v26 = vpop.permute.xlu0 %1997  ;;  %6196 = vst [vmem:[#allocation23_spill] sm:$0xff] %v5188_v35  ;;  %v2307_v13 = vsel %vm310_vm2, %v5188_v35, -inf }
 0x228   : > { %2278 = vmax.xlane.f32.xlu1 %v2277_v31  ;;  %v5154_v31 = vpop.f32.mrf.mxu1  ;;  %v5214_v35 = vmul.f32 %v4947_v19, %v1998_v26 }
 0x229   : > { %6192 = vst [vmem:[#allocation19_spill] sm:$0xff] %v5154_v31 }
 0x22a   : > { %6199 = vst [vmem:[#allocation26_spill] sm:$0xff] %v5214_v35  ;;  %v2325_v19 = vsel %vm310_vm2, %v5214_v35, -inf }
 0x22b   : > { %v1993_v41 = vpop.permute.xlu1 %1992  ;;  %2299 = vmax.xlane.f32.xlu0 %v2298_v21  ;;  %v3571_v21 = vpop.f32.mrf.mxu1 }
 0x22c   : > { %2284 = vmax.xlane.f32.xlu1 %v2283_v63  ;;  %v5168_v63 = vmul.f32 %v1983_v23, %v4945_v9  ;;  %v2008_v31 = vpop.permute.xlu0 %2007  ;;  %v1472_v9 = vld [vmem:[%s6108_s3 + $0x1e0] sm:$0xff]  ;;  %v5182_v23 = vmul.f32 %v1993_v41, %v4955_v57  ;;  %v5195_v41 = vmul.f32 %v4927_v3, %v1978_v50  ;;  %v5207_v3 = vmul.f32 %v4937_v30, %v1988_v40  ;;  %v1473_v40 = vld [vmem:[%s6108_s3 + $0x1e8] sm:$0xff] }
 0x22e   : > { %6194 = vst [vmem:[#allocation21_spill] sm:$0xff] %v5168_v63  ;;  %6195 = vst [vmem:[#allocation22_spill] sm:$0xff] %v5182_v23  ;;  %v2322_v57 = vsel %vm310_vm2, %v5182_v23, -inf }
 0x22f   : > { %v2003_v42 = vpop.permute.xlu1 %2002  ;;  %2305 = vmax.xlane.f32.xlu0 %v2304_v1  ;;  %v1393_v1 = vpop.f32.mrf.mxu1  ;;  %6197 = vst [vmem:[#allocation24_spill] sm:$0xff] %v5195_v41  ;;  %6198 = vst [vmem:[#allocation25_spill] sm:$0xff] %v5207_v3 }
 0x230   : > { %2290 = vmax.xlane.f32.xlu1 %v2289_v10  ;;  %v2316_v10 = vsel %vm310_vm2, %v5168_v63, -inf  ;;  %v1536_v24 = vmul.f32 %v1472_v9, %v1393_v1  ;;  %v1474_v1 = vld [vmem:[%s6108_s3 + $0x1f0] sm:$0xff]  ;;  %v5204_v9 = vmul.f32 %v2003_v42, %v4965_v60  ;;  %v2319_v60 = vsel %vm310_vm2, %v5207_v3, -inf }
 0x231   : > { %v3574_v33 = vpop.f32.mrf.mxu1 }
 0x232   : > { %v1720_v18 = vsel %vm310_vm2, %v1536_v24, 0.0  ;;  %v2328_v24 = vsel %vm310_vm2, %v5204_v9, -inf }
 0x233   : > { %v2013_v12 = vpop.permute.xlu1 %2012  ;;  %2311 = vmax.xlane.f32.xlu0 %v2310_v14  ;;  %v2301_v14 = vsel %vm310_vm2, %v5174_v29, -inf }
 0x234   : > { %2296 = vmax.xlane.f32.xlu1 %v2295_v15  ;;  %v2018_v15 = vpop.permute.xlu0 %2017 }
 0x237   : > { %v2023_v2 = vpop.permute.xlu1 %2022  ;;  %2317 = vmax.xlane.f32.xlu0 %v2316_v10  ;;  %v1403_v10 = vpop.f32.mrf.mxu1 }
 0x238   : > { %2302 = vmax.xlane.f32.xlu1 %v2301_v14  ;;  %v2028_v14 = vpop.permute.xlu0 %2027  ;;  %v5228_v26 = vmul.f32 %v2023_v2, %v4985_v51 }
 0x23a   : > { %6201 = vst [vmem:[#allocation28_spill] sm:$0xff] %v5228_v26  ;;  %v2340_v51 = vsel %vm310_vm2, %v5228_v26, -inf }
 0x23b   : > { %v2033_v63 = vpop.permute.xlu1 %2032  ;;  %2323 = vmax.xlane.f32.xlu0 %v2322_v57  ;;  %v2313_v57 = vsel %vm310_vm2, %v5195_v41, -inf }
 0x23c   : > { %2308 = vmax.xlane.f32.xlu1 %v2307_v13  ;;  %v1538_v13 = vmul.f32 %v1474_v1, %v1403_v10  ;;  %v2038_v30 = vpop.permute.xlu0 %2037  ;;  %v1537_v10 = vmul.f32 %v3571_v21, %v1473_v40  ;;  %v1475_v21 = vld [vmem:[%s6108_s3 + $0x1f8] sm:$0xff] }
 0x23d   : > { %v1539_v2 = vmul.f32 %v3574_v33, %v1475_v21 }
 0x23e   : > { %v1726_v42 = vsel %vm310_vm2, %v1538_v13, 0.0  ;;  %v5240_v13 = vmul.f32 %v2033_v63, %v4992_v7 }
 0x23f   : > { %v2043_v50 = vpop.permute.xlu1 %2042  ;;  %1721 = vadd.xlane.f32.xlu0 %v1720_v18  ;;  %v5223_v18 = vmul.f32 %v2013_v12, %v4975_v37  ;;  %v1723_v37 = vsel %vm310_vm2, %v1537_v10, 0.0  ;;  %v5252_v10 = vmul.f32 %v4967_v20, %v2018_v15  ;;  %v1729_v63 = vsel %vm310_vm2, %v1539_v2, 0.0 }
 0x240   : > { %2314 = vmax.xlane.f32.xlu1 %v2313_v57  ;;  %v2048_v57 = vpop.permute.xlu0 %2047  ;;  %6203 = vst [vmem:[#allocation30_spill] sm:$0xff] %v5240_v13  ;;  %v5247_v40 = vmul.f32 %v2043_v50, %v4999_v43  ;;  %v5261_v43 = vmul.f32 %v4977_v49, %v2028_v14 }
 0x241   : > { %6200 = vst [vmem:[#allocation27_spill] sm:$0xff] %v5223_v18  ;;  %6205 = vst [vmem:[#allocation32_spill] sm:$0xff] %v5252_v10  ;;  %v2337_v20 = vsel %vm310_vm2, %v5252_v10, -inf }
 0x242   : > { %6204 = vst [vmem:[#allocation31_spill] sm:$0xff] %v5247_v40  ;;  %6207 = vst [vmem:[#allocation34_spill] sm:$0xff] %v5261_v43  ;;  %v2343_v49 = vsel %vm310_vm2, %v5261_v43, -inf  ;;  %v1794_v43 = vld [vmem:[%s6109_s4 + $0x1f0] sm:$0xff] }
 0x243   : > { %v2053_v23 = vpop.permute.xlu1 %2052  ;;  %2329 = vmax.xlane.f32.xlu0 %v2328_v24  ;;  %v2334_v24 = vsel %vm310_vm2, %v5223_v18, -inf }
 0x244   : > { %2320 = vmax.xlane.f32.xlu1 %v2319_v60  ;;  %v5233_v60 = vmul.f32 %v4957_v58, %v2008_v31  ;;  %v2058_v31 = vpop.permute.xlu0 %2057 }
 0x246   : > { %6202 = vst [vmem:[#allocation29_spill] sm:$0xff] %v5233_v60  ;;  %v2331_v58 = vsel %vm310_vm2, %v5233_v60, -inf }
 0x247   : > { %v2063_v1 = vpop.permute.xlu1 %2062  ;;  %1727 = vadd.xlane.f32.xlu0 %v1726_v42  ;;  %v2346_v42 = vsel %vm310_vm2, %v5240_v13, -inf  ;;  %v1795_v13 = vld [vmem:[%s6109_s4 + $0x1f8] sm:$0xff] }
 0x248   : > { %2326 = vmax.xlane.f32.xlu1 %v2325_v19  ;;  %v2068_v33 = vpop.permute.xlu0 %2067  ;;  %v5256_v19 = vmul.f32 %v2053_v23, %v5003_v59  ;;  %v5266_v50 = vmul.f32 %v2063_v1, %v5007_v61  ;;  %v5271_v59 = vmul.f32 %v4987_v52, %v2038_v30  ;;  %v5281_v61 = vmul.f32 %v4994_v54, %v2048_v57 }
 0x24a   : > { %6206 = vst [vmem:[#allocation33_spill] sm:$0xff] %v5256_v19  ;;  %6208 = vst [vmem:[#allocation35_spill] sm:$0xff] %v5266_v50  ;;  %v2364_v21 = vsel %vm310_vm2, %v5266_v50, -inf  ;;  %v2349_v52 = vsel %vm310_vm2, %v5271_v59, -inf  ;;  %v2355_v54 = vsel %vm310_vm2, %v5281_v61, -inf }
 0x24b   : > { %2335 = vmax.xlane.f32.xlu0 %v2334_v24  ;;  %v2073_v12 = vpop.permute.xlu1 %2072  ;;  %v2352_v24 = vsel %vm310_vm2, %v5247_v40, -inf  ;;  %6209 = vst [vmem:[#allocation36_spill] sm:$0xff] %v5271_v59  ;;  %6211 = vst [vmem:[#allocation38_spill] sm:$0xff] %v5281_v61 }
 0x24c   : > { %1724 = vadd.xlane.f32.xlu1 %v1723_v37  ;;  %v2358_v37 = vsel %vm310_vm2, %v5256_v19, -inf  ;;  %v2078_v23 = vpop.permute.xlu0 %2077  ;;  %v5276_v14 = vmul.f32 %v2073_v12, %v5011_v62  ;;  %v5291_v12 = vmul.f32 %v5001_v25, %v2058_v31 }
 0x24e   : > { %6210 = vst [vmem:[#allocation37_spill] sm:$0xff] %v5276_v14  ;;  %v2370_v62 = vsel %vm310_vm2, %v5276_v14, -inf  ;;  %6213 = vst [vmem:[#allocation40_spill] sm:$0xff] %v5291_v12  ;;  %v2361_v25 = vsel %vm310_vm2, %v5291_v12, -inf  ;;  %v1792_v12 = vld [vmem:[%s6109_s4 + $0x1e0] sm:$0xff] }
 0x24f   : > { %2341 = vmax.xlane.f32.xlu0 %v2340_v51  ;;  %v2083_v7 = vpop.permute.xlu1 %2082 }
 0x250   : > { %2332 = vmax.xlane.f32.xlu1 %v2331_v58  ;;  %v2088_v30 = vpop.permute.xlu0 %2087  ;;  %v5286_v51 = vmul.f32 %v2083_v7, %v5015_v17  ;;  %v5301_v17 = vmul.f32 %v5005_v5, %v2068_v33 }
 0x252   : > { %6212 = vst [vmem:[#allocation39_spill] sm:$0xff] %v5286_v51  ;;  %v2376_v58 = vsel %vm310_vm2, %v5286_v51, -inf  ;;  %6215 = vst [vmem:[#allocation42_spill] sm:$0xff] %v5301_v17  ;;  %v2367_v5 = vsel %vm310_vm2, %v5301_v17, -inf }
 0x253   : > { %2347 = vmax.xlane.f32.xlu0 %v2346_v42  ;;  %v2093_v15 = vpop.permute.xlu1 %2092 }
 0x254   : > { %1730 = vadd.xlane.f32.xlu1 %v1729_v63  ;;  %v5296_v2 = vmul.f32 %v2093_v15, %v5019_v22  ;;  %v2098_v31 = vpop.permute.xlu0 %2097  ;;  %v6217_v22 = vld [vmem:[#allocation2_spill] sm:$0xff] }
 0x255   : > { %v5311_v63 = vmul.f32 %v6217_v22, %v2078_v23 }
 0x256   : > { %6214 = vst [vmem:[#allocation41_spill] sm:$0xff] %v5296_v2  ;;  %v2382_v7 = vsel %vm310_vm2, %v5296_v2, -inf }
 0x257   : > { %2353 = vmax.xlane.f32.xlu0 %v2352_v24  ;;  %v2103_v1 = vpop.permute.xlu1 %2102  ;;  %6218 = vst [vmem:[#allocation2_spill] sm:$0xff] %v5311_v63  ;;  %v2373_v23 = vsel %vm310_vm2, %v5311_v63, -inf }
 0x258   : > { %2338 = vmax.xlane.f32.xlu1 %v2337_v20  ;;  %v5306_v42 = vmul.f32 %v2103_v1, %v5026_v55  ;;  %v2108_v33 = vpop.permute.xlu0 %2107  ;;  %v6219_v20 = vld [vmem:[#allocation9_spill] sm:$0xff] }
 0x25a   : > { %6216 = vst [vmem:[#allocation43_spill] sm:$0xff] %v5306_v42  ;;  %v2388_v55 = vsel %vm310_vm2, %v5306_v42, -inf }
 0x25b   : > { %2359 = vmax.xlane.f32.xlu0 %v2358_v37  ;;  %v2113_v57 = vpop.permute.xlu1 %2112  ;;  %v6221_v37 = vld [vmem:[#allocation3_spill] sm:$0xff] }
 0x25c   : > { %2344 = vmax.xlane.f32.xlu1 %v2343_v49  ;;  %v5316_v15 = vmul.f32 %v2113_v57, %v6219_v20  ;;  %v5321_v49 = vmul.f32 %v6221_v37, %v2088_v30  ;;  %v2118_v57 = vpop.permute.xlu0 %2117  ;;  %v6230_v20 = vld [vmem:[#allocation8_spill] sm:$0xff] }
 0x25e   : > { %6220 = vst [vmem:[#allocation9_spill] sm:$0xff] %v5316_v15  ;;  %6222 = vst [vmem:[#allocation3_spill] sm:$0xff] %v5321_v49  ;;  %v2379_v30 = vsel %vm310_vm2, %v5321_v49, -inf }
 0x25f   : > { %2365 = vmax.xlane.f32.xlu0 %v2364_v21  ;;  %v2123_v24 = vpop.permute.xlu1 %2122 }
 0x260   : > { %2350 = vmax.xlane.f32.xlu1 %v2349_v52  ;;  %v5326_v1 = vmul.f32 %v2123_v24, %v5048_v6  ;;  %v2394_v52 = vsel %vm310_vm2, %v5316_v15, -inf  ;;  %v6227_v6 = vld [vmem:[#allocation6_spill] sm:$0xff]  ;;  %v2128_v24 = vpop.permute.xlu0 %2127 }
 0x262   : > { %6223 = vst [vmem:[#allocation44_spill] sm:$0xff] %v5326_v1 }
 0x263   : > { %2371 = vmax.xlane.f32.xlu0 %v2370_v62  ;;  %v2133_v21 = vpop.permute.xlu1 %2132  ;;  %v6224_v62 = vld [vmem:[#allocation4_spill] sm:$0xff] }
 0x264   : > { %2356 = vmax.xlane.f32.xlu1 %v2355_v54  ;;  %v5331_v54 = vmul.f32 %v6224_v62, %v2098_v31  ;;  %v6234_v62 = vld [vmem:[#allocation13_spill] sm:$0xff] }
 0x266   : > { %6225 = vst [vmem:[#allocation4_spill] sm:$0xff] %v5331_v54  ;;  %v2385_v31 = vsel %vm310_vm2, %v5331_v54, -inf }
 0x267   : > { %2377 = vmax.xlane.f32.xlu0 %v2376_v58  ;;  %v5336_v58 = vmul.f32 %v2133_v21, %v5062_v53  ;;  %v2143_v22 = vpop.permute.xlu1 %2142 }
 0x268   : > { %2362 = vmax.xlane.f32.xlu1 %v2361_v25  ;;  %v2400_v25 = vsel %vm310_vm2, %v5326_v1, -inf }
 0x269   : > { %6226 = vst [vmem:[#allocation45_spill] sm:$0xff] %v5336_v58  ;;  %v2406_v53 = vsel %vm310_vm2, %v5336_v58, -inf }
 0x26b   : > { %2383 = vmax.xlane.f32.xlu0 %v2382_v7  ;;  %v5341_v7 = vmul.f32 %v6227_v6, %v2108_v33 }
 0x26c   : > { %2368 = vmax.xlane.f32.xlu1 %v2367_v5  ;;  %v5346_v5 = vmul.f32 %v2143_v22, %v5078_v8 }
 0x26d   : > { %6228 = vst [vmem:[#allocation6_spill] sm:$0xff] %v5341_v7  ;;  %v2391_v33 = vsel %vm310_vm2, %v5341_v7, -inf }
 0x26e   : > { %6229 = vst [vmem:[#allocation46_spill] sm:$0xff] %v5346_v5  ;;  %v2412_v37 = vsel %vm310_vm2, %v5346_v5, -inf }
 0x26f   : > { %2389 = vmax.xlane.f32.xlu0 %v2388_v55  ;;  %v5351_v55 = vmul.f32 %v6230_v20, %v2118_v57  ;;  %v5371_v20 = vpop.permute.xlu1 %2152 }
 0x270   : > { %2374 = vmax.xlane.f32.xlu1 %v2373_v23  ;;  %v6232_v23 = vld [vmem:[#allocation11_spill] sm:$0xff] }
 0x271   : > { %6231 = vst [vmem:[#allocation8_spill] sm:$0xff] %v5351_v55  ;;  %v5358_v21 = vmul.f32 %v6232_v23, %v2128_v24  ;;  %v2397_v8 = vsel %vm310_vm2, %v5351_v55, -inf }
 0x273   : > { %2395 = vmax.xlane.f32.xlu0 %v2394_v52  ;;  %6233 = vst [vmem:[#allocation11_spill] sm:$0xff] %v5358_v21  ;;  %v2138_v52 = vpop.permute.xlu0 %2137  ;;  %v2403_v57 = vsel %vm310_vm2, %v5358_v21, -inf }
 0x274   : > { %2380 = vmax.xlane.f32.xlu1 %v2379_v30  ;;  %v5363_v30 = vmul.f32 %v6234_v62, %v2138_v52 }
 0x276   : > { %6235 = vst [vmem:[#allocation13_spill] sm:$0xff] %v5363_v30  ;;  %v2409_v6 = vsel %vm310_vm2, %v5363_v30, -inf }
 0x277   : > { %2401 = vmax.xlane.f32.xlu0 %v2400_v25  ;;  %v2148_v25 = vpop.permute.xlu0 %2147 }
 0x278   : > { %2386 = vmax.xlane.f32.xlu1 %v2385_v31 }
 0x27b   : > { %2407 = vmax.xlane.f32.xlu0 %v2406_v53  ;;  %v5369_v22 = vpop.permute.xlu0 %2157 }
 0x27c   : > { %2392 = vmax.xlane.f32.xlu1 %v2391_v33 }
 0x27f   : > { %2413 = vmax.xlane.f32.xlu0 %v2412_v37 }
 0x280   : > { %2398 = vmax.xlane.f32.xlu1 %v2397_v8 }
 0x284   : > { %2404 = vmax.xlane.f32.xlu1 %v2403_v57 }
 0x288   : > { %2410 = vmax.xlane.f32.xlu1 %v2409_v6 }
 0x290   : > { %v2249_v31 = vpop.xlane.xlu0 %2248 }
 0x294   : > { %v2252_v24 = vpop.xlane.xlu0 %2251 }
 0x298   : > { %v2258_v53 = vpop.xlane.xlu0 %2257 }
 0x29c   : > { %v5373_v33 = vpop.xlane.xlu0 %2263 }
 0x29d   : > { %v2246_v37 = vpop.xlane.xlu1 %2245 }
 0x2a0   : > { %v5375_v23 = vpop.xlane.xlu0 %2269 }
 0x2a1   : > { %v2255_v8 = vpop.xlane.xlu1 %2254 }
 0x2a2   : > { %v2439_v3 = vsub.f32 %v5072_v56, %v2255_v8 }
 0x2a4   : > { %v5377_v52 = vpop.xlane.xlu0 %2275 }
 0x2a5   : > { %v2261_v62 = vpop.xlane.xlu1 %2260 }
 0x2a8   : > { %v5379_v57 = vpop.xlane.xlu0 %2281 }
 0x2a9   : > { %v2267_v30 = vpop.xlane.xlu1 %2266 }
 0x2ac   : > { %v5381_v6 = vpop.xlane.xlu0 %2287 }
 0x2ad   : > { %v5383_v21 = vpop.xlane.xlu1 %2272 }
 0x2b0   : > { %v5385_v55 = vpop.xlane.xlu0 %2293 }
 0x2b1   : > { %v5387_v5 = vpop.xlane.xlu1 %2278 }
 0x2b4   : > { %v5389_v7 = vpop.xlane.xlu0 %2299 }
 0x2b5   : > { %v5391_v58 = vpop.xlane.xlu1 %2284 }
 0x2b8   : > { %v5393_v54 = vpop.xlane.xlu0 %2305 }
 0x2b9   : > { %v5395_v1 = vpop.xlane.xlu1 %2290 }
 0x2bc   : > { %v5397_v49 = vpop.xlane.xlu0 %2311 }
 0x2bd   : > { %v5399_v15 = vpop.xlane.xlu1 %2296 }
 0x2c0   : > { %v5401_v63 = vpop.xlane.xlu0 %2317 }
 0x2c1   : > { %v5403_v42 = vpop.xlane.xlu1 %2302 }
 0x2c4   : > { %v5405_v17 = vpop.xlane.xlu0 %2323 }
 0x2c5   : > { %v5407_v2 = vpop.xlane.xlu1 %2308 }
 0x2c8   : > { %v1722_v51 = vpop.xlane.xlu0 %1721 }
 0x2c9   : > { %v1856_v61 = vadd.f32 %v1792_v12, %v1722_v51  ;;  %v5412_v14 = vpop.xlane.xlu1 %2314  ;;  %v1793_v51 = vld [vmem:[%s6109_s4 + $0x1e8] sm:$0xff] }
 0x2ca   : > { %6236 = vst [vmem:[#allocation47_spill] sm:$0xff] %v5412_v14 }
 0x2cb   : > { %2162 = vperm.xlu1 %3588, %v1856_v61  }
 0x2cc   : > { %v5414_v59 = vpop.xlane.xlu0 %2329 }
 0x2cd   : > { %v5416_v50 = vpop.xlane.xlu1 %2320 }
 0x2ce   : > { %6237 = vst [vmem:[#allocation48_spill] sm:$0xff] %v5416_v50  ;;  %v6241_v50 = vld [vmem:[#allocation7_spill] sm:$0xff] }
 0x2cf   : > { %v2438_v18 = vsub.f32 %v6241_v50, %v2252_v24  ;;  %v6244_v50 = vld [vmem:[#allocation12_spill] sm:$0xff]  ;;  %v6245_v24 = vld [vmem:[#allocation15_spill] sm:$0xff] }
 0x2d0   : > { %v1728_v19 = vpop.xlane.xlu0 %1727 }
 0x2d1   : > { %v1858_v10 = vadd.f32 %v1794_v43, %v1728_v19  ;;  %v5421_v40 = vpop.xlane.xlu1 %2326  ;;  %v6240_v19 = vld [vmem:[#allocation5_spill] sm:$0xff]  ;;  %v2504_v14 = vmul.f32 1.442695, %v2438_v18 }
 0x2d2   : > { %6238 = vst [vmem:[#allocation49_spill] sm:$0xff] %v5421_v40  ;;  %v2437_v43 = vsub.f32 %v6240_v19, %v2249_v31  ;;  %v2442_v31 = vsub.f32 %v6244_v50, %v5373_v33  ;;  %v2451_v19 = vsub.f32 %v5150_v47, %v5395_v1  ;;  %v2453_v47 = vsub.f32 %v5163_v39, %v5399_v15 }
 0x2d3   : > { %2172 = vperm.xlu1 %3588, %v1858_v10   ;;  %v2436_v10 = vsub.f32 %v5058_v36, %v2246_v37  ;;  %v2443_v36 = vsub.f32 %v5100_v46, %v2267_v30  ;;  %v5453_v46 = vmul.f32 %v5371_v20, %v5104_v11  ;;  %v2444_v30 = vsub.f32 %v5065_v27, %v5375_v23 }
 0x2d4   : > { %v2502_v40 = vmul.f32 1.442695, %v2437_v43  ;;  %v2452_v39 = vsub.f32 %v5119_v16, %v5385_v55  ;;  %v2534_v15 = vmul.f32 1.442695, %v2453_v47 }
 0x2d5   : > { %v1725_v12 = vpop.xlane.xlu1 %1724  ;;  %v2514_v18 = vmul.f32 1.442695, %v2443_v36  ;;  %v2516_v11 = vmul.f32 1.442695, %v2444_v30  ;;  %v2418_v27 = vsel %vm310_vm2, %v5453_v46, -inf }
 0x2d6   : > { %v1857_v60 = vadd.f32 %v1793_v51, %v1725_v12  ;;  %v2500_v51 = vmul.f32 1.442695, %v2436_v10  ;;  %3590 = vpow2.f32 %v2502_v40  ;;  %v2441_v12 = vsub.f32 %v5086_v32, %v2261_v62  ;;  %v5481_v62 = vpop.xlane.xlu0 %2335 }
 0x2d7   : > { %v5447_v32 = vmul.f32 %v5090_v28, %v5369_v22  ;;  %v2445_v40 = vsub.f32 %v5112_v0, %v5383_v21  ;;  %v2447_v28 = vsub.f32 %v5124_v4, %v5387_v5  ;;  %v2449_v5 = vsub.f32 %v5137_v34, %v5391_v58 }
 0x2d8   : > { %2167 = vperm.xlu0 %3589, %v1857_v60   ;;  %v2506_v60 = vmul.f32 1.442695, %v2439_v3  ;;  %3592 = vpow2.f32 %v2500_v51 }
 0x2d9   : > { %v5426_v61 = vpop.xlane.xlu1 %2332  ;;  %v2421_v0 = vsel %vm310_vm2, %v5447_v32, -inf  ;;  %v2522_v4 = vmul.f32 1.442695, %v2447_v28  ;;  %v2526_v58 = vmul.f32 1.442695, %v2449_v5 }
 0x2da   : > { %6239 = vst [vmem:[#allocation50_spill] sm:$0xff] %v5426_v61  ;;  %v6242_v61 = vld [vmem:[#allocation14_spill] sm:$0xff]  ;;  %3594 = vpow2.f32 %v2506_v60 }
 0x2db   : > { %v5437_v41 = vmul.f32 %v6242_v61, %v2148_v25  ;;  %3596 = vpow2.f32 %v2504_v14  ;;  %v2512_v14 = vmul.f32 1.442695, %v2442_v31  ;;  %v2518_v25 = vmul.f32 1.442695, %v2445_v40 }
 0x2dc   : > { %v2532_v40 = vmul.f32 1.442695, %v2452_v39 }
 0x2dd   : > { %v1731_v35 = vpop.xlane.xlu1 %1730  ;;  %v2415_v3 = vsel %vm310_vm2, %v5437_v41, -inf }
 0x2de   : > { %v1859_v26 = vadd.f32 %v1795_v13, %v1731_v35  ;;  %v6243_v35 = vld [vmem:[#allocation10_spill] sm:$0xff]  ;;  %v2510_v13 = vmul.f32 1.442695, %v2441_v12  ;;  %v2530_v12 = vmul.f32 1.442695, %v2451_v19 }
 0x2e0   : > { %2177 = vperm.xlu0 %3589, %v1859_v26   ;;  %v2440_v26 = vsub.f32 %v6243_v35, %v2258_v53  ;;  %3598 = vpow2.f32 %v2510_v13  ;;  %v2446_v53 = vsub.f32 %v6245_v24, %v5377_v52  ;;  %v2448_v52 = vsub.f32 %v5093_v45, %v5379_v57  ;;  %v5507_v13 = vpop.xlane.xlu0 %2341 }
 0x2e1   : > { %v5459_v22 = vpop.xlane.xlu1 %2338  ;;  %v2450_v57 = vsub.f32 %v5107_v44, %v5381_v6 }
 0x2e2   : > { %v2508_v56 = vmul.f32 1.442695, %v2440_v26  ;;  %v2520_v8 = vmul.f32 1.442695, %v2446_v53  ;;  %v2524_v45 = vmul.f32 1.442695, %v2448_v52 }
 0x2e3   : > { %v5463_v21 = vpop.eup %3590  ;;  %v2528_v44 = vmul.f32 1.442695, %v2450_v57 }
 0x2e4   : > { %3600 = vpow2.f32 %v2508_v56  ;;  %v2631_v33 = vsel %vm310_vm2, %v5463_v21, 0.0 }
 0x2e5   : > { %3602 = vpow2.f32 %v2514_v18  ;;  %v5469_v20 = vpop.eup %3592  ;;  %v5477_v23 = vpop.xlane.xlu1 %2344 }
 0x2e6   : > { %3604 = vpow2.f32 %v2512_v14  ;;  %v2628_v61 = vsel %vm310_vm2, %v5469_v20, 0.0 }
 0x2e7   : > { %3606 = vpow2.f32 %v2518_v25  ;;  %v5475_v37 = vpop.eup %3594 }
 0x2e8   : > { %3608 = vpow2.f32 %v2516_v11  ;;  %v5485_v34 = vpop.eup %3596  ;;  %v2637_v43 = vsel %vm310_vm2, %v5475_v37, 0.0 }
 0x2e9   : > { %3610 = vpow2.f32 %v2522_v4  ;;  %v2634_v51 = vsel %vm310_vm2, %v5485_v34, 0.0  ;;  %v5501_v1 = vpop.xlane.xlu1 %2350 }
 0x2ea   : > { %3612 = vpow2.f32 %v2520_v8 }
 0x2eb   : > { %3614 = vpow2.f32 %v2526_v58 }
 0x2ec   : > { %3616 = vpow2.f32 %v2524_v45 }
 0x2ed   : > { %v5491_v10 = vpop.eup %3598  ;;  %3618 = vpow2.f32 %v2530_v12  ;;  %v5519_v31 = vpop.xlane.xlu1 %2356 }
 0x2ee   : > { %v2643_v35 = vsel %vm310_vm2, %v5491_v10, 0.0  ;;  %3620 = vpow2.f32 %v2528_v44 }
 0x2ef   : > { %3622 = vpow2.f32 %v2534_v15 }
 0x2f0   : > { %3624 = vpow2.f32 %v2532_v40 }
 0x2f1   : > { %v5497_v60 = vpop.eup %3600  ;;  %v5533_v25 = vpop.xlane.xlu1 %2362 }
 0x2f2   : > { %v5505_v26 = vpop.eup %3602  ;;  %v2640_v6 = vsel %vm310_vm2, %v5497_v60, 0.0 }
 0x2f3   : > { %v5511_v36 = vpop.eup %3604  ;;  %v2649_v56 = vsel %vm310_vm2, %v5505_v26, 0.0 }
 0x2f4   : > { %v5517_v50 = vpop.eup %3606  ;;  %v2646_v16 = vsel %vm310_vm2, %v5511_v36, 0.0 }
 0x2f5   : > { %v5523_v18 = vpop.eup %3608  ;;  %v2655_v55 = vsel %vm310_vm2, %v5517_v50, 0.0 }
 0x2f6   : > { %v5529_v14 = vpop.eup %3610  ;;  %v2652_v28 = vsel %vm310_vm2, %v5523_v18, 0.0 }
 0x2f7   : > { %2416 = vmax.xlane.f32.xlu1 %v2415_v3  ;;  %v5521_v3 = vpop.xlane.xlu0 %2347  ;;  %v5531_v30 = vpop.eup %3612 }
 0x2f8   : > { %v5539_v11 = vpop.eup %3614 }
 0x2f9   : > { %v5543_v53 = vpop.eup %3616  ;;  %v2667_v4 = vsel %vm310_vm2, %v5539_v11, 0.0 }
 0x2fa   : > { %6246 = vst [vmem:[#allocation5_spill] sm:$0xff] %v5543_v53  ;;  %v5549_v5 = vpop.eup %3618 }
 0x2fb   : > { %2422 = vmax.xlane.f32.xlu1 %v2421_v0  ;;  %v2661_v0 = vsel %vm310_vm2, %v5529_v14, 0.0  ;;  %v5541_v24 = vpop.xlane.xlu0 %2353  ;;  %v5555_v52 = vpop.eup %3620  ;;  %v2673_v58 = vsel %vm310_vm2, %v5549_v5, 0.0 }
 0x2fc   : > { %6247 = vst [vmem:[#allocation7_spill] sm:$0xff] %v5555_v52  ;;  %v5561_v19 = vpop.eup %3622  ;;  %v2670_v45 = vsel %vm310_vm2, %v5555_v52, 0.0  ;;  %v6251_v52 = vld [vmem:[#allocation17_spill] sm:$0xff] }
 0x2fd   : > { %6248 = vst [vmem:[#allocation14_spill] sm:$0xff] %v5561_v19  ;;  %v2679_v57 = vsel %vm310_vm2, %v5561_v19, 0.0 }
 0x2ff   : > { %2419 = vmax.xlane.f32.xlu0 %v2418_v27  ;;  %2632 = vadd.xlane.f32.xlu1 %v2631_v33  ;;  %v2658_v27 = vsel %vm310_vm2, %v5531_v30, 0.0  ;;  %v5551_v33 = vpop.xlane.xlu1 %2368  ;;  %v5553_v8 = vpop.xlane.xlu0 %2359 }
 0x303   : > { %2629 = vadd.xlane.f32.xlu0 %v2628_v61  ;;  %2638 = vadd.xlane.f32.xlu1 %v2637_v43  ;;  %v2664_v61 = vsel %vm310_vm2, %v5543_v53, 0.0  ;;  %v5563_v43 = vpop.xlane.xlu1 %2374  ;;  %v5571_v12 = vpop.xlane.xlu0 %2365 }
 0x307   : > { %2635 = vadd.xlane.f32.xlu0 %v2634_v51  ;;  %2644 = vadd.xlane.f32.xlu1 %v2643_v35  ;;  %v5569_v51 = vpop.eup %3624  ;;  %v5575_v35 = vpop.xlane.xlu1 %2380 }
 0x308   : > { %6249 = vst [vmem:[#allocation10_spill] sm:$0xff] %v5569_v51  ;;  %v2676_v47 = vsel %vm310_vm2, %v5569_v51, 0.0  ;;  %v5577_v44 = vpop.xlane.xlu0 %2371 }
 0x30b   : > { %2641 = vadd.xlane.f32.xlu0 %v2640_v6  ;;  %2650 = vadd.xlane.f32.xlu1 %v2649_v56  ;;  %v5579_v6 = vpop.xlane.xlu1 %2386 }
 0x30c   : > { %v5581_v39 = vpop.xlane.xlu0 %2377 }
 0x30f   : > { %2647 = vadd.xlane.f32.xlu0 %v2646_v16  ;;  %2656 = vadd.xlane.f32.xlu1 %v2655_v55  ;;  %v5583_v15 = vpop.xlane.xlu1 %2392 }
 0x310   : > { %v5585_v56 = vpop.xlane.xlu0 %2383 }
 0x313   : > { %2653 = vadd.xlane.f32.xlu0 %v2652_v28  ;;  %2662 = vadd.xlane.f32.xlu1 %v2661_v0  ;;  %v5587_v40 = vpop.xlane.xlu1 %2398  ;;  %v2454_v28 = vsub.f32 %v5131_v48, %v5389_v7  ;;  %v6253_v7 = vld [vmem:[#allocation21_spill] sm:$0xff] }
 0x314   : > { %v5589_v16 = vpop.xlane.xlu0 %2389 }
 0x317   : > { %2659 = vadd.xlane.f32.xlu0 %v2658_v27  ;;  %2668 = vadd.xlane.f32.xlu1 %v2667_v4  ;;  %v5591_v55 = vpop.xlane.xlu1 %2404  ;;  %v2536_v27 = vmul.f32 1.442695, %v2454_v28  ;;  %v2456_v4 = vsub.f32 %v5144_v38, %v5393_v54  ;;  %v2460_v28 = vsub.f32 %v6253_v7, %v5401_v63  ;;  %v2455_v54 = vsub.f32 %v5174_v29, %v5403_v42 }
 0x318   : > { %v5595_v0 = vpop.xlane.xlu0 %2395  ;;  %v2464_v29 = vsub.f32 %v5204_v9, %v5414_v59 }
 0x319   : > { %3626 = vpow2.f32 %v2536_v27  ;;  %v6254_v27 = vld [vmem:[#allocation22_spill] sm:$0xff] }
 0x31b   : > { %2665 = vadd.xlane.f32.xlu0 %v2664_v61  ;;  %2674 = vadd.xlane.f32.xlu1 %v2673_v58  ;;  %v5599_v61 = vpop.xlane.xlu1 %2410 }
 0x31c   : > { %v5601_v58 = vpop.xlane.xlu0 %2401 }
 0x31f   : > { %2671 = vadd.xlane.f32.xlu0 %v2670_v45  ;;  %2680 = vadd.xlane.f32.xlu1 %v2679_v57  ;;  %v2540_v45 = vmul.f32 1.442695, %v2456_v4  ;;  %v6250_v57 = vld [vmem:[#allocation20_spill] sm:$0xff]  ;;  %v6255_v4 = vld [vmem:[#allocation23_spill] sm:$0xff] }
 0x320   : > { %v5610_v53 = vpop.xlane.xlu0 %2407 }
 0x321   : > { %3628 = vpow2.f32 %v2540_v45  ;;  %v2457_v45 = vsub.f32 %v6255_v4, %v5407_v2  ;;  %v6258_v2 = vld [vmem:[#allocation24_spill] sm:$0xff] }
 0x323   : > { %2677 = vadd.xlane.f32.xlu0 %v2676_v47  ;;  %v2458_v47 = vsub.f32 %v6250_v57, %v5397_v49  ;;  %v2548_v49 = vmul.f32 1.442695, %v2460_v28  ;;  %v6257_v28 = vld [vmem:[#allocation47_spill] sm:$0xff] }
 0x324   : > { %v5620_v63 = vpop.xlane.xlu0 %2413 }
 0x325   : > { %v2544_v48 = vmul.f32 1.442695, %v2458_v47  ;;  %v6256_v47 = vld [vmem:[#allocation19_spill] sm:$0xff] }
 0x327   : > { %3630 = vpow2.f32 %v2544_v48  ;;  %v5629_v48 = vpop.eup %3626 }
 0x328   : > { %3632 = vpow2.f32 %v2548_v49  ;;  %v2556_v49 = vmul.f32 1.442695, %v2464_v29  ;;  %v2682_v59 = vsel %vm310_vm2, %v5629_v48, 0.0  ;;  %v6264_v29 = vld [vmem:[#allocation28_spill] sm:$0xff] }
 0x346   : > { %v2163_v51 = vpop.permute.xlu1 %2162 }
 0x347   : > { %v5606_v19 = vmul.f32 %v2163_v51, %v6251_v52  ;;  %v2462_v52 = vsub.f32 %v6254_v27, %v5405_v17  ;;  %v2538_v51 = vmul.f32 1.442695, %v2455_v54  ;;  %v2542_v17 = vmul.f32 1.442695, %v2457_v45  ;;  %v6259_v27 = vld [vmem:[#allocation16_spill] sm:$0xff] }
 0x348   : > { %v6262_v45 = vld [vmem:[#allocation48_spill] sm:$0xff] }
 0x349   : > { %6252 = vst [vmem:[#allocation12_spill] sm:$0xff] %v5606_v19  ;;  %v2424_v38 = vsel %vm310_vm2, %v5606_v19, -inf  ;;  %v2552_v19 = vmul.f32 1.442695, %v2462_v52  ;;  %3634 = vpow2.f32 %v2538_v51  ;;  %v6260_v52 = vld [vmem:[#allocation27_spill] sm:$0xff] }
 0x34a   : > { %2425 = vmax.xlane.f32.xlu0 %v2424_v38  ;;  %v2459_v38 = vsub.f32 %v6258_v2, %v6257_v28  ;;  %v2466_v9 = vsub.f32 %v6260_v52, %v5481_v62  ;;  %v2468_v62 = vsub.f32 %v6264_v29, %v5507_v13 }
 0x34b   : > { %3636 = vpow2.f32 %v2552_v19 }
 0x34c   : > { %3638 = vpow2.f32 %v2542_v17  ;;  %v2546_v51 = vmul.f32 1.442695, %v2459_v38  ;;  %v2560_v19 = vmul.f32 1.442695, %v2466_v9  ;;  %v6265_v38 = vld [vmem:[#allocation49_spill] sm:$0xff]  ;;  %v6268_v9 = vld [vmem:[#allocation30_spill] sm:$0xff] }
 0x34d   : > { %3640 = vpow2.f32 %v2556_v49  ;;  %v2564_v49 = vmul.f32 1.442695, %v2468_v62  ;;  %v2470_v13 = vsub.f32 %v6268_v9, %v5521_v3  ;;  %v6271_v3 = vld [vmem:[#allocation31_spill] sm:$0xff] }
 0x34e   : > { %v2173_v57 = vpop.permute.xlu1 %2172  ;;  %3642 = vpow2.f32 %v2546_v51  ;;  %v2472_v62 = vsub.f32 %v6271_v3, %v5541_v24  ;;  %v6273_v24 = vld [vmem:[#allocation33_spill] sm:$0xff] }
 0x34f   : > { %v5623_v7 = vmul.f32 %v2173_v57, %v6256_v47  ;;  %v5640_v57 = vpop.eup %3628  ;;  %v6263_v47 = vld [vmem:[#allocation25_spill] sm:$0xff]  ;;  %3644 = vpow2.f32 %v2560_v19  ;;  %v2568_v19 = vmul.f32 1.442695, %v2470_v13  ;;  %v2474_v13 = vsub.f32 %v6273_v24, %v5553_v8  ;;  %v6275_v8 = vld [vmem:[#allocation35_spill] sm:$0xff] }
 0x350   : > { %6261 = vst [vmem:[#allocation15_spill] sm:$0xff] %v5640_v57  ;;  %v2461_v28 = vsub.f32 %v6263_v47, %v6262_v45  ;;  %v2688_v2 = vsel %vm310_vm2, %v5640_v57, 0.0  ;;  %v6267_v45 = vld [vmem:[#allocation18_spill] sm:$0xff]  ;;  %v6270_v57 = vld [vmem:[#allocation29_spill] sm:$0xff] }
 0x351   : > { %v2430_v42 = vsel %vm310_vm2, %v5623_v7, -inf }
 0x352   : > { %2431 = vmax.xlane.f32.xlu0 %v2430_v42  ;;  %v2550_v17 = vmul.f32 1.442695, %v2461_v28  ;;  %v6269_v28 = vld [vmem:[#allocation50_spill] sm:$0xff] }
 0x353   : > { %v2168_v54 = vpop.permute.xlu0 %2167 }
 0x354   : > { %v5634_v4 = vmul.f32 %v6259_v27, %v2168_v54  ;;  %v5650_v54 = vpop.eup %3630  ;;  %v6266_v27 = vld [vmem:[#allocation26_spill] sm:$0xff]  ;;  %3646 = vpow2.f32 %v2550_v17 }
 0x355   : > { %v2463_v52 = vsub.f32 %v6266_v27, %v6265_v38  ;;  %v5661_v29 = vpop.eup %3632  ;;  %v2465_v38 = vsub.f32 %v6270_v57, %v6269_v28  ;;  %3648 = vpow2.f32 %v2564_v49  ;;  %v6272_v57 = vld [vmem:[#allocation32_spill] sm:$0xff]  ;;  %v2572_v49 = vmul.f32 1.442695, %v2472_v62 }
 0x356   : > { %2683 = vadd.xlane.f32.xlu0 %v2682_v59  ;;  %v2427_v42 = vsel %vm310_vm2, %v5634_v4, -inf  ;;  %v5667_v27 = vpop.eup %3634  ;;  %v2476_v62 = vsub.f32 %v6275_v8, %v5571_v12  ;;  %v6277_v12 = vld [vmem:[#allocation37_spill] sm:$0xff] }
 0x357   : > { %2428 = vmax.xlane.f32.xlu1 %v2427_v42  ;;  %v2694_v42 = vsel %vm310_vm2, %v5650_v54, 0.0  ;;  %v2554_v51 = vmul.f32 1.442695, %v2463_v52  ;;  %v2558_v52 = vmul.f32 1.442695, %v2465_v38  ;;  %v2685_v9 = vsel %vm310_vm2, %v5667_v27, 0.0 }
 0x358   : > { %v5673_v17 = vpop.eup %3636 }
 0x359   : > { %3650 = vpow2.f32 %v2554_v51  ;;  %v2706_v28 = vsel %vm310_vm2, %v5673_v17, 0.0 }
 0x35a   : > { %2689 = vadd.xlane.f32.xlu0 %v2688_v2  ;;  %3652 = vpow2.f32 %v2568_v19  ;;  %v2576_v19 = vmul.f32 1.442695, %v2474_v13  ;;  %v2478_v13 = vsub.f32 %v6277_v12, %v5577_v44  ;;  %v6279_v44 = vld [vmem:[#allocation39_spill] sm:$0xff] }
 0x35b   : > { %v2178_v59 = vpop.permute.xlu0 %2177  ;;  %3654 = vpow2.f32 %v2558_v52 }
 0x35c   : > { %v5655_v47 = vmul.f32 %v6267_v45, %v2178_v59  ;;  %v2700_v59 = vsel %vm310_vm2, %v5661_v29, 0.0  ;;  %v2467_v45 = vsub.f32 %v6272_v57, %v5459_v22  ;;  %v6274_v22 = vld [vmem:[#allocation34_spill] sm:$0xff]  ;;  %3656 = vpow2.f32 %v2572_v49 }
 0x35d   : > { %v2580_v49 = vmul.f32 1.442695, %v2476_v62  ;;  %v2480_v62 = vsub.f32 %v6279_v44, %v5581_v39  ;;  %v6281_v39 = vld [vmem:[#allocation41_spill] sm:$0xff] }
 0x35e   : > { %2695 = vadd.xlane.f32.xlu0 %v2694_v42  ;;  %v2433_v2 = vsel %vm310_vm2, %v5655_v47, -inf  ;;  %v5679_v42 = vpop.eup %3638  ;;  %v2562_v38 = vmul.f32 1.442695, %v2467_v45 }
 0x35f   : > { %2434 = vmax.xlane.f32.xlu1 %v2433_v2  ;;  %v5685_v51 = vpop.eup %3640  ;;  %v2469_v2 = vsub.f32 %v6274_v22, %v5477_v23  ;;  %v2691_v3 = vsel %vm310_vm2, %v5679_v42, 0.0  ;;  %v6276_v23 = vld [vmem:[#allocation36_spill] sm:$0xff] }
 0x360   : > { %v2712_v57 = vsel %vm310_vm2, %v5685_v51, 0.0  ;;  %3658 = vpow2.f32 %v2562_v38 }
 0x361   : > { %v2566_v45 = vmul.f32 1.442695, %v2469_v2  ;;  %3660 = vpow2.f32 %v2576_v19  ;;  %v2584_v19 = vmul.f32 1.442695, %v2478_v13  ;;  %v2482_v13 = vsub.f32 %v6281_v39, %v5585_v56  ;;  %v6283_v56 = vld [vmem:[#allocation43_spill] sm:$0xff] }
 0x362   : > { %2701 = vadd.xlane.f32.xlu0 %v2700_v59  ;;  %v5691_v59 = vpop.eup %3642 }
 0x363   : > { %2686 = vadd.xlane.f32.xlu1 %v2685_v9  ;;  %v5697_v52 = vpop.eup %3644  ;;  %v2471_v9 = vsub.f32 %v6276_v23, %v5501_v1  ;;  %v2697_v24 = vsel %vm310_vm2, %v5691_v59, 0.0  ;;  %3662 = vpow2.f32 %v2566_v45  ;;  %v6278_v1 = vld [vmem:[#allocation38_spill] sm:$0xff] }
 0x364   : > { %v2718_v22 = vsel %vm310_vm2, %v5697_v52, 0.0  ;;  %3664 = vpow2.f32 %v2580_v49  ;;  %v2588_v49 = vmul.f32 1.442695, %v2480_v62  ;;  %v2484_v62 = vsub.f32 %v6283_v56, %v5589_v16  ;;  %v6285_v16 = vld [vmem:[#allocation9_spill] sm:$0xff] }
 0x365   : > { %v2570_v2 = vmul.f32 1.442695, %v2471_v9 }
 0x366   : > { %2707 = vadd.xlane.f32.xlu0 %v2706_v28  ;;  %v5703_v28 = vpop.eup %3646 }
 0x367   : > { %2692 = vadd.xlane.f32.xlu1 %v2691_v3  ;;  %v5709_v38 = vpop.eup %3648  ;;  %v2473_v3 = vsub.f32 %v6278_v1, %v5519_v31  ;;  %v2703_v8 = vsel %vm310_vm2, %v5703_v28, 0.0  ;;  %3666 = vpow2.f32 %v2570_v2  ;;  %v6280_v31 = vld [vmem:[#allocation40_spill] sm:$0xff] }
 0x368   : > { %v2724_v23 = vsel %vm310_vm2, %v5709_v38, 0.0  ;;  %3668 = vpow2.f32 %v2584_v19  ;;  %v2592_v19 = vmul.f32 1.442695, %v2482_v13  ;;  %v2486_v13 = vsub.f32 %v6285_v16, %v5595_v0 }
 0x369   : > { %v2574_v9 = vmul.f32 1.442695, %v2473_v3 }
 0x36a   : > { %2713 = vadd.xlane.f32.xlu0 %v2712_v57  ;;  %v5715_v57 = vpop.eup %3650 }
 0x36b   : > { %2698 = vadd.xlane.f32.xlu1 %v2697_v24  ;;  %v5721_v45 = vpop.eup %3652  ;;  %v2475_v24 = vsub.f32 %v6280_v31, %v5533_v25  ;;  %v2709_v12 = vsel %vm310_vm2, %v5715_v57, 0.0  ;;  %3670 = vpow2.f32 %v2574_v9  ;;  %v6282_v25 = vld [vmem:[#allocation42_spill] sm:$0xff] }
 0x36c   : > { %v2730_v1 = vsel %vm310_vm2, %v5721_v45, 0.0  ;;  %3672 = vpow2.f32 %v2588_v49  ;;  %v2596_v49 = vmul.f32 1.442695, %v2484_v62 }
 0x36d   : > { %v2578_v3 = vmul.f32 1.442695, %v2475_v24 }
 0x36e   : > { %2719 = vadd.xlane.f32.xlu0 %v2718_v22  ;;  %v5727_v22 = vpop.eup %3654 }
 0x36f   : > { %2704 = vadd.xlane.f32.xlu1 %v2703_v8  ;;  %v5733_v2 = vpop.eup %3656  ;;  %v2477_v8 = vsub.f32 %v6282_v25, %v5551_v33  ;;  %v2715_v44 = vsel %vm310_vm2, %v5727_v22, 0.0  ;;  %3674 = vpow2.f32 %v2578_v3  ;;  %v6284_v33 = vld [vmem:[#allocation2_spill] sm:$0xff] }
 0x370   : > { %v2736_v31 = vsel %vm310_vm2, %v5733_v2, 0.0  ;;  %3676 = vpow2.f32 %v2592_v19  ;;  %v6288_v19 = vld [vmem:[#allocation44_spill] sm:$0xff] }
 0x371   : > { %v2582_v24 = vmul.f32 1.442695, %v2477_v8  ;;  %v2488_v0 = vsub.f32 %v6288_v19, %v5601_v58  ;;  %v6290_v58 = vld [vmem:[#allocation45_spill] sm:$0xff] }
 0x372   : > { %2725 = vadd.xlane.f32.xlu0 %v2724_v23  ;;  %v5739_v23 = vpop.eup %3658 }
 0x373   : > { %2710 = vadd.xlane.f32.xlu1 %v2709_v12  ;;  %v5745_v9 = vpop.eup %3660  ;;  %v2479_v12 = vsub.f32 %v6284_v33, %v5563_v43  ;;  %v2721_v39 = vsel %vm310_vm2, %v5739_v23, 0.0  ;;  %3678 = vpow2.f32 %v2582_v24  ;;  %v6286_v43 = vld [vmem:[#allocation3_spill] sm:$0xff]  ;;  %v2600_v33 = vmul.f32 1.442695, %v2486_v13  ;;  %v6289_v24 = vld [vmem:[#allocation4_spill] sm:$0xff] }
 0x374   : > { %v2742_v25 = vsel %vm310_vm2, %v5745_v9, 0.0  ;;  %3680 = vpow2.f32 %v2596_v49  ;;  %v2490_v49 = vsub.f32 %v6290_v58, %v5610_v53  ;;  %v2604_v13 = vmul.f32 1.442695, %v2488_v0 }
 0x375   : > { %v2586_v8 = vmul.f32 1.442695, %v2479_v12  ;;  %v2483_v12 = vsub.f32 %v6289_v24, %v5579_v6  ;;  %v6291_v6 = vld [vmem:[#allocation6_spill] sm:$0xff] }
 0x376   : > { %2731 = vadd.xlane.f32.xlu0 %v2730_v1  ;;  %v5751_v1 = vpop.eup %3662 }
 0x377   : > { %2716 = vadd.xlane.f32.xlu1 %v2715_v44  ;;  %v5757_v3 = vpop.eup %3664  ;;  %v2481_v44 = vsub.f32 %v6286_v43, %v5575_v35  ;;  %v2727_v56 = vsel %vm310_vm2, %v5751_v1, 0.0  ;;  %3682 = vpow2.f32 %v2586_v8  ;;  %v2594_v24 = vmul.f32 1.442695, %v2483_v12  ;;  %v6292_v8 = vld [vmem:[#allocation46_spill] sm:$0xff]  ;;  %v6293_v12 = vld [vmem:[#allocation8_spill] sm:$0xff] }
 0x378   : > { %v2748_v35 = vsel %vm310_vm2, %v5757_v3, 0.0  ;;  %3684 = vpow2.f32 %v2600_v33 }
 0x379   : > { %v2590_v16 = vmul.f32 1.442695, %v2481_v44  ;;  %v2492_v44 = vsub.f32 %v6292_v8, %v5620_v63  ;;  %v2487_v63 = vsub.f32 %v6293_v12, %v5587_v40  ;;  %v6294_v40 = vld [vmem:[#allocation11_spill] sm:$0xff] }
 0x37a   : > { %2737 = vadd.xlane.f32.xlu0 %v2736_v31  ;;  %v5763_v31 = vpop.eup %3666 }
 0x37b   : > { %2722 = vadd.xlane.f32.xlu1 %v2721_v39  ;;  %6287 = vst [vmem:[#allocation20_spill] sm:$0xff] %v5763_v31  ;;  %v5773_v39 = vpop.eup %3668  ;;  %3686 = vpow2.f32 %v2590_v16 }
 0x37c   : > { %v5777_v43 = vpop.eup %3670  ;;  %3688 = vpow2.f32 %v2604_v13 }
 0x37d   : > { %v2739_v53 = vsel %vm310_vm2, %v5777_v43, 0.0  ;;  %3690 = vpow2.f32 %v2594_v24  ;;  %v2602_v24 = vmul.f32 1.442695, %v2487_v63 }
 0x37e   : > { %2743 = vadd.xlane.f32.xlu0 %v2742_v25  ;;  %v2733_v25 = vsel %vm310_vm2, %v5763_v31, 0.0  ;;  %v5789_v31 = vpop.eup %3672 }
 0x37f   : > { %2728 = vadd.xlane.f32.xlu1 %v2727_v56  ;;  %v2485_v56 = vsub.f32 %v6291_v6, %v5583_v15  ;;  %v5793_v0 = vpop.eup %3674  ;;  %v2608_v15 = vmul.f32 1.442695, %v2490_v49  ;;  %v2612_v6 = vmul.f32 1.442695, %v2492_v44  ;;  %v2760_v16 = vsel %vm310_vm2, %v5789_v31, 0.0 }
 0x380   : > { %v5767_v62 = vpop.xlane.xlu1 %2416  ;;  %v5800_v8 = vpop.eup %3676  ;;  %v2745_v49 = vsel %vm310_vm2, %v5793_v0, 0.0 }
 0x381   : > { %v2598_v33 = vmul.f32 1.442695, %v2485_v56  ;;  %v5804_v13 = vpop.eup %3678  ;;  %v2489_v56 = vsub.f32 %v6294_v40, %v5591_v55  ;;  %v2766_v12 = vsel %vm310_vm2, %v5800_v8, 0.0 }
 0x382   : > { %2749 = vadd.xlane.f32.xlu0 %v2748_v35  ;;  %v2754_v35 = vsel %vm310_vm2, %v5773_v39, 0.0  ;;  %v2751_v55 = vsel %vm310_vm2, %v5804_v13, 0.0 }
 0x383   : > { %2734 = vadd.xlane.f32.xlu1 %v2733_v25  ;;  %v2606_v63 = vmul.f32 1.442695, %v2489_v56 }
 0x384   : > { %v5783_v19 = vpop.xlane.xlu1 %2422 }
 0x386   : > { %2755 = vadd.xlane.f32.xlu0 %v2754_v35 }
 0x387   : > { %2740 = vadd.xlane.f32.xlu1 %v2739_v53 }
 0x388   : > { %v2633_v25 = vpop.xlane.xlu1 %2632  ;;  %v2420_v58 = vpop.xlane.xlu0 %2419 }
 0x389   : > { %3692 = vrcp.f32 %v2633_v25  ;;  %v2494_v44 = vsub.f32 %v5453_v46, %v2420_v58  ;;  %v6296_v46 = vld [vmem:[#allocation13_spill] sm:$0xff] }
 0x38a   : > { %2761 = vadd.xlane.f32.xlu0 %v2760_v16  ;;  %3694 = vpow2.f32 %v2608_v15  ;;  %v5815_v15 = vpop.eup %3680  ;;  %v2491_v25 = vsub.f32 %v6296_v46, %v5599_v61 }
 0x38b   : > { %2746 = vadd.xlane.f32.xlu1 %v2745_v49  ;;  %3696 = vpow2.f32 %v2598_v33  ;;  %v5819_v33 = vpop.eup %3682  ;;  %v2616_v58 = vmul.f32 1.442695, %v2494_v44  ;;  %v2772_v49 = vsel %vm310_vm2, %v5815_v15, 0.0  ;;  %v2493_v44 = vsub.f32 %v5437_v41, %v5767_v62 }
 0x38c   : > { %v2639_v35 = vpop.xlane.xlu1 %2638  ;;  %v2630_v53 = vpop.xlane.xlu0 %2629  ;;  %3698 = vpow2.f32 %v2612_v6  ;;  %v2757_v56 = vsel %vm310_vm2, %v5819_v33, 0.0  ;;  %v2610_v61 = vmul.f32 1.442695, %v2491_v25 }
 0x38d   : > { %3700 = vrcp.f32 %v2639_v35  ;;  %v5827_v40 = vpop.eup %3684  ;;  %v2614_v62 = vmul.f32 1.442695, %v2493_v44 }
 0x38e   : > { %2767 = vadd.xlane.f32.xlu0 %v2766_v12  ;;  %3702 = vrcp.f32 %v2630_v53 }
 0x38f   : > { %2752 = vadd.xlane.f32.xlu1 %v2751_v55  ;;  %3704 = vpow2.f32 %v2602_v24  ;;  %v5831_v24 = vpop.eup %3686  ;;  %v2778_v55 = vsel %vm310_vm2, %v5827_v40, 0.0 }
 0x390   : > { %v2645_v6 = vpop.xlane.xlu1 %2644  ;;  %v2636_v16 = vpop.xlane.xlu0 %2635 }
 0x391   : > { %3706 = vrcp.f32 %v2645_v6  ;;  %v5835_v12 = vpop.eup %3688 }
 0x392   : > { %3708 = vrcp.f32 %v2636_v16  ;;  %2773 = vadd.xlane.f32.xlu0 %v2772_v49  ;;  %v5839_v46 = vpop.eup %3690 }
 0x393   : > { %3710 = vpow2.f32 %v2606_v63  ;;  %2758 = vadd.xlane.f32.xlu1 %v2757_v56  ;;  %v2763_v63 = vsel %vm310_vm2, %v5831_v24, 0.0 }
 0x394   : > { %3712 = vpow2.f32 %v2616_v58  ;;  %v2651_v35 = vpop.xlane.xlu1 %2650  ;;  %v2642_v53 = vpop.xlane.xlu0 %2641  ;;  %v2495_v58 = vsub.f32 %v5447_v32, %v5783_v19  ;;  %v2769_v32 = vsel %vm310_vm2, %v5839_v46, 0.0 }
 0x395   : > { %3714 = vrcp.f32 %v2651_v35  ;;  %v2784_v35 = vsel %vm310_vm2, %v5835_v12, 0.0 }
 0x396   : > { %3716 = vrcp.f32 %v2642_v53  ;;  %2779 = vadd.xlane.f32.xlu0 %v2778_v55  ;;  %v3693_v25 = vpop.eup %3692 }
 0x397   : > { %2764 = vadd.xlane.f32.xlu1 %v2763_v63  ;;  %v5848_v41 = vpop.eup %3694  ;;  %3718 = vpow2.f32 %v2610_v61  ;;  %v2885_v6 = vmul.f32 %v3693_v25, %v5463_v21  ;;  %v2618_v61 = vmul.f32 1.442695, %v2495_v58 }
 0x398   : > { %v2657_v16 = vpop.xlane.xlu1 %2656  ;;  %v2648_v49 = vpop.xlane.xlu0 %2647 }
 0x399   : > { %v5853_v56 = vpop.eup %3696  ;;  %3720 = vrcp.f32 %v2657_v16  ;;  %2949 = vst.msk [vmem:[%s5846_s18 + $0x8] sm:$0xff] %vm310_vm2, %v2885_v6  ;;  %v2790_v16 = vsel %vm310_vm2, %v5848_v41, 0.0 }
 0x39a   : > { %v5857_v53 = vpop.eup %3698  ;;  %3722 = vrcp.f32 %v2648_v49  ;;  %2785 = vadd.xlane.f32.xlu0 %v2784_v35 }
 0x39b   : > { %v3701_v19 = vpop.eup %3700  ;;  %2770 = vadd.xlane.f32.xlu1 %v2769_v32  ;;  %3724 = vpow2.f32 %v2614_v62 }
 0x39c   : > { %v3703_v21 = vpop.eup %3702  ;;  %v2887_v44 = vmul.f32 %v3701_v19, %v5475_v37  ;;  %v2663_v55 = vpop.xlane.xlu1 %2662  ;;  %v2775_v37 = vsel %vm310_vm2, %v5853_v56, 0.0 }
 0x39d   : > { %v2654_v63 = vpop.xlane.xlu0 %2653  ;;  %v5864_v25 = vpop.eup %3704  ;;  %v2884_v6 = vmul.f32 %v3703_v21, %v5469_v20  ;;  %3726 = vrcp.f32 %v2663_v55 }
 0x39e   : > { %v3707_v49 = vpop.eup %3706  ;;  %2951 = vst.msk [vmem:[%s5846_s18 + $0x18] sm:$0xff] %vm310_vm2, %v2887_v44  ;;  %3728 = vrcp.f32 %v2654_v63  ;;  %2791 = vadd.xlane.f32.xlu0 %v2790_v16  ;;  %v2796_v44 = vsel %vm310_vm2, %v5857_v53, 0.0 }
 0x39f   : > { %v3709_v62 = vpop.eup %3708  ;;  %2948 = vst.msk [vmem:[%s5846_s18] sm:$0xff] %vm310_vm2, %v2884_v6  ;;  %v2889_v58 = vmul.f32 %v3707_v49, %v5491_v10  ;;  %2776 = vadd.xlane.f32.xlu1 %v2775_v37  ;;  %3730 = vpow2.f32 %v2618_v61 }
 0x3a0   : > { %v5876_v20 = vpop.eup %3710  ;;  %v2886_v35 = vmul.f32 %v3709_v62, %v5485_v34  ;;  %v2669_v32 = vpop.xlane.xlu1 %2668  ;;  %v2781_v34 = vsel %vm310_vm2, %v5864_v25, 0.0 }
 0x3a1   : > { %v2660_v19 = vpop.xlane.xlu0 %2659  ;;  %v5879_v21 = vpop.eup %3712  ;;  %2953 = vst.msk [vmem:[%s5846_s18 + $0x28] sm:$0xff] %vm310_vm2, %v2889_v58  ;;  %3732 = vrcp.f32 %v2669_v32 }
 0x3a2   : > { %v3715_v55 = vpop.eup %3714  ;;  %2950 = vst.msk [vmem:[%s5846_s18 + $0x10] sm:$0xff] %vm310_vm2, %v2886_v35  ;;  %3734 = vrcp.f32 %v2660_v19  ;;  %2797 = vadd.xlane.f32.xlu0 %v2796_v44  ;;  %v2802_v37 = vsel %vm310_vm2, %v5879_v21, 0.0 }
 0x3a3   : > { %v3717_v10 = vpop.eup %3716  ;;  %v2891_v61 = vmul.f32 %v3715_v55, %v5505_v26  ;;  %2782 = vadd.xlane.f32.xlu1 %v2781_v34 }
 0x3a4   : > { %v2888_v63 = vmul.f32 %v3717_v10, %v5497_v60  ;;  %v2675_v6 = vpop.xlane.xlu1 %2674  ;;  %v5891_v49 = vpop.eup %3718  ;;  %v2787_v60 = vsel %vm310_vm2, %v5876_v20, 0.0 }
 0x3a5   : > { %v2666_v16 = vpop.xlane.xlu0 %2665  ;;  %2955 = vst.msk [vmem:[%s5846_s18 + $0x38] sm:$0xff] %vm310_vm2, %v2891_v61  ;;  %3736 = vrcp.f32 %v2675_v6  ;;  %v2793_v34 = vsel %vm310_vm2, %v5891_v49, 0.0 }
 0x3a6   : > { %v3721_v62 = vpop.eup %3720  ;;  %2952 = vst.msk [vmem:[%s5846_s18 + $0x20] sm:$0xff] %vm310_vm2, %v2888_v63  ;;  %3738 = vrcp.f32 %v2666_v16  ;;  %2803 = vadd.xlane.f32.xlu0 %v2802_v37 }
 0x3a7   : > { %v3723_v26 = vpop.eup %3722  ;;  %v2893_v58 = vmul.f32 %v3721_v62, %v5517_v50  ;;  %2788 = vadd.xlane.f32.xlu1 %v2787_v60 }
 0x3a8   : > { %v2890_v35 = vmul.f32 %v3723_v26, %v5511_v36  ;;  %v2681_v32 = vpop.xlane.xlu1 %2680  ;;  %v5903_v44 = vpop.eup %3724 }
 0x3a9   : > { %v2672_v19 = vpop.xlane.xlu0 %2671  ;;  %2957 = vst.msk [vmem:[%s5846_s18 + $0x48] sm:$0xff] %vm310_vm2, %v2893_v58  ;;  %3740 = vrcp.f32 %v2681_v32  ;;  %v2799_v16 = vsel %vm310_vm2, %v5903_v44, 0.0 }
 0x3aa   : > { %v3727_v55 = vpop.eup %3726  ;;  %2954 = vst.msk [vmem:[%s5846_s18 + $0x30] sm:$0xff] %vm310_vm2, %v2890_v35  ;;  %3742 = vrcp.f32 %v2672_v19  ;;  %v6297_v35 = vld [vmem:[#allocation5_spill] sm:$0xff]  ;;  %v6298_v19 = vld [vmem:[#allocation14_spill] sm:$0xff] }
 0x3ab   : > { %v3729_v50 = vpop.eup %3728  ;;  %v2895_v36 = vmul.f32 %v3727_v55, %v5529_v14  ;;  %2794 = vadd.xlane.f32.xlu1 %v2793_v34  ;;  %v6299_v34 = vld [vmem:[#allocation7_spill] sm:$0xff] }
 0x3ac   : > { %v2892_v10 = vmul.f32 %v3729_v50, %v5523_v18  ;;  %v5913_v63 = vpop.eup %3730 }
 0x3ad   : > { %v2678_v61 = vpop.xlane.xlu0 %2677  ;;  %2959 = vst.msk [vmem:[%s5846_s18 + $0x58] sm:$0xff] %vm310_vm2, %v2895_v36  ;;  %v2805_v60 = vsel %vm310_vm2, %v5913_v63, 0.0 }
 0x3ae   : > { %3744 = vrcp.f32 %v2678_v61  ;;  %v3733_v6 = vpop.eup %3732  ;;  %2956 = vst.msk [vmem:[%s5846_s18 + $0x40] sm:$0xff] %vm310_vm2, %v2892_v10  ;;  %v6300_v10 = vld [vmem:[#allocation10_spill] sm:$0xff] }
 0x3af   : > { %v3735_v37 = vpop.eup %3734  ;;  %v2897_v14 = vmul.f32 %v3733_v6, %v5539_v11  ;;  %2800 = vadd.xlane.f32.xlu1 %v2799_v16  ;;  %v6301_v6 = vld [vmem:[#allocation12_spill] sm:$0xff] }
 0x3b0   : > { %v2894_v18 = vmul.f32 %v3735_v37, %v5531_v30 }
 0x3b1   : > { %2961 = vst.msk [vmem:[%s5846_s18 + $0x68] sm:$0xff] %vm310_vm2, %v2897_v14 }
 0x3b2   : > { %v3737_v62 = vpop.eup %3736  ;;  %2958 = vst.msk [vmem:[%s5846_s18 + $0x50] sm:$0xff] %vm310_vm2, %v2894_v18 }
 0x3b3   : > { %v3739_v26 = vpop.eup %3738  ;;  %v2899_v58 = vmul.f32 %v3737_v62, %v5549_v5  ;;  %2806 = vadd.xlane.f32.xlu1 %v2805_v60 }
 0x3b4   : > { %v2896_v11 = vmul.f32 %v3739_v26, %v6297_v35 }
 0x3b5   : > { %2963 = vst.msk [vmem:[%s5846_s18 + $0x78] sm:$0xff] %vm310_vm2, %v2899_v58 }
 0x3b6   : > { %v3741_v32 = vpop.eup %3740  ;;  %2960 = vst.msk [vmem:[%s5846_s18 + $0x60] sm:$0xff] %vm310_vm2, %v2896_v11 }
 0x3b7   : > { %v3743_v30 = vpop.eup %3742  ;;  %v2901_v55 = vmul.f32 %v3741_v32, %v6298_v19 }
 0x3b8   : > { %v2898_v50 = vmul.f32 %v3743_v30, %v6299_v34 }
 0x3b9   : > { %2965 = vst.msk [vmem:[%s5846_s18 + $0x88] sm:$0xff] %vm310_vm2, %v2901_v55 }
 0x3ba   : > { %2962 = vst.msk [vmem:[%s5846_s18 + $0x70] sm:$0xff] %vm310_vm2, %v2898_v50 }
 0x3bb   : > { %v3745_v36 = vpop.eup %3744 }
 0x3bc   : > { %v2900_v5 = vmul.f32 %v3745_v36, %v6300_v10 }
 0x3be   : > { %2964 = vst.msk [vmem:[%s5846_s18 + $0x80] sm:$0xff] %vm310_vm2, %v2900_v5 }
 0x3d3   : > { %v2426_v61 = vpop.xlane.xlu0 %2425 }
 0x3d4   : > { %v2496_v16 = vsub.f32 %v6301_v6, %v2426_v61 }
 0x3d6   : > { %v2620_v37 = vmul.f32 1.442695, %v2496_v16 }
 0x3d8   : > { %3746 = vpow2.f32 %v2620_v37 }
 0x3db   : > { %v2432_v14 = vpop.xlane.xlu0 %2431 }
 0x3dc   : > { %v2498_v18 = vsub.f32 %v5623_v7, %v2432_v14  ;;  %v6302_v14 = vld [vmem:[#allocation15_spill] sm:$0xff] }
 0x3de   : > { %v2624_v62 = vmul.f32 1.442695, %v2498_v18 }
 0x3df   : > { %v2684_v60 = vpop.xlane.xlu0 %2683 }
 0x3e0   : > { %3748 = vpow2.f32 %v2624_v62  ;;  %v2429_v26 = vpop.xlane.xlu1 %2428 }
 0x3e1   : > { %3750 = vrcp.f32 %v2684_v60  ;;  %v2497_v58 = vsub.f32 %v5634_v4, %v2429_v26 }
 0x3e3   : > { %v2622_v35 = vmul.f32 1.442695, %v2497_v58  ;;  %v2690_v11 = vpop.xlane.xlu0 %2689 }
 0x3e4   : > { %3752 = vrcp.f32 %v2690_v11 }
 0x3e5   : > { %v5947_v32 = vpop.eup %3746  ;;  %3754 = vpow2.f32 %v2622_v35 }
 0x3e6   : > { %v2808_v30 = vsel %vm310_vm2, %v5947_v32, 0.0 }
 0x3e7   : > { %2809 = vadd.xlane.f32.xlu0 %v2808_v30  ;;  %v2696_v19 = vpop.xlane.xlu0 %2695 }
 0x3e8   : > { %3756 = vrcp.f32 %v2696_v19  ;;  %v2435_v7 = vpop.xlane.xlu1 %2434 }
 0x3e9   : > { %v2499_v55 = vsub.f32 %v5655_v47, %v2435_v7 }
 0x3eb   : > { %v2626_v34 = vmul.f32 1.442695, %v2499_v55  ;;  %v2702_v50 = vpop.xlane.xlu0 %2701 }
 0x3ec   : > { %3758 = vrcp.f32 %v2702_v50  ;;  %v2687_v4 = vpop.xlane.xlu1 %2686 }
 0x3ed   : > { %v5952_v36 = vpop.eup %3748  ;;  %3760 = vpow2.f32 %v2626_v34 }
 0x3ee   : > { %v3751_v10 = vpop.eup %3750  ;;  %3762 = vrcp.f32 %v2687_v4  ;;  %v2814_v5 = vsel %vm310_vm2, %v5952_v36, 0.0 }
 0x3ef   : > { %v2902_v61 = vmul.f32 %v3751_v10, %v5629_v48  ;;  %2815 = vadd.xlane.f32.xlu0 %v2814_v5  ;;  %v2708_v6 = vpop.xlane.xlu0 %2707 }
 0x3f0   : > { %3764 = vrcp.f32 %v2708_v6  ;;  %v2693_v47 = vpop.xlane.xlu1 %2692 }
 0x3f1   : > { %v3753_v16 = vpop.eup %3752  ;;  %2966 = vst.msk [vmem:[%s5846_s18 + $0x90] sm:$0xff] %vm310_vm2, %v2902_v61  ;;  %3766 = vrcp.f32 %v2693_v47 }
 0x3f2   : > { %v5959_v37 = vpop.eup %3754  ;;  %v2904_v18 = vmul.f32 %v3753_v16, %v6302_v14 }
 0x3f3   : > { %v2714_v62 = vpop.xlane.xlu0 %2713  ;;  %v2811_v60 = vsel %vm310_vm2, %v5959_v37, 0.0 }
 0x3f4   : > { %2968 = vst.msk [vmem:[%s5846_s18 + $0xa0] sm:$0xff] %vm310_vm2, %v2904_v18  ;;  %3768 = vrcp.f32 %v2714_v62  ;;  %2812 = vadd.xlane.f32.xlu1 %v2811_v60  ;;  %v2699_v48 = vpop.xlane.xlu1 %2698 }
 0x3f5   : > { %v3757_v26 = vpop.eup %3756  ;;  %3770 = vrcp.f32 %v2699_v48 }
 0x3f6   : > { %v2906_v58 = vmul.f32 %v3757_v26, %v5650_v54 }
 0x3f7   : > { %v2720_v35 = vpop.xlane.xlu0 %2719 }
 0x3f8   : > { %2970 = vst.msk [vmem:[%s5846_s18 + $0xb0] sm:$0xff] %vm310_vm2, %v2906_v58  ;;  %3772 = vrcp.f32 %v2720_v35  ;;  %v2705_v11 = vpop.xlane.xlu1 %2704 }
 0x3f9   : > { %v3759_v30 = vpop.eup %3758  ;;  %3774 = vrcp.f32 %v2705_v11 }
 0x3fa   : > { %v5969_v19 = vpop.eup %3760  ;;  %v2908_v7 = vmul.f32 %v3759_v30, %v5661_v29 }
 0x3fb   : > { %v3763_v55 = vpop.eup %3762  ;;  %v2726_v34 = vpop.xlane.xlu0 %2725  ;;  %v2817_v50 = vsel %vm310_vm2, %v5969_v19, 0.0 }
 0x3fc   : > { %2972 = vst.msk [vmem:[%s5846_s18 + $0xc0] sm:$0xff] %vm310_vm2, %v2908_v7  ;;  %v2903_v54 = vmul.f32 %v3763_v55, %v5667_v27  ;;  %3776 = vrcp.f32 %v2726_v34  ;;  %2818 = vadd.xlane.f32.xlu1 %v2817_v50  ;;  %v2711_v4 = vpop.xlane.xlu1 %2710 }
 0x3fd   : > { %v3765_v10 = vpop.eup %3764  ;;  %3778 = vrcp.f32 %v2711_v4 }
 0x3fe   : > { %v3767_v5 = vpop.eup %3766  ;;  %2967 = vst.msk [vmem:[%s5846_s18 + $0x98] sm:$0xff] %vm310_vm2, %v2903_v54  ;;  %v2910_v29 = vmul.f32 %v3765_v10, %v5673_v17 }
 0x3ff   : > { %v2905_v61 = vmul.f32 %v3767_v5, %v5679_v42  ;;  %v2732_v6 = vpop.xlane.xlu0 %2731 }
 0x400   : > { %2974 = vst.msk [vmem:[%s5846_s18 + $0xd0] sm:$0xff] %vm310_vm2, %v2910_v29  ;;  %3780 = vrcp.f32 %v2732_v6  ;;  %v2717_v47 = vpop.xlane.xlu1 %2716 }
 0x401   : > { %v3769_v27 = vpop.eup %3768  ;;  %2969 = vst.msk [vmem:[%s5846_s18 + $0xa8] sm:$0xff] %vm310_vm2, %v2905_v61  ;;  %3782 = vrcp.f32 %v2717_v47 }
 0x402   : > { %v3771_v16 = vpop.eup %3770  ;;  %v2912_v14 = vmul.f32 %v3769_v27, %v5685_v51 }
 0x403   : > { %v2907_v18 = vmul.f32 %v3771_v16, %v5691_v59  ;;  %v2738_v17 = vpop.xlane.xlu0 %2737 }
 0x404   : > { %2976 = vst.msk [vmem:[%s5846_s18 + $0xe0] sm:$0xff] %vm310_vm2, %v2912_v14  ;;  %3784 = vrcp.f32 %v2738_v17  ;;  %v2723_v42 = vpop.xlane.xlu1 %2722 }
 0x405   : > { %v3773_v62 = vpop.eup %3772  ;;  %2971 = vst.msk [vmem:[%s5846_s18 + $0xb8] sm:$0xff] %vm310_vm2, %v2907_v18  ;;  %3786 = vrcp.f32 %v2723_v42  ;;  %v6303_v18 = vld [vmem:[#allocation20_spill] sm:$0xff] }
 0x406   : > { %v3775_v60 = vpop.eup %3774  ;;  %v2914_v48 = vmul.f32 %v3773_v62, %v5697_v52 }
 0x407   : > { %v2909_v26 = vmul.f32 %v3775_v60, %v5703_v28  ;;  %v2744_v51 = vpop.xlane.xlu0 %2743 }
 0x408   : > { %2978 = vst.msk [vmem:[%s5846_s18 + $0xf0] sm:$0xff] %vm310_vm2, %v2914_v48  ;;  %3788 = vrcp.f32 %v2744_v51  ;;  %v2729_v59 = vpop.xlane.xlu1 %2728 }
 0x409   : > { %v3777_v58 = vpop.eup %3776  ;;  %2973 = vst.msk [vmem:[%s5846_s18 + $0xc8] sm:$0xff] %vm310_vm2, %v2909_v26  ;;  %3790 = vrcp.f32 %v2729_v59 }
 0x40a   : > { %v3779_v35 = vpop.eup %3778  ;;  %v2916_v11 = vmul.f32 %v3777_v58, %v5709_v38 }
 0x40b   : > { %v2911_v30 = vmul.f32 %v3779_v35, %v5715_v57  ;;  %v2750_v52 = vpop.xlane.xlu0 %2749 }
 0x40c   : > { %2980 = vst.msk [vmem:[%s5846_s18 + $0x100] sm:$0xff] %vm310_vm2, %v2916_v11  ;;  %3792 = vrcp.f32 %v2750_v52  ;;  %v2735_v28 = vpop.xlane.xlu1 %2734 }
 0x40d   : > { %v3781_v7 = vpop.eup %3780  ;;  %2975 = vst.msk [vmem:[%s5846_s18 + $0xd8] sm:$0xff] %vm310_vm2, %v2911_v30  ;;  %3794 = vrcp.f32 %v2735_v28 }
 0x40e   : > { %v3783_v55 = vpop.eup %3782  ;;  %v2918_v34 = vmul.f32 %v3781_v7, %v5721_v45 }
 0x40f   : > { %v2913_v50 = vmul.f32 %v3783_v55, %v5727_v22  ;;  %v2756_v38 = vpop.xlane.xlu0 %2755 }
 0x410   : > { %2982 = vst.msk [vmem:[%s5846_s18 + $0x110] sm:$0xff] %vm310_vm2, %v2918_v34  ;;  %3796 = vrcp.f32 %v2756_v38  ;;  %v2741_v57 = vpop.xlane.xlu1 %2740 }
 0x411   : > { %v3785_v54 = vpop.eup %3784  ;;  %2977 = vst.msk [vmem:[%s5846_s18 + $0xe8] sm:$0xff] %vm310_vm2, %v2913_v50  ;;  %3798 = vrcp.f32 %v2741_v57 }
 0x412   : > { %v3787_v4 = vpop.eup %3786  ;;  %v2920_v10 = vmul.f32 %v3785_v54, %v5733_v2 }
 0x413   : > { %v2915_v5 = vmul.f32 %v3787_v4, %v5739_v23  ;;  %v2762_v45 = vpop.xlane.xlu0 %2761 }
 0x414   : > { %2984 = vst.msk [vmem:[%s5846_s18 + $0x120] sm:$0xff] %vm310_vm2, %v2920_v10  ;;  %3800 = vrcp.f32 %v2762_v45  ;;  %v2747_v22 = vpop.xlane.xlu1 %2746 }
 0x415   : > { %v3789_v29 = vpop.eup %3788  ;;  %2979 = vst.msk [vmem:[%s5846_s18 + $0xf8] sm:$0xff] %vm310_vm2, %v2915_v5  ;;  %3802 = vrcp.f32 %v2747_v22 }
 0x416   : > { %v3791_v61 = vpop.eup %3790  ;;  %v2922_v6 = vmul.f32 %v3789_v29, %v5745_v9 }
 0x417   : > { %v2917_v47 = vmul.f32 %v3791_v61, %v5751_v1  ;;  %v2768_v2 = vpop.xlane.xlu0 %2767 }
 0x418   : > { %2986 = vst.msk [vmem:[%s5846_s18 + $0x130] sm:$0xff] %vm310_vm2, %v2922_v6  ;;  %3804 = vrcp.f32 %v2768_v2  ;;  %v2753_v23 = vpop.xlane.xlu1 %2752 }
 0x419   : > { %v3793_v27 = vpop.eup %3792  ;;  %2981 = vst.msk [vmem:[%s5846_s18 + $0x108] sm:$0xff] %vm310_vm2, %v2917_v47  ;;  %3806 = vrcp.f32 %v2753_v23 }
 0x41a   : > { %v3795_v16 = vpop.eup %3794  ;;  %v2924_v14 = vmul.f32 %v3793_v27, %v5757_v3 }
 0x41b   : > { %v2919_v17 = vmul.f32 %v3795_v16, %v6303_v18  ;;  %v2774_v9 = vpop.xlane.xlu0 %2773 }
 0x41c   : > { %2988 = vst.msk [vmem:[%s5846_s18 + $0x140] sm:$0xff] %vm310_vm2, %v2924_v14  ;;  %3808 = vrcp.f32 %v2774_v9  ;;  %v2759_v1 = vpop.xlane.xlu1 %2758 }
 0x41d   : > { %v3797_v42 = vpop.eup %3796  ;;  %2983 = vst.msk [vmem:[%s5846_s18 + $0x118] sm:$0xff] %vm310_vm2, %v2919_v17  ;;  %3810 = vrcp.f32 %v2759_v1 }
 0x41e   : > { %v3799_v62 = vpop.eup %3798  ;;  %v2926_v60 = vmul.f32 %v3797_v42, %v5773_v39 }
 0x41f   : > { %v2921_v48 = vmul.f32 %v3799_v62, %v5777_v43  ;;  %v2780_v3 = vpop.xlane.xlu0 %2779 }
 0x420   : > { %2990 = vst.msk [vmem:[%s5846_s18 + $0x150] sm:$0xff] %vm310_vm2, %v2926_v60  ;;  %3812 = vrcp.f32 %v2780_v3  ;;  %v2765_v26 = vpop.xlane.xlu1 %2764 }
 0x421   : > { %v3801_v51 = vpop.eup %3800  ;;  %2985 = vst.msk [vmem:[%s5846_s18 + $0x128] sm:$0xff] %vm310_vm2, %v2921_v48  ;;  %3814 = vrcp.f32 %v2765_v26 }
 0x422   : > { %v3803_v59 = vpop.eup %3802  ;;  %v2928_v58 = vmul.f32 %v3801_v51, %v5789_v31 }
 0x423   : > { %v2923_v35 = vmul.f32 %v3803_v59, %v5793_v0  ;;  %v2786_v39 = vpop.xlane.xlu0 %2785 }
 0x424   : > { %2992 = vst.msk [vmem:[%s5846_s18 + $0x160] sm:$0xff] %vm310_vm2, %v2928_v58  ;;  %3816 = vrcp.f32 %v2786_v39  ;;  %v2771_v43 = vpop.xlane.xlu1 %2770 }
 0x425   : > { %v3805_v11 = vpop.eup %3804  ;;  %2987 = vst.msk [vmem:[%s5846_s18 + $0x138] sm:$0xff] %vm310_vm2, %v2923_v35  ;;  %3818 = vrcp.f32 %v2771_v43 }
 0x426   : > { %v3807_v30 = vpop.eup %3806  ;;  %v2930_v52 = vmul.f32 %v3805_v11, %v5800_v8 }
 0x427   : > { %v2925_v28 = vmul.f32 %v3807_v30, %v5804_v13  ;;  %v2792_v31 = vpop.xlane.xlu0 %2791 }
 0x428   : > { %2994 = vst.msk [vmem:[%s5846_s18 + $0x170] sm:$0xff] %vm310_vm2, %v2930_v52  ;;  %3820 = vrcp.f32 %v2792_v31  ;;  %v2777_v0 = vpop.xlane.xlu1 %2776 }
 0x429   : > { %v3809_v7 = vpop.eup %3808  ;;  %2989 = vst.msk [vmem:[%s5846_s18 + $0x148] sm:$0xff] %vm310_vm2, %v2925_v28  ;;  %3822 = vrcp.f32 %v2777_v0 }
 0x42a   : > { %v3811_v55 = vpop.eup %3810  ;;  %v2932_v34 = vmul.f32 %v3809_v7, %v5815_v15 }
 0x42b   : > { %v2927_v50 = vmul.f32 %v3811_v55, %v5819_v33  ;;  %v2798_v8 = vpop.xlane.xlu0 %2797 }
 0x42c   : > { %2996 = vst.msk [vmem:[%s5846_s18 + $0x180] sm:$0xff] %vm310_vm2, %v2932_v34  ;;  %3824 = vrcp.f32 %v2798_v8  ;;  %v2783_v13 = vpop.xlane.xlu1 %2782 }
 0x42d   : > { %v3813_v38 = vpop.eup %3812  ;;  %2991 = vst.msk [vmem:[%s5846_s18 + $0x158] sm:$0xff] %vm310_vm2, %v2927_v50  ;;  %3826 = vrcp.f32 %v2783_v13 }
 0x42e   : > { %v3815_v57 = vpop.eup %3814  ;;  %v2934_v54 = vmul.f32 %v3813_v38, %v5827_v40 }
 0x42f   : > { %v2929_v4 = vmul.f32 %v3815_v57, %v5831_v24  ;;  %v2804_v15 = vpop.xlane.xlu0 %2803 }
 0x430   : > { %2998 = vst.msk [vmem:[%s5846_s18 + $0x190] sm:$0xff] %vm310_vm2, %v2934_v54  ;;  %3828 = vrcp.f32 %v2804_v15  ;;  %v2789_v33 = vpop.xlane.xlu1 %2788 }
 0x431   : > { %v3817_v10 = vpop.eup %3816  ;;  %2993 = vst.msk [vmem:[%s5846_s18 + $0x168] sm:$0xff] %vm310_vm2, %v2929_v4  ;;  %3830 = vrcp.f32 %v2789_v33 }
 0x432   : > { %v3819_v5 = vpop.eup %3818  ;;  %v2936_v45 = vmul.f32 %v3817_v10, %v5835_v12 }
 0x433   : > { %v2931_v22 = vmul.f32 %v3819_v5, %v5839_v46 }
 0x434   : > { %3000 = vst.msk [vmem:[%s5846_s18 + $0x1a0] sm:$0xff] %vm310_vm2, %v2936_v45  ;;  %v2795_v40 = vpop.xlane.xlu1 %2794 }
 0x435   : > { %v3821_v24 = vpop.eup %3820  ;;  %2995 = vst.msk [vmem:[%s5846_s18 + $0x178] sm:$0xff] %vm310_vm2, %v2931_v22  ;;  %3832 = vrcp.f32 %v2795_v40 }
 0x436   : > { %v3823_v29 = vpop.eup %3822  ;;  %v2938_v61 = vmul.f32 %v3821_v24, %v5848_v41 }
 0x437   : > { %v2933_v6 = vmul.f32 %v3823_v29, %v5853_v56 }
 0x438   : > { %3002 = vst.msk [vmem:[%s5846_s18 + $0x1b0] sm:$0xff] %vm310_vm2, %v2938_v61  ;;  %v2801_v12 = vpop.xlane.xlu1 %2800 }
 0x439   : > { %v3825_v46 = vpop.eup %3824  ;;  %2997 = vst.msk [vmem:[%s5846_s18 + $0x188] sm:$0xff] %vm310_vm2, %v2933_v6  ;;  %3834 = vrcp.f32 %v2801_v12 }
 0x43a   : > { %v3827_v47 = vpop.eup %3826  ;;  %v2940_v2 = vmul.f32 %v3825_v46, %v5857_v53 }
 0x43b   : > { %v2935_v23 = vmul.f32 %v3827_v47, %v5864_v25 }
 0x43c   : > { %3004 = vst.msk [vmem:[%s5846_s18 + $0x1c0] sm:$0xff] %vm310_vm2, %v2940_v2  ;;  %v2807_v41 = vpop.xlane.xlu1 %2806 }
 0x43d   : > { %v3829_v56 = vpop.eup %3828  ;;  %2999 = vst.msk [vmem:[%s5846_s18 + $0x198] sm:$0xff] %vm310_vm2, %v2935_v23  ;;  %3836 = vrcp.f32 %v2807_v41 }
 0x43e   : > { %v3831_v27 = vpop.eup %3830  ;;  %v2942_v16 = vmul.f32 %v3829_v56, %v5879_v21 }
 0x43f   : > { %v2937_v14 = vmul.f32 %v3831_v27, %v5876_v20 }
 0x440   : > { %3006 = vst.msk [vmem:[%s5846_s18 + $0x1d0] sm:$0xff] %vm310_vm2, %v2942_v16 }
 0x441   : > { %3001 = vst.msk [vmem:[%s5846_s18 + $0x1a8] sm:$0xff] %vm310_vm2, %v2937_v14 }
 0x442   : > { %v3833_v53 = vpop.eup %3832 }
 0x443   : > { %v2939_v25 = vmul.f32 %v3833_v53, %v5891_v49 }
 0x445   : > { %3003 = vst.msk [vmem:[%s5846_s18 + $0x1b8] sm:$0xff] %vm310_vm2, %v2939_v25 }
 0x446   : > { %v3835_v18 = vpop.eup %3834 }
 0x447   : > { %v2941_v17 = vmul.f32 %v3835_v18, %v5903_v44 }
 0x449   : > { %3005 = vst.msk [vmem:[%s5846_s18 + $0x1c8] sm:$0xff] %vm310_vm2, %v2941_v17 }
 0x44a   : > { %v3837_v9 = vpop.eup %3836 }
 0x44b   : > { %v2943_v21 = vmul.f32 %v3837_v9, %v5913_v63 }
 0x44d   : > { %3007 = vst.msk [vmem:[%s5846_s18 + $0x1d8] sm:$0xff] %vm310_vm2, %v2943_v21 }
 0x470   : > { %v2810_v20 = vpop.xlane.xlu0 %2809 }
 0x471   : > { %3838 = vrcp.f32 %v2810_v20 }
 0x478   : > { %v2816_v1 = vpop.xlane.xlu0 %2815 }
 0x479   : > { %3840 = vrcp.f32 %v2816_v1 }
 0x47d   : > { %v2813_v49 = vpop.xlane.xlu1 %2812 }
 0x47e   : > { %v3839_v42 = vpop.eup %3838  ;;  %3842 = vrcp.f32 %v2813_v49 }
 0x47f   : > { %v2944_v62 = vmul.f32 %v3839_v42, %v5947_v32 }
 0x481   : > { %3008 = vst.msk [vmem:[%s5846_s18 + $0x1e0] sm:$0xff] %vm310_vm2, %v2944_v62 }
 0x485   : > { %v2819_v44 = vpop.xlane.xlu1 %2818 }
 0x486   : > { %v3841_v60 = vpop.eup %3840  ;;  %3844 = vrcp.f32 %v2819_v44 }
 0x487   : > { %v2946_v63 = vmul.f32 %v3841_v60, %v5952_v36 }
 0x489   : > { %3010 = vst.msk [vmem:[%s5846_s18 + $0x1f0] sm:$0xff] %vm310_vm2, %v2946_v63 }
 0x48b   : > { %v3843_v48 = vpop.eup %3842 }
 0x48c   : > { %v2945_v3 = vmul.f32 %v3843_v48, %v5959_v37 }
 0x48e   : > { %3009 = vst.msk [vmem:[%s5846_s18 + $0x1e8] sm:$0xff] %vm310_vm2, %v2945_v3 }
 0x493   : > { %v3845_v26 = vpop.eup %3844 }
 0x494   : > { %v2947_v51 = vmul.f32 %v3845_v26, %v5969_v19 }
 0x496   : > { %3011 = vst.msk [vmem:[%s5846_s18 + $0x1f8] sm:$0xff] %vm310_vm2, %v2947_v51 }
 0x497 PF: > { %s17_s24 = sadd.s32 1, %s3852_s24  }
 0x498   : > { %p14_p5 = scmp.ge.s32.totalorder %s17_s24, 4  }
 0x49a   :  { %16 = sbr.rel (!%p14_p5) target bundleno = 1 (0x1), region = 81 }

</bundles_post_ra>
